<compile_context>
chip_gen: v6e
topology: v6e:2x2x1
jax: 0.10.0
libtpu: 0.0.40
codegen_flags: <defaults>
</compile_context>

<pallas_src>
import jax
import jax.numpy as jnp
from jax.experimental import pallas as pl
from jax.experimental.pallas import tpu as pltpu


def _make_lrpe_kernel(num_heads, head_dim, num_emb, has_mask, has_fac,
                      write_attn, gather_dtype):
  """Builds the kernel body for a given static configuration."""

  def kernel(*refs):
    (xq_ref, xk_ref, xv_ref,
     wqT_ref, bq_ref, wkT_ref, bk_ref, wvT_ref, bv_ref,
     embbd_ref, idx_ref) = refs[:11]
    pos = 11
    mask_ref = None
    fac_ref = None
    if has_mask:
      mask_ref = refs[pos]; pos += 1
    if has_fac:
      fac_ref = refs[pos]; pos += 1
    out_ref = refs[pos]; pos += 1
    attn_ref = refs[pos] if write_attn else None

    f32 = jnp.float32
    bf16 = jnp.bfloat16
    gdt = gather_dtype
    H, c, P = num_heads, head_dim, num_emb

    x_q = xq_ref[0]          # (TN, C) bf16
    x_k = xk_ref[0]          # (M, C)  bf16
    x_v = xv_ref[0]          # (M, C)  bf16
    TN = x_q.shape[0]
    M = x_k.shape[0]

    # --- projections: wide MXU matmuls (bf16 in, f32 accumulate) ----------------
    # 1/sqrt(head_dim) is pre-folded into Wq/bq by the wrapper.
    q = jnp.dot(x_q, wqT_ref[...], preferred_element_type=f32) + bq_ref[...]
    k = jnp.dot(x_k, wkT_ref[...], preferred_element_type=f32) + bk_ref[...]
    v = jnp.dot(x_v, wvT_ref[...], preferred_element_type=f32) + bv_ref[...]
    qb = q.astype(bf16)
    kb = k.astype(bf16)
    vb = v.astype(bf16)

    # --- positional "bank" for all heads at once --------------------------------
    # embbd is block-diagonal so bank_all[n, h*P + p] = q_h[n, :] . emb[h, p, :]
    bank_all = jnp.dot(qb, embbd_ref[...], preferred_element_type=f32)  # (TN, H*P)
    bank_g = bank_all.astype(gdt)

    # --- one-hot gather selector, built once, LANE dim = M ----------------------
    # (TN, P, M): M on lanes (dense), P on sublanes.  Shared by every head.
    idx = idx_ref[0]                                                    # (TN, M)
    p_iota = jax.lax.broadcasted_iota(jnp.int32, (TN, P, M), 1)
    onehot = (idx[:, None, :] == p_iota).astype(gdt)                    # (TN, P, M)
    # NOTE: out-of-range indices select nothing (positional score 0); torch.gather
    # would instead raise on invalid indices.

    if has_fac:
      fac = fac_ref[0]                                                  # (TN, M)
    if has_mask:
      # Additive -inf bias, computed once (not per head).
      neg = jnp.where(mask_ref[0] > 0.5, -jnp.inf, 0.0).astype(f32)     # (1, M)

    ctx_heads = []
    for h in range(H):
      lo = h * c
      q_h = qb[:, lo:lo + c]           # (TN, c)
      k_h = kb[:, lo:lo + c]           # (M, c)
      v_h = vb[:, lo:lo + c]           # (M, c)

      # content scores: q_h @ k_h^T -> (TN, M) (scale already folded into q)
      scores_e = jax.lax.dot_general(q_h, k_h, (((1,), (1,)), ((), ())),
                                     preferred_element_type=f32)
      # positional scores: gather bank_h[n, idx[n, m]] via the hoisted one-hot
      bank_h = bank_g[:, h * P:(h + 1) * P]                             # (TN, P)
      scores_p = jnp.sum(bank_h[:, :, None] * onehot, axis=1).astype(f32)

      scores = scores_e + scores_p
      if has_fac:
        scores = fac * scores
      if has_mask:
        scores = scores + neg
      # NOTE: rows whose keys are all masked produce NaN (0 * inf), same as the
      # PyTorch reference (0/0 softmax).

      smax = jnp.max(scores, axis=-1, keepdims=True)
      ex = jnp.exp(scores - smax)
      denom = jnp.sum(ex, axis=-1, keepdims=True)
      probs = ex * pl.reciprocal(denom, approx=True)                    # (TN, M)

      if write_attn:
        attn_ref[0, h] = probs

      ctx_heads.append(jnp.dot(probs.astype(bf16), v_h,
                               preferred_element_type=f32))             # (TN, c)

    if c % 128 == 0:
      # Already lane-aligned; store per head directly.
      for h in range(H):
        out_ref[0, :, h * c:(h + 1) * c] = ctx_heads[h].astype(out_ref.dtype)
    else:
      # One lane-dense store of the full (TN, C) block.
      out_ref[0] = jnp.concatenate(ctx_heads, axis=-1).astype(out_ref.dtype)

  return kernel


def _pick_n_tile(n, target):
  """Largest N tile <= target that is a multiple of 8 and divides N (else N)."""
  if n <= target:
    return n
  for t in range(min(target, n), 7, -1):
    if n % t == 0 and t % 8 == 0:
      return t
  return n


def _vmem_cap_bytes():
  try:
    info = pltpu.get_tpu_info()
    cap = getattr(info, "vmem_capacity_bytes", None)
    if cap:
      return int(cap)
  except Exception:
    pass
  return 64 * 2**20


def _gather_dtype():
  # bf16 gather on v6e/v7x (packed VALU); f32 on v5-generation (no bf16 VPU).
  try:
    kind = jax.devices()[0].device_kind.lower()
  except Exception:
    kind = ""
  return jnp.float32 if "v5" in kind else jnp.bfloat16


def lrpe_multi_head_attention(params, input_q, input_k, input_v, emb_indices_qk,
                              key_masks=None, attention_factors=None,
                              return_attention=True, n_tile_target=256):
  """Pallas implementation of LRPEMultiHeadAttention.forward.

  Args mirror the PyTorch module:
    input_q: (B, N, C), input_k/input_v: (B, M, C), emb_indices_qk: (B, N, M),
    key_masks: (B, M) bool (True = ignored) or None,
    attention_factors: (B, N, M) or None.
  Returns (hidden_states (B, N, C), attention_scores (B, H, N, M) or None).
  Dropout is None in the reference construction -> identity.
  """
  B, N, C = input_q.shape
  M = input_k.shape[1]
  H = int(params["num_heads"])
  if C % H != 0:
    raise ValueError(f'"d_model" ({C}) is not divisible by "num_heads" ({H}).')
  c = C // H
  # TODO(synk): LearnablePositionalEmbedding is assumed to be a plain learnable
  # (P, C) table with dropout=None; its exact definition is not provided.
  emb_table = params["emb_table"]
  P = emb_table.shape[0]

  bf16 = jnp.bfloat16
  f32 = jnp.float32
  has_mask = key_masks is not None
  has_fac = attention_factors is not None
  gather_dtype = _gather_dtype()

  TN = _pick_n_tile(N, n_tile_target)
  n_tiles = N // TN

  scale = 1.0 / float(c) ** 0.5

  # Block-diagonal positional weight so one matmul produces the bank for all heads:
  #   emb_bd[h*c + ci, h*P + p] = emb_table[p, h*c + ci], zero off the block diagonal.
  # (Scale is folded into q, so the bank inherits it automatically.)
  emb_f = emb_table.astype(f32)
  emb_bd = jnp.zeros((C, H * P), f32)
  for h in range(H):
    emb_bd = emb_bd.at[h * c:(h + 1) * c, h * P:(h + 1) * P].set(
        emb_f[:, h * c:(h + 1) * c].T)
  emb_bd = emb_bd.astype(bf16)

  # Fold 1/sqrt(head_dim) into the q projection (f32 fold, then cast).
  wqT = (params["Wq"].astype(f32) * scale).T.astype(bf16)
  bq = (params["bq"].astype(f32) * scale).reshape(1, C)

  inputs = [
      input_q.astype(bf16), input_k.astype(bf16), input_v.astype(bf16),
      wqT, bq,
      params["Wk"].T.astype(bf16), params["bk"].astype(f32).reshape(1, C),
      params["Wv"].T.astype(bf16), params["bv"].astype(f32).reshape(1, C),
      emb_bd,
      emb_indices_qk.astype(jnp.int32),
  ]

  def const_spec(shape):
    nd = len(shape)
    return pl.BlockSpec(shape, lambda b, n, _nd=nd: (0,) * _nd)

  in_specs = [
      pl.BlockSpec((1, TN, C), lambda b, n: (b, n, 0)),   # input_q (N-tiled)
      pl.BlockSpec((1, M, C), lambda b, n: (b, 0, 0)),    # input_k
      pl.BlockSpec((1, M, C), lambda b, n: (b, 0, 0)),    # input_v
      const_spec((C, C)), const_spec((1, C)),             # WqT (scaled), bq (scaled)
      const_spec((C, C)), const_spec((1, C)),             # WkT, bk
      const_spec((C, C)), const_spec((1, C)),             # WvT, bv
      const_spec((C, H * P)),                             # block-diagonal emb bank
      pl.BlockSpec((1, TN, M), lambda b, n: (b, n, 0)),   # relative position indices
  ]
  if has_mask:
    inputs.append(key_masks.astype(f32).reshape(B, 1, M))
    in_specs.append(pl.BlockSpec((1, 1, M), lambda b, n: (b, 0, 0)))
  if has_fac:
    inputs.append(attention_factors.astype(f32))
    in_specs.append(pl.BlockSpec((1, TN, M), lambda b, n: (b, n, 0)))

  hidden_spec = pl.BlockSpec((1, TN, C), lambda b, n: (b, n, 0))
  if return_attention:
    out_shape = (jax.ShapeDtypeStruct((B, N, C), f32),
                 jax.ShapeDtypeStruct((B, H, N, M), f32))
    out_specs = (hidden_spec,
                 pl.BlockSpec((1, H, TN, M), lambda b, n: (b, 0, n, 0)))
  else:
    out_shape = jax.ShapeDtypeStruct((B, N, C), f32)
    out_specs = hidden_spec

  kernel = _make_lrpe_kernel(H, c, P, has_mask, has_fac, return_attention,
                             gather_dtype)

  # Rough per-step working-set estimate (double-buffered blocks + intermediates)
  # used to size the scoped VMEM limit, capped at ~3/4 of physical VMEM.
  gbytes = 2 if gather_dtype == bf16 else 4
  blk_in = ((TN * C + 2 * M * C) * 2 + TN * M * 4
            + 3 * C * C * 2 + 3 * C * 4 + C * H * P * 2
            + (TN * M * 4 if has_fac else 0) + (M * 4 if has_mask else 0))
  blk_out = TN * C * 4 + (H * TN * M * 4 if return_attention else 0)
  scratch = (TN * P * M * gbytes                 # one-hot selector
             + TN * H * P * (4 + gbytes)         # bank (f32 + gather-dtype copy)
             + (TN + 2 * M) * C * (4 + 2)        # q/k/v f32 + bf16
             + 6 * TN * M * 4                    # per-head score temporaries
             + TN * C * 4)                       # staged context
  est = 2 * (blk_in + blk_out) + scratch
  cap = _vmem_cap_bytes()
  vmem_limit = int(max(32 * 2**20, min(cap * 3 // 4, 2 * est)))

  res = pl.pallas_call(
      kernel,
      out_shape=out_shape,
      grid_spec=pltpu.PrefetchScalarGridSpec(
          num_scalar_prefetch=0,
          grid=(B, n_tiles),
          in_specs=in_specs,
          out_specs=out_specs,
      ),
      compiler_params=pltpu.CompilerParams(
          dimension_semantics=("parallel", "parallel"),
          vmem_limit_bytes=vmem_limit,
      ),
  )(*inputs)

  if return_attention:
    hidden, attn = res
    return hidden, attn
  return res, None


def _reference(params, input_q, input_k, input_v, emb_indices,
               key_masks=None, attention_factors=None):
  """Plain-JAX mirror of the PyTorch forward (f32 math on bf16-rounded operands)."""
  hp = jax.lax.Precision.HIGHEST
  f32 = jnp.float32
  H = int(params["num_heads"])
  B, N, C = input_q.shape
  M = input_k.shape[1]
  c = C // H
  P = params["emb_table"].shape[0]

  def cast(a):
    return a.astype(jnp.bfloat16).astype(f32)

  xq, xk, xv = cast(input_q), cast(input_k), cast(input_v)
  Wq, Wk, Wv = cast(params["Wq"]), cast(params["Wk"]), cast(params["Wv"])
  bq, bk, bv = (params["bq"].astype(f32), params["bk"].astype(f32),
                params["bv"].astype(f32))
  emb = cast(params["emb_table"])

  def proj(x, W, b):
    return jnp.einsum('bnc,dc->bnd', x, W, precision=hp) + b

  q = proj(xq, Wq, bq).reshape(B, N, H, c).transpose(0, 2, 1, 3)
  k = proj(xk, Wk, bk).reshape(B, M, H, c).transpose(0, 2, 1, 3)
  v = proj(xv, Wv, bv).reshape(B, M, H, c).transpose(0, 2, 1, 3)

  emb_bank = emb.reshape(P, H, c).transpose(1, 0, 2)                    # (H, P, c)
  bank = jnp.einsum('bhnc,hpc->bhnp', q, emb_bank, precision=hp)
  gidx = jnp.broadcast_to(emb_indices.astype(jnp.int32)[:, None], (B, H, N, M))
  scores_p = jnp.take_along_axis(bank, gidx, axis=-1)
  scores_e = jnp.einsum('bhnc,bhmc->bhnm', q, k, precision=hp)
  scores = (scores_e + scores_p) / (c ** 0.5)
  if attention_factors is not None:
    scores = attention_factors[:, None].astype(f32) * scores
  if key_masks is not None:
    scores = jnp.where(key_masks[:, None, None, :], -jnp.inf, scores)
  attn = jax.nn.softmax(scores, axis=-1)
  ctx = jnp.einsum('bhnm,bhmc->bhnc', attn, v, precision=hp)
  hidden = ctx.transpose(0, 2, 1, 3).reshape(B, N, C)
  return hidden, attn


if __name__ == "__main__":
  B, N, M, C, H, P = 2, 16, 24, 32, 4, 12   # d_model=32, num_heads=4, rpe_size=12

  key = jax.random.PRNGKey(0)
  ks = jax.random.split(key, 14)

  def lin_init(kw, kb, d):
    W = jax.random.normal(kw, (d, d), jnp.float32) / jnp.sqrt(d)
    b = 0.01 * jax.random.normal(kb, (d,), jnp.float32)
    return W, b

  Wq, bq = lin_init(ks[0], ks[1], C)
  Wk, bk = lin_init(ks[2], ks[3], C)
  Wv, bv = lin_init(ks[4], ks[5], C)
  emb_table = 0.1 * jax.random.normal(ks[6], (P, C), jnp.float32)

  params = dict(num_heads=H, Wq=Wq, bq=bq, Wk=Wk, bk=bk, Wv=Wv, bv=bv,
                emb_table=emb_table)

  input_q = jax.random.normal(ks[7], (B, N, C), jnp.float32)
  input_k = jax.random.normal(ks[8], (B, M, C), jnp.float32)
  input_v = jax.random.normal(ks[9], (B, M, C), jnp.float32)
  emb_idx = jax.random.randint(ks[10], (B, N, M), 0, P, dtype=jnp.int32)
  key_masks = jax.random.bernoulli(ks[11], 0.25, (B, M))
  key_masks = key_masks.at[:, 0].set(False)     # keep >=1 valid key per row (no NaN)
  att_fac = 0.5 + jax.random.uniform(ks[12], (B, N, M), jnp.float32)

  # Case 1: no mask / factors, attention probabilities returned.
  out1, attn1 = lrpe_multi_head_attention(params, input_q, input_k, input_v, emb_idx)
  out1 = jax.block_until_ready(out1)
  attn1 = jax.block_until_ready(attn1)
  ref1, refattn1 = _reference(params, input_q, input_k, input_v, emb_idx)
  assert out1.shape == (B, N, C) and attn1.shape == (B, H, N, M)
  assert jnp.allclose(out1, ref1, atol=2e-2, rtol=2e-2)
  assert jnp.allclose(attn1, refattn1, atol=2e-2, rtol=2e-2)

  # Case 2: key masks + attention factors, attention output skipped (perf path).
  out2, _ = lrpe_multi_head_attention(params, input_q, input_k, input_v, emb_idx,
                                      key_masks=key_masks,
                                      attention_factors=att_fac,
                                      return_attention=False)
  out2 = jax.block_until_ready(out2)
  ref2, _ = _reference(params, input_q, input_k, input_v, emb_idx,
                       key_masks=key_masks, attention_factors=att_fac)
  assert out2.shape == (B, N, C)
  assert jnp.allclose(out2, ref2, atol=2e-2, rtol=2e-2)

  print("KERNEL_OK")
</pallas_src>

<mosaic_0001>
module attributes {stable_mosaic.version = 11 : i64} {
  func.func @kernel(%arg0: i32, %arg1: i32, %arg2: memref<1x16x32xbf16, #tpu.memory_space<vmem>>, %arg3: memref<1x24x32xbf16, #tpu.memory_space<vmem>>, %arg4: memref<1x24x32xbf16, #tpu.memory_space<vmem>>, %arg5: memref<32x32xbf16, #tpu.memory_space<vmem>>, %arg6: memref<1x32xf32, #tpu.memory_space<vmem>>, %arg7: memref<32x32xbf16, #tpu.memory_space<vmem>>, %arg8: memref<1x32xf32, #tpu.memory_space<vmem>>, %arg9: memref<32x32xbf16, #tpu.memory_space<vmem>>, %arg10: memref<1x32xf32, #tpu.memory_space<vmem>>, %arg11: memref<32x48xbf16, #tpu.memory_space<vmem>>, %arg12: memref<1x16x24xi32, #tpu.memory_space<vmem>>, %arg13: memref<1x16x32xf32, #tpu.memory_space<vmem>>, %arg14: memref<1x4x16x24xf32, #tpu.memory_space<vmem>>) attributes {dimension_semantics = [#tpu.dimension_semantics<parallel>, #tpu.dimension_semantics<parallel>], iteration_bounds = array<i64: 2, 1>, scalar_prefetch = 0 : i64, scratch_operands = 0 : i64, tpu.core_type = #tpu.core_type<tc>, window_params = [{transform_indices = @transform_0, window_bounds = array<i64: 1, 16, 32>}, {transform_indices = @transform_1, window_bounds = array<i64: 1, 24, 32>}, {transform_indices = @transform_2, window_bounds = array<i64: 1, 24, 32>}, {pipeline_mode = #tpu.pipeline_mode<synchronous>, transform_indices = @transform_3, window_bounds = array<i64: 32, 32>}, {pipeline_mode = #tpu.pipeline_mode<synchronous>, transform_indices = @transform_4, window_bounds = array<i64: 1, 32>}, {pipeline_mode = #tpu.pipeline_mode<synchronous>, transform_indices = @transform_5, window_bounds = array<i64: 32, 32>}, {pipeline_mode = #tpu.pipeline_mode<synchronous>, transform_indices = @transform_6, window_bounds = array<i64: 1, 32>}, {pipeline_mode = #tpu.pipeline_mode<synchronous>, transform_indices = @transform_7, window_bounds = array<i64: 32, 32>}, {pipeline_mode = #tpu.pipeline_mode<synchronous>, transform_indices = @transform_8, window_bounds = array<i64: 1, 32>}, {pipeline_mode = #tpu.pipeline_mode<synchronous>, transform_indices = @transform_9, window_bounds = array<i64: 32, 48>}, {transform_indices = @transform_10, window_bounds = array<i64: 1, 16, 24>}, {transform_indices = @transform_11, window_bounds = array<i64: 1, 16, 32>}, {transform_indices = @transform_12, window_bounds = array<i64: 1, 4, 16, 24>}]} {
    %c0 = arith.constant 0 : index
    %c0_0 = arith.constant 0 : index
    %c0_1 = arith.constant 0 : index
    %0 = vector.load %arg2[%c0, %c0_0, %c0_1] : memref<1x16x32xbf16, #tpu.memory_space<vmem>>, vector<1x16x32xbf16>
    %1 = vector.shape_cast %0 : vector<1x16x32xbf16> to vector<16x32xbf16>
    %c0_2 = arith.constant 0 : index
    %c0_3 = arith.constant 0 : index
    %c0_4 = arith.constant 0 : index
    %2 = vector.load %arg3[%c0_2, %c0_3, %c0_4] : memref<1x24x32xbf16, #tpu.memory_space<vmem>>, vector<1x24x32xbf16>
    %3 = vector.shape_cast %2 : vector<1x24x32xbf16> to vector<24x32xbf16>
    %c0_5 = arith.constant 0 : index
    %c0_6 = arith.constant 0 : index
    %c0_7 = arith.constant 0 : index
    %4 = vector.load %arg4[%c0_5, %c0_6, %c0_7] : memref<1x24x32xbf16, #tpu.memory_space<vmem>>, vector<1x24x32xbf16>
    %5 = vector.shape_cast %4 : vector<1x24x32xbf16> to vector<24x32xbf16>
    %c0_8 = arith.constant 0 : index
    %c0_9 = arith.constant 0 : index
    %6 = vector.load %arg5[%c0_8, %c0_9] : memref<32x32xbf16, #tpu.memory_space<vmem>>, vector<32x32xbf16>
    %cst = arith.constant dense<0.000000e+00> : vector<16x32xf32>
    %7 = tpu.matmul %1, %6, %cst {dimension_numbers = #tpu.dot_dimension_numbers<[1], [0], [0], [1], [0, 0, 1, 1], [], []>} : vector<16x32xbf16>, vector<32x32xbf16>, vector<16x32xf32> -> vector<16x32xf32>
    %c0_10 = arith.constant 0 : index
    %c0_11 = arith.constant 0 : index
    %8 = vector.load %arg6[%c0_10, %c0_11] : memref<1x32xf32, #tpu.memory_space<vmem>>, vector<1x32xf32>
    %9 = vector.broadcast %8 : vector<1x32xf32> to vector<16x32xf32>
    %10 = arith.addf %7, %9 : vector<16x32xf32>
    %c0_12 = arith.constant 0 : index
    %c0_13 = arith.constant 0 : index
    %11 = vector.load %arg7[%c0_12, %c0_13] : memref<32x32xbf16, #tpu.memory_space<vmem>>, vector<32x32xbf16>
    %cst_14 = arith.constant dense<0.000000e+00> : vector<24x32xf32>
    %12 = tpu.matmul %3, %11, %cst_14 {dimension_numbers = #tpu.dot_dimension_numbers<[1], [0], [0], [1], [0, 0, 1, 1], [], []>} : vector<24x32xbf16>, vector<32x32xbf16>, vector<24x32xf32> -> vector<24x32xf32>
    %c0_15 = arith.constant 0 : index
    %c0_16 = arith.constant 0 : index
    %13 = vector.load %arg8[%c0_15, %c0_16] : memref<1x32xf32, #tpu.memory_space<vmem>>, vector<1x32xf32>
    %14 = vector.broadcast %13 : vector<1x32xf32> to vector<24x32xf32>
    %15 = arith.addf %12, %14 : vector<24x32xf32>
    %c0_17 = arith.constant 0 : index
    %c0_18 = arith.constant 0 : index
    %16 = vector.load %arg9[%c0_17, %c0_18] : memref<32x32xbf16, #tpu.memory_space<vmem>>, vector<32x32xbf16>
    %cst_19 = arith.constant dense<0.000000e+00> : vector<24x32xf32>
    %17 = tpu.matmul %5, %16, %cst_19 {dimension_numbers = #tpu.dot_dimension_numbers<[1], [0], [0], [1], [0, 0, 1, 1], [], []>} : vector<24x32xbf16>, vector<32x32xbf16>, vector<24x32xf32> -> vector<24x32xf32>
    %c0_20 = arith.constant 0 : index
    %c0_21 = arith.constant 0 : index
    %18 = vector.load %arg10[%c0_20, %c0_21] : memref<1x32xf32, #tpu.memory_space<vmem>>, vector<1x32xf32>
    %19 = vector.broadcast %18 : vector<1x32xf32> to vector<24x32xf32>
    %20 = arith.addf %17, %19 : vector<24x32xf32>
    %21 = arith.truncf %10 : vector<16x32xf32> to vector<16x32xbf16>
    %22 = arith.truncf %15 : vector<24x32xf32> to vector<24x32xbf16>
    %23 = arith.truncf %20 : vector<24x32xf32> to vector<24x32xbf16>
    %c0_22 = arith.constant 0 : index
    %c0_23 = arith.constant 0 : index
    %24 = vector.load %arg11[%c0_22, %c0_23] : memref<32x48xbf16, #tpu.memory_space<vmem>>, vector<32x48xbf16>
    %cst_24 = arith.constant dense<0.000000e+00> : vector<16x48xf32>
    %25 = tpu.matmul %21, %24, %cst_24 {dimension_numbers = #tpu.dot_dimension_numbers<[1], [0], [0], [1], [0, 0, 1, 1], [], []>} : vector<16x32xbf16>, vector<32x48xbf16>, vector<16x48xf32> -> vector<16x48xf32>
    %26 = arith.truncf %25 : vector<16x48xf32> to vector<16x48xbf16>
    %c0_25 = arith.constant 0 : index
    %c0_26 = arith.constant 0 : index
    %c0_27 = arith.constant 0 : index
    %27 = vector.load %arg12[%c0_25, %c0_26, %c0_27] : memref<1x16x24xi32, #tpu.memory_space<vmem>>, vector<1x16x24xi32>
    %28 = vector.shape_cast %27 : vector<1x16x24xi32> to vector<16x24xi32>
    %29 = tpu.iota {dimensions = array<i32: 1>} : vector<16x12x24xi32>
    %30 = vector.shape_cast %28 : vector<16x24xi32> to vector<16x1x24xi32>
    %31 = vector.broadcast %30 : vector<16x1x24xi32> to vector<16x12x24xi32>
    %32 = arith.cmpi eq, %31, %29 : vector<16x12x24xi32>
    %33 = arith.extui %32 : vector<16x12x24xi1> to vector<16x12x24xi32>
    %34 = arith.sitofp %33 : vector<16x12x24xi32> to vector<16x12x24xf32>
    %35 = arith.truncf %34 : vector<16x12x24xf32> to vector<16x12x24xbf16>
    %36 = vector.extract_strided_slice %21 {offsets = [0, 0], sizes = [16, 8], strides = [1, 1]} : vector<16x32xbf16> to vector<16x8xbf16>
    %37 = vector.extract_strided_slice %22 {offsets = [0, 0], sizes = [24, 8], strides = [1, 1]} : vector<24x32xbf16> to vector<24x8xbf16>
    %38 = vector.extract_strided_slice %23 {offsets = [0, 0], sizes = [24, 8], strides = [1, 1]} : vector<24x32xbf16> to vector<24x8xbf16>
    %cst_28 = arith.constant dense<0.000000e+00> : vector<16x24xf32>
    %39 = tpu.matmul %36, %37, %cst_28 {dimension_numbers = #tpu.dot_dimension_numbers<[1], [1], [0], [0], [0, 0, 1, 0], [], []>} : vector<16x8xbf16>, vector<24x8xbf16>, vector<16x24xf32> -> vector<16x24xf32>
    %40 = vector.extract_strided_slice %26 {offsets = [0, 0], sizes = [16, 12], strides = [1, 1]} : vector<16x48xbf16> to vector<16x12xbf16>
    %41 = vector.shape_cast %40 : vector<16x12xbf16> to vector<16x12x1xbf16>
    %42 = vector.broadcast %41 : vector<16x12x1xbf16> to vector<16x12x24xbf16>
    %43 = arith.mulf %42, %35 : vector<16x12x24xbf16>
    %44 = arith.extf %43 : vector<16x12x24xbf16> to vector<16x12x24xf32>
    %cst_29 = arith.constant dense<0.000000e+00> : vector<16x24xf32>
    %45 = vector.multi_reduction <add>, %44, %cst_29 [1] : vector<16x12x24xf32> to vector<16x24xf32>
    %46 = arith.truncf %45 : vector<16x24xf32> to vector<16x24xbf16>
    %47 = arith.extf %46 : vector<16x24xbf16> to vector<16x24xf32>
    %48 = arith.addf %39, %47 : vector<16x24xf32>
    %cst_30 = arith.constant dense<0xFF800000> : vector<16xf32>
    %49 = vector.multi_reduction <maximumf>, %48, %cst_30 [1] : vector<16x24xf32> to vector<16xf32>
    %50 = vector.shape_cast %49 : vector<16xf32> to vector<16x1xf32>
    %51 = vector.broadcast %50 : vector<16x1xf32> to vector<16x24xf32>
    %52 = arith.subf %48, %51 : vector<16x24xf32>
    %53 = math.exp %52 : vector<16x24xf32>
    %cst_31 = arith.constant dense<0.000000e+00> : vector<16xf32>
    %54 = vector.multi_reduction <add>, %53, %cst_31 [1] : vector<16x24xf32> to vector<16xf32>
    %55 = vector.shape_cast %54 : vector<16xf32> to vector<16x1xf32>
    %56 = tpu.reciprocal %55 {approx = true} : vector<16x1xf32> -> vector<16x1xf32>
    %57 = vector.broadcast %56 : vector<16x1xf32> to vector<16x24xf32>
    %58 = arith.mulf %53, %57 : vector<16x24xf32>
    %c0_32 = arith.constant 0 : index
    %c0_33 = arith.constant 0 : index
    %c0_34 = arith.constant 0 : index
    %c0_35 = arith.constant 0 : index
    %59 = vector.load %arg14[%c0_32, %c0_33, %c0_34, %c0_35] : memref<1x4x16x24xf32, #tpu.memory_space<vmem>>, vector<1x1x16x24xf32>
    %60 = vector.shape_cast %59 : vector<1x1x16x24xf32> to vector<16x24xf32>
    %61 = vector.shape_cast %58 : vector<16x24xf32> to vector<1x1x16x24xf32>
    tpu.vector_store %arg14[%c0_32, %c0_33, %c0_34, %c0_35], %61 {strides = array<i32>} : memref<1x4x16x24xf32, #tpu.memory_space<vmem>>, vector<1x1x16x24xf32>,
    %62 = arith.truncf %58 : vector<16x24xf32> to vector<16x24xbf16>
    %cst_36 = arith.constant dense<0.000000e+00> : vector<16x8xf32>
    %63 = tpu.matmul %62, %38, %cst_36 {dimension_numbers = #tpu.dot_dimension_numbers<[1], [0], [0], [1], [0, 0, 1, 1], [], []>} : vector<16x24xbf16>, vector<24x8xbf16>, vector<16x8xf32> -> vector<16x8xf32>
    %64 = vector.extract_strided_slice %21 {offsets = [0, 8], sizes = [16, 8], strides = [1, 1]} : vector<16x32xbf16> to vector<16x8xbf16>
    %65 = vector.extract_strided_slice %22 {offsets = [0, 8], sizes = [24, 8], strides = [1, 1]} : vector<24x32xbf16> to vector<24x8xbf16>
    %66 = vector.extract_strided_slice %23 {offsets = [0, 8], sizes = [24, 8], strides = [1, 1]} : vector<24x32xbf16> to vector<24x8xbf16>
    %cst_37 = arith.constant dense<0.000000e+00> : vector<16x24xf32>
    %67 = tpu.matmul %64, %65, %cst_37 {dimension_numbers = #tpu.dot_dimension_numbers<[1], [1], [0], [0], [0, 0, 1, 0], [], []>} : vector<16x8xbf16>, vector<24x8xbf16>, vector<16x24xf32> -> vector<16x24xf32>
    %68 = vector.extract_strided_slice %26 {offsets = [0, 12], sizes = [16, 12], strides = [1, 1]} : vector<16x48xbf16> to vector<16x12xbf16>
    %69 = vector.shape_cast %68 : vector<16x12xbf16> to vector<16x12x1xbf16>
    %70 = vector.broadcast %69 : vector<16x12x1xbf16> to vector<16x12x24xbf16>
    %71 = arith.mulf %70, %35 : vector<16x12x24xbf16>
    %72 = arith.extf %71 : vector<16x12x24xbf16> to vector<16x12x24xf32>
    %cst_38 = arith.constant dense<0.000000e+00> : vector<16x24xf32>
    %73 = vector.multi_reduction <add>, %72, %cst_38 [1] : vector<16x12x24xf32> to vector<16x24xf32>
    %74 = arith.truncf %73 : vector<16x24xf32> to vector<16x24xbf16>
    %75 = arith.extf %74 : vector<16x24xbf16> to vector<16x24xf32>
    %76 = arith.addf %67, %75 : vector<16x24xf32>
    %cst_39 = arith.constant dense<0xFF800000> : vector<16xf32>
    %77 = vector.multi_reduction <maximumf>, %76, %cst_39 [1] : vector<16x24xf32> to vector<16xf32>
    %78 = vector.shape_cast %77 : vector<16xf32> to vector<16x1xf32>
    %79 = vector.broadcast %78 : vector<16x1xf32> to vector<16x24xf32>
    %80 = arith.subf %76, %79 : vector<16x24xf32>
    %81 = math.exp %80 : vector<16x24xf32>
    %cst_40 = arith.constant dense<0.000000e+00> : vector<16xf32>
    %82 = vector.multi_reduction <add>, %81, %cst_40 [1] : vector<16x24xf32> to vector<16xf32>
    %83 = vector.shape_cast %82 : vector<16xf32> to vector<16x1xf32>
    %84 = tpu.reciprocal %83 {approx = true} : vector<16x1xf32> -> vector<16x1xf32>
    %85 = vector.broadcast %84 : vector<16x1xf32> to vector<16x24xf32>
    %86 = arith.mulf %81, %85 : vector<16x24xf32>
    %c0_41 = arith.constant 0 : index
    %c1 = arith.constant 1 : index
    %c0_42 = arith.constant 0 : index
    %c0_43 = arith.constant 0 : index
    %87 = vector.load %arg14[%c0_41, %c1, %c0_42, %c0_43] : memref<1x4x16x24xf32, #tpu.memory_space<vmem>>, vector<1x1x16x24xf32>
    %88 = vector.shape_cast %87 : vector<1x1x16x24xf32> to vector<16x24xf32>
    %89 = vector.shape_cast %86 : vector<16x24xf32> to vector<1x1x16x24xf32>
    tpu.vector_store %arg14[%c0_41, %c1, %c0_42, %c0_43], %89 {strides = array<i32>} : memref<1x4x16x24xf32, #tpu.memory_space<vmem>>, vector<1x1x16x24xf32>,
    %90 = arith.truncf %86 : vector<16x24xf32> to vector<16x24xbf16>
    %cst_44 = arith.constant dense<0.000000e+00> : vector<16x8xf32>
    %91 = tpu.matmul %90, %66, %cst_44 {dimension_numbers = #tpu.dot_dimension_numbers<[1], [0], [0], [1], [0, 0, 1, 1], [], []>} : vector<16x24xbf16>, vector<24x8xbf16>, vector<16x8xf32> -> vector<16x8xf32>
    %92 = vector.extract_strided_slice %21 {offsets = [0, 16], sizes = [16, 8], strides = [1, 1]} : vector<16x32xbf16> to vector<16x8xbf16>
    %93 = vector.extract_strided_slice %22 {offsets = [0, 16], sizes = [24, 8], strides = [1, 1]} : vector<24x32xbf16> to vector<24x8xbf16>
    %94 = vector.extract_strided_slice %23 {offsets = [0, 16], sizes = [24, 8], strides = [1, 1]} : vector<24x32xbf16> to vector<24x8xbf16>
    %cst_45 = arith.constant dense<0.000000e+00> : vector<16x24xf32>
    %95 = tpu.matmul %92, %93, %cst_45 {dimension_numbers = #tpu.dot_dimension_numbers<[1], [1], [0], [0], [0, 0, 1, 0], [], []>} : vector<16x8xbf16>, vector<24x8xbf16>, vector<16x24xf32> -> vector<16x24xf32>
    %96 = vector.extract_strided_slice %26 {offsets = [0, 24], sizes = [16, 12], strides = [1, 1]} : vector<16x48xbf16> to vector<16x12xbf16>
    %97 = vector.shape_cast %96 : vector<16x12xbf16> to vector<16x12x1xbf16>
    %98 = vector.broadcast %97 : vector<16x12x1xbf16> to vector<16x12x24xbf16>
    %99 = arith.mulf %98, %35 : vector<16x12x24xbf16>
    %100 = arith.extf %99 : vector<16x12x24xbf16> to vector<16x12x24xf32>
    %cst_46 = arith.constant dense<0.000000e+00> : vector<16x24xf32>
    %101 = vector.multi_reduction <add>, %100, %cst_46 [1] : vector<16x12x24xf32> to vector<16x24xf32>
    %102 = arith.truncf %101 : vector<16x24xf32> to vector<16x24xbf16>
    %103 = arith.extf %102 : vector<16x24xbf16> to vector<16x24xf32>
    %104 = arith.addf %95, %103 : vector<16x24xf32>
    %cst_47 = arith.constant dense<0xFF800000> : vector<16xf32>
    %105 = vector.multi_reduction <maximumf>, %104, %cst_47 [1] : vector<16x24xf32> to vector<16xf32>
    %106 = vector.shape_cast %105 : vector<16xf32> to vector<16x1xf32>
    %107 = vector.broadcast %106 : vector<16x1xf32> to vector<16x24xf32>
    %108 = arith.subf %104, %107 : vector<16x24xf32>
    %109 = math.exp %108 : vector<16x24xf32>
    %cst_48 = arith.constant dense<0.000000e+00> : vector<16xf32>
    %110 = vector.multi_reduction <add>, %109, %cst_48 [1] : vector<16x24xf32> to vector<16xf32>
    %111 = vector.shape_cast %110 : vector<16xf32> to vector<16x1xf32>
    %112 = tpu.reciprocal %111 {approx = true} : vector<16x1xf32> -> vector<16x1xf32>
    %113 = vector.broadcast %112 : vector<16x1xf32> to vector<16x24xf32>
    %114 = arith.mulf %109, %113 : vector<16x24xf32>
    %c0_49 = arith.constant 0 : index
    %c2 = arith.constant 2 : index
    %c0_50 = arith.constant 0 : index
    %c0_51 = arith.constant 0 : index
    %115 = vector.load %arg14[%c0_49, %c2, %c0_50, %c0_51] : memref<1x4x16x24xf32, #tpu.memory_space<vmem>>, vector<1x1x16x24xf32>
    %116 = vector.shape_cast %115 : vector<1x1x16x24xf32> to vector<16x24xf32>
    %117 = vector.shape_cast %114 : vector<16x24xf32> to vector<1x1x16x24xf32>
    tpu.vector_store %arg14[%c0_49, %c2, %c0_50, %c0_51], %117 {strides = array<i32>} : memref<1x4x16x24xf32, #tpu.memory_space<vmem>>, vector<1x1x16x24xf32>,
    %118 = arith.truncf %114 : vector<16x24xf32> to vector<16x24xbf16>
    %cst_52 = arith.constant dense<0.000000e+00> : vector<16x8xf32>
    %119 = tpu.matmul %118, %94, %cst_52 {dimension_numbers = #tpu.dot_dimension_numbers<[1], [0], [0], [1], [0, 0, 1, 1], [], []>} : vector<16x24xbf16>, vector<24x8xbf16>, vector<16x8xf32> -> vector<16x8xf32>
    %120 = vector.extract_strided_slice %21 {offsets = [0, 24], sizes = [16, 8], strides = [1, 1]} : vector<16x32xbf16> to vector<16x8xbf16>
    %121 = vector.extract_strided_slice %22 {offsets = [0, 24], sizes = [24, 8], strides = [1, 1]} : vector<24x32xbf16> to vector<24x8xbf16>
    %122 = vector.extract_strided_slice %23 {offsets = [0, 24], sizes = [24, 8], strides = [1, 1]} : vector<24x32xbf16> to vector<24x8xbf16>
    %cst_53 = arith.constant dense<0.000000e+00> : vector<16x24xf32>
    %123 = tpu.matmul %120, %121, %cst_53 {dimension_numbers = #tpu.dot_dimension_numbers<[1], [1], [0], [0], [0, 0, 1, 0], [], []>} : vector<16x8xbf16>, vector<24x8xbf16>, vector<16x24xf32> -> vector<16x24xf32>
    %124 = vector.extract_strided_slice %26 {offsets = [0, 36], sizes = [16, 12], strides = [1, 1]} : vector<16x48xbf16> to vector<16x12xbf16>
    %125 = vector.shape_cast %124 : vector<16x12xbf16> to vector<16x12x1xbf16>
    %126 = vector.broadcast %125 : vector<16x12x1xbf16> to vector<16x12x24xbf16>
    %127 = arith.mulf %126, %35 : vector<16x12x24xbf16>
    %128 = arith.extf %127 : vector<16x12x24xbf16> to vector<16x12x24xf32>
    %cst_54 = arith.constant dense<0.000000e+00> : vector<16x24xf32>
    %129 = vector.multi_reduction <add>, %128, %cst_54 [1] : vector<16x12x24xf32> to vector<16x24xf32>
    %130 = arith.truncf %129 : vector<16x24xf32> to vector<16x24xbf16>
    %131 = arith.extf %130 : vector<16x24xbf16> to vector<16x24xf32>
    %132 = arith.addf %123, %131 : vector<16x24xf32>
    %cst_55 = arith.constant dense<0xFF800000> : vector<16xf32>
    %133 = vector.multi_reduction <maximumf>, %132, %cst_55 [1] : vector<16x24xf32> to vector<16xf32>
    %134 = vector.shape_cast %133 : vector<16xf32> to vector<16x1xf32>
    %135 = vector.broadcast %134 : vector<16x1xf32> to vector<16x24xf32>
    %136 = arith.subf %132, %135 : vector<16x24xf32>
    %137 = math.exp %136 : vector<16x24xf32>
    %cst_56 = arith.constant dense<0.000000e+00> : vector<16xf32>
    %138 = vector.multi_reduction <add>, %137, %cst_56 [1] : vector<16x24xf32> to vector<16xf32>
    %139 = vector.shape_cast %138 : vector<16xf32> to vector<16x1xf32>
    %140 = tpu.reciprocal %139 {approx = true} : vector<16x1xf32> -> vector<16x1xf32>
    %141 = vector.broadcast %140 : vector<16x1xf32> to vector<16x24xf32>
    %142 = arith.mulf %137, %141 : vector<16x24xf32>
    %c0_57 = arith.constant 0 : index
    %c3 = arith.constant 3 : index
    %c0_58 = arith.constant 0 : index
    %c0_59 = arith.constant 0 : index
    %143 = vector.load %arg14[%c0_57, %c3, %c0_58, %c0_59] : memref<1x4x16x24xf32, #tpu.memory_space<vmem>>, vector<1x1x16x24xf32>
    %144 = vector.shape_cast %143 : vector<1x1x16x24xf32> to vector<16x24xf32>
    %145 = vector.shape_cast %142 : vector<16x24xf32> to vector<1x1x16x24xf32>
    tpu.vector_store %arg14[%c0_57, %c3, %c0_58, %c0_59], %145 {strides = array<i32>} : memref<1x4x16x24xf32, #tpu.memory_space<vmem>>, vector<1x1x16x24xf32>,
    %146 = arith.truncf %142 : vector<16x24xf32> to vector<16x24xbf16>
    %cst_60 = arith.constant dense<0.000000e+00> : vector<16x8xf32>
    %147 = tpu.matmul %146, %122, %cst_60 {dimension_numbers = #tpu.dot_dimension_numbers<[1], [0], [0], [1], [0, 0, 1, 1], [], []>} : vector<16x24xbf16>, vector<24x8xbf16>, vector<16x8xf32> -> vector<16x8xf32>
    %148 = tpu.concatenate %63, %91, %119, %147 in 1 : vector<16x8xf32>, vector<16x8xf32>, vector<16x8xf32>, vector<16x8xf32> -> vector<16x32xf32>
    %c0_61 = arith.constant 0 : index
    %c0_62 = arith.constant 0 : index
    %c0_63 = arith.constant 0 : index
    %149 = vector.load %arg13[%c0_61, %c0_62, %c0_63] : memref<1x16x32xf32, #tpu.memory_space<vmem>>, vector<1x16x32xf32>
    %150 = vector.shape_cast %149 : vector<1x16x32xf32> to vector<16x32xf32>
    %151 = vector.shape_cast %148 : vector<16x32xf32> to vector<1x16x32xf32>
    tpu.vector_store %arg13[%c0_61, %c0_62, %c0_63], %151 {strides = array<i32>} : memref<1x16x32xf32, #tpu.memory_space<vmem>>, vector<1x16x32xf32>,
    return
  }
  func.func @transform_0(%arg0: i32, %arg1: i32) -> (i32, i32, i32) {
    %c0_i32 = arith.constant 0 : i32
    %c0_i32_0 = arith.constant 0 : i32
    return %arg0, %arg1, %c0_i32 : i32, i32, i32
  }
  func.func @transform_1(%arg0: i32, %arg1: i32) -> (i32, i32, i32) {
    %c0_i32 = arith.constant 0 : i32
    %c0_i32_0 = arith.constant 0 : i32
    %c0_i32_1 = arith.constant 0 : i32
    return %arg0, %c0_i32, %c0_i32_0 : i32, i32, i32
  }
  func.func @transform_2(%arg0: i32, %arg1: i32) -> (i32, i32, i32) {
    %c0_i32 = arith.constant 0 : i32
    %c0_i32_0 = arith.constant 0 : i32
    %c0_i32_1 = arith.constant 0 : i32
    return %arg0, %c0_i32, %c0_i32_0 : i32, i32, i32
  }
  func.func @transform_3(%arg0: i32, %arg1: i32) -> (i32, i32) {
    %c0_i32 = arith.constant 0 : i32
    %c0_i32_0 = arith.constant 0 : i32
    %c0_i32_1 = arith.constant 0 : i32
    return %c0_i32, %c0_i32_0 : i32, i32
  }
  func.func @transform_4(%arg0: i32, %arg1: i32) -> (i32, i32) {
    %c0_i32 = arith.constant 0 : i32
    %c0_i32_0 = arith.constant 0 : i32
    %c0_i32_1 = arith.constant 0 : i32
    return %c0_i32, %c0_i32_0 : i32, i32
  }
  func.func @transform_5(%arg0: i32, %arg1: i32) -> (i32, i32) {
    %c0_i32 = arith.constant 0 : i32
    %c0_i32_0 = arith.constant 0 : i32
    %c0_i32_1 = arith.constant 0 : i32
    return %c0_i32, %c0_i32_0 : i32, i32
  }
  func.func @transform_6(%arg0: i32, %arg1: i32) -> (i32, i32) {
    %c0_i32 = arith.constant 0 : i32
    %c0_i32_0 = arith.constant 0 : i32
    %c0_i32_1 = arith.constant 0 : i32
    return %c0_i32, %c0_i32_0 : i32, i32
  }
  func.func @transform_7(%arg0: i32, %arg1: i32) -> (i32, i32) {
    %c0_i32 = arith.constant 0 : i32
    %c0_i32_0 = arith.constant 0 : i32
    %c0_i32_1 = arith.constant 0 : i32
    return %c0_i32, %c0_i32_0 : i32, i32
  }
  func.func @transform_8(%arg0: i32, %arg1: i32) -> (i32, i32) {
    %c0_i32 = arith.constant 0 : i32
    %c0_i32_0 = arith.constant 0 : i32
    %c0_i32_1 = arith.constant 0 : i32
    return %c0_i32, %c0_i32_0 : i32, i32
  }
  func.func @transform_9(%arg0: i32, %arg1: i32) -> (i32, i32) {
    %c0_i32 = arith.constant 0 : i32
    %c0_i32_0 = arith.constant 0 : i32
    %c0_i32_1 = arith.constant 0 : i32
    return %c0_i32, %c0_i32_0 : i32, i32
  }
  func.func @transform_10(%arg0: i32, %arg1: i32) -> (i32, i32, i32) {
    %c0_i32 = arith.constant 0 : i32
    %c0_i32_0 = arith.constant 0 : i32
    return %arg0, %arg1, %c0_i32 : i32, i32, i32
  }
  func.func @transform_11(%arg0: i32, %arg1: i32) -> (i32, i32, i32) {
    %c0_i32 = arith.constant 0 : i32
    %c0_i32_0 = arith.constant 0 : i32
    return %arg0, %arg1, %c0_i32 : i32, i32, i32
  }
  func.func @transform_12(%arg0: i32, %arg1: i32) -> (i32, i32, i32, i32) {
    %c0_i32 = arith.constant 0 : i32
    %c0_i32_0 = arith.constant 0 : i32
    %c0_i32_1 = arith.constant 0 : i32
    return %arg0, %c0_i32, %arg1, %c0_i32_0 : i32, i32, i32, i32
  }
}

</mosaic_0001>

<bundles_post_ra>
// kernel: tpu_custom_call.1
= control target key start
LH: loop header
LB: loop body
LE: loop exit
PB: predicated region body
PF: predicated region fallthrough
CT: control target
= control target key end

     0   :  { %s5594_s0 = inlined_call_operand.hbm [shape: bf16[2,16,32], index: 0, kind: input, shape index: {}]   ;;  %s5595_s1 = inlined_call_operand.hbm [shape: bf16[2,24,32], index: 1, kind: input, shape index: {}]   ;;  %s5596_s2 = inlined_call_operand.hbm [shape: bf16[2,24,32], index: 2, kind: input, shape index: {}]   ;;  %s5597_s3 = inlined_call_operand.hbm [shape: bf16[32,32], index: 3, kind: input, shape index: {}]   ;;  %s5598_s4 = inlined_call_operand.hbm [shape: f32[1,32], index: 4, kind: input, shape index: {}]   ;;  %s5599_s5 = inlined_call_operand.hbm [shape: bf16[32,32], index: 5, kind: input, shape index: {}]   ;;  %s5600_s6 = inlined_call_operand.hbm [shape: f32[1,32], index: 6, kind: input, shape index: {}]   ;;  %s5601_s7 = inlined_call_operand.hbm [shape: bf16[32,32], index: 7, kind: input, shape index: {}]   ;;  %s5602_s8 = inlined_call_operand.hbm [shape: f32[1,32], index: 8, kind: input, shape index: {}]   ;;  %s5603_s9 = inlined_call_operand.vmem [shape: bf16[32,48], index: 9, kind: input, shape index: {}]   ;;  %s5604_s10 = inlined_call_operand.hbm [shape: s32[2,16,24], index: 10, kind: input, shape index: {}]   ;;  %s5605_s11 = inlined_call_operand.hbm [shape: f32[2,16,32], index: 11, kind: output, shape index: {0}]   ;;  %s5606_s12 = inlined_call_operand.hbm [shape: f32[2,4,16,24], index: 12, kind: output, shape index: {1}]  }
   0x1   :  { %5672 = sst [smem:[#allocation62_spill]] %s5595_s1 }
   0x2   :  { %5673 = sst [smem:[#allocation63_spill]] %s5597_s3 }
   0x3   :  { %5674 = sst [smem:[#allocation64_spill]] %s5598_s4 }
   0x4   :  { %5675 = sst [smem:[#allocation65_spill]] %s5599_s5 }
   0x5   :  { %5676 = sst [smem:[#allocation66_spill]] %s5601_s7 }
   0x6   :  { %5677 = sst [smem:[#allocation67_spill]] %s5605_s11 }
   0x7   :  { %5678 = sst [smem:[#allocation68_spill]] %s5606_s12 }
   0x8   :  { %18 = vsyncpa [#allocation3], 0 }
   0x9   :  { %20 = vsyncpa [#allocation3 + $0x1], 0 }
   0xa   :  { %21 = vsyncpa [#allocation6], 0 }
   0xb   :  { %23 = vsyncpa [#allocation6 + $0x1], 0 }
   0xc   :  { %24 = vsyncpa [#allocation9], 0 }
   0xd   :  { %25 = vsyncpa [#allocation12], 0 }
   0xe   :  { %26 = vsyncpa [#allocation15], 0 }
   0xf   :  { %27 = vsyncpa [#allocation18], 0 }
  0x10   :  { %29 = vsyncpa [#allocation18 + $0x1], 0 }
  0x11   :  { %30 = vsyncpa [#allocation4], 0 }
  0x12   :  { %32 = vsyncpa [#allocation4 + $0x1], 0 }
  0x13   :  { %33 = vsyncpa [#allocation21], 0 }
  0x14   :  { %35 = vsyncpa [#allocation21 + $0x1], 0  ;;  %s4402_s21 = smov 0   ;;  %s4404_s22 = smov 0  }
  0x15   :  { %s4406_s23 = smov 0   ;;  %s4408_s24 = smov 0  }
  0x16   :  { %s4410_s25 = smov 0   ;;  %s4412_s26 = smov 0  }
  0x17 LB: > { %5679 = sst [smem:[#allocation30_spill]] %s4289_s21  ;;  %s4433_s27 = sadd.s32 4294967295, %s4309_s26   ;;  %s4309_s26 = sphi %s4412_s26, %s41_s26   ;;  %s4305_s25 = sphi %s4410_s25, %s5815_s25   ;;  %s4301_s24 = sphi %s4408_s24, %s5814_s24   ;;  %s4297_s23 = sphi %s4406_s23, %s5810_s23   ;;  %s4293_s22 = sphi %s4404_s22, %s5813_s22   ;;  %s4289_s21 = sphi %s4402_s21, %s5812_s21  }
  0x18   : > { %5680 = sst [smem:[#allocation31_spill]] %s4297_s23  ;;  %p3461_p0 = scmp.ge.s32.totalorder %s4309_s26, 1 }
  0x19   : > { %5681 = sst [smem:[#allocation32_spill]] %s4301_s24  ;;  %p5623_p1 = scmp.eq.s32.totalorder %s4433_s27, 0 }
  0x1a   : > { %5682 = sst [smem:[#allocation33_spill]] %s4309_s26  ;;  %p369_p2 = scmp.lt.s32.totalorder %s4309_s26, 3 }
  0x1b   : > { %s4311_s29 = smov [#allocation8]   ;;  %s4312_s14 = smov [#allocation11]  }
  0x1c   : > { %p4438_p3 = pnand %p3461_p0, %p369_p2  ;;  %s381_s30 = sshll.u32 %s4311_s29, 4  ;;  %s382_s30 = int_to_ptr.vmem [resolvable:$true] %s381_s30 }
  0x1d   : > { %s405_s15 = sshll.u32 %s4312_s14, 4  ;;  %s4313_s16 = smov [#allocation14]   ;;  %s406_s15 = int_to_ptr.vmem [resolvable:$true] %s405_s15 }
  0x1e   : > { %s5683_s28 = scalar_select %p4438_p3, 1, 0 }
  0x1f   : > { %p3743_p4 = pneg %p4438_p3  ;;  %s429_s17 = sshll.u32 %s4313_s16, 4  ;;  %s430_s17 = int_to_ptr.vmem [resolvable:$true] %s429_s17 }
  0x20   : > { %s3922_s19 = scalar_lea.vmem %s382_s30, 256  ;;  %p3930_p11 = scmp.lt.s32.totalorder %s382_s30, %s382_s30 }
  0x21   : > { %p4447_p6 = pnand %p3743_p4, %p5623_p1  ;;  %p3923_p8 = scmp.ne.s32.totalorder %s382_s30, %s3922_s19 }
  0x22   : > { %p3931_p12 = scmp.lt.s32.totalorder %s3922_s19, %s3922_s19 }
  0x23   : > { %p4453_p7 = pneg %p4447_p6 }
  0x24   : > { %p3932_p13 = por %p3931_p12, %p3930_p11 }
  0x25   : > { %p3925_p9 = pnand %p3923_p8, %p4453_p7 }
  0x27   : > { %p3926_p10 = pneg %p3925_p9 }
  0x29   : > { %p3933_p0 = pnand %p3932_p13, %p3926_p10 }
  0x2b   : > { %3936 = shalt.err (!%p3933_p0)
}
  0x2c   : > { %s5610_s20 = smov 64   ;;  %s5612_s29 = smov 4  }
  0x2d   : > { %s5686_s3 = sld [smem:[#allocation63_spill]]  ;;  %s3948_s11 = scalar_lea.vmem %s406_s15, 256 }
  0x2e   : > { %p3949_p2 = scmp.ne.s32.totalorder %s406_s15, %s3948_s11  ;;  %p3956_p9 = scmp.lt.s32.totalorder %s406_s15, %s406_s15 }
  0x2f   : > { %p3957_p10 = scmp.lt.s32.totalorder %s3948_s11, %s3948_s11 }
  0x30   : > { %p3951_p4 = pnand %p3949_p2, %p4453_p7 }
  0x31   : > { %p3958_p11 = por %p3957_p10, %p3956_p9 }
  0x32   : > { %p3952_p8 = pneg %p3951_p4 }
  0x33   : > { %3746 = dma.hbm_to_vmem [thread:$0]  (!%p4447_p6), %s5686_s3, 256, %s382_s30, [#allocation9], %s5610_s20, %s5610_s20, %s5612_s29  }
  0x34   : > { %p3959_p12 = pnand %p3958_p11, %p3952_p8 }
  0x36   : > { %3962 = shalt.err (!%p3959_p12)
}
  0x37   : > { %s5687_s5 = sld [smem:[#allocation65_spill]]  ;;  %s3974_s30 = scalar_lea.vmem %s430_s17, 256 }
  0x38   : > { %p3975_p13 = scmp.ne.s32.totalorder %s430_s17, %s3974_s30  ;;  %p3982_p4 = scmp.lt.s32.totalorder %s430_s17, %s430_s17 }
  0x39   : > { %p3983_p9 = scmp.lt.s32.totalorder %s3974_s30, %s3974_s30 }
  0x3a   : > { %p3977_p0 = pnand %p3975_p13, %p4453_p7 }
  0x3b   : > { %p3984_p8 = por %p3983_p9, %p3982_p4 }
  0x3c   : > { %p3978_p2 = pneg %p3977_p0 }
  0x3d   : > { %3752 = dma.hbm_to_vmem [thread:$0]  (!%p4447_p6), %s5687_s5, 256, %s406_s15, [#allocation12], %s5610_s20, %s5610_s20, %s5612_s29  }
  0x3e   : > { %p3985_p10 = pnand %p3984_p8, %p3978_p2 }
  0x40   : > { %3988 = shalt.err (!%p3985_p10)
}
  0x41   : > { %s5688_s7 = sld [smem:[#allocation66_spill]]  ;;  %s3460_s15 = sadd.s32 4294967294, %s4309_s26  }
  0x42   : > { %s53_s14 = sadd.s32 1, %s4305_s25  ;;  %s62_s16 = sadd.s32 1, %s4297_s23 }
  0x43   : > { %p55_p11 = scmp.ge.s32.totalorder %s53_s14, 2  ;;  %p69_p12 = scmp.ne.s32.totalorder %s4297_s23, %s4293_s22 }
  0x44   : > { %p70_p13 = scmp.eq.s32.totalorder %s4309_s26, 0  ;;  %p75_p0 = scmp.ne.s32.totalorder %s4293_s22, %s4289_s21 }
  0x45   : > { %s5817_s14 = smov (%p55_p11, %s53_s14), 0  ;;  %p328_p9 = scmp.eq.s32.totalorder %s4433_s27, 1 }
  0x46   : > { %5689 = sst [smem:[#allocation34_spill]] %s5817_s14  ;;  %p71_p2 = por %p70_p13, %p69_p12 }
  0x47   : > { %3758 = dma.hbm_to_vmem [thread:$0]  (!%p4447_p6), %s5688_s7, 256, %s430_s17, [#allocation15], %s5610_s20, %s5610_s20, %s5612_s29  }
  0x48   : > { %p4499_p4 = por %p5623_p1, %p75_p0  ;;  %s57_s19 = ssub.s32 %s4305_s25, %s5817_s14 }
  0x49   : > { %p60_p8 = scmp.eq.s32.totalorder %s57_s19, 0  ;;  %p334_p10 = scmp.eq.s32.totalorder %s3460_s15, 1 }
  0x4a   : > { %s5690_s17 = scalar_select %p4499_p4, 1, 0 }
  0x4b   : > { %p4506_p5 = por %p328_p9, %p69_p12  ;;  %p3788_p3 = scmp.lt.s32.totalorder %s4309_s26, 2 }
  0x4c   : > { %s4512_s11 = scalar_select %p60_p8, %s4297_s23, %s62_s16  }
  0x4d   : > { %s5691_s30 = scalar_select %p4506_p5, 1, 0 }
  0x4e   : > { %5693 = sst [smem:[#allocation36_spill]] %s4512_s11  ;;  %p4514_p11 = por %p334_p10, %p75_p0 }
  0x4f   : > { %5692 = sst [smem:[#allocation35_spill]] %s5691_s30  ;;  %s4519_s20 = sand.u32 1, %s4297_s23  }
  0x50   : > { %s5694_s12 = scalar_select %p4514_p11, 1, 0 }
  0x51   : > { %p4521_p13 = pnand %p3788_p3, %p71_p2  ;;  %s480_s15 = sand.u32 1, %s4309_s26  }
  0x52   : > { %5695 = sst [smem:[#allocation37_spill]] %s5694_s12  ;;  %s5626_s19 = smul.u32 12, %s4519_s20 }
  0x53   : > { %s3703_s3 = smul.u32 192, %s4305_s25  ;;  %s5697_s1 = sld [smem:[#allocation62_spill]] }
  0x54   : > { %s484_s14 = scalar_lea.vmem [#allocation5], %s5626_s19  ;;  %s4316_s23 = smov [#allocation10]  }
  0x55   : > { %s491_s11 = sshll.u32 %s484_s14, 4  ;;  %s395_s12 = sshll.u32 %s4316_s23, 4  ;;  %s492_s11 = int_to_ptr.vmem [resolvable:$true] %s491_s11  ;;  %s396_s12 = int_to_ptr.vmem [resolvable:$true] %s395_s12 }
  0x56   : > { %s4535_s21 = scalar_lea.sflag [#allocation6], %s480_s15  ;;  %p5624_p3 = pneg %p4521_p13 }
  0x57   : > { %s4002_s30 = scalar_lea.vmem %s492_s11, 192  ;;  %s4317_s26 = smov [#allocation5]  }
  0x58   : > { %p4003_p12 = scmp.ne.s32.totalorder %s492_s11, %s4002_s30  ;;  %s4007_s24 = sshll.u32 %s4317_s26, 4  ;;  %s4008_s24 = int_to_ptr.vmem [resolvable:$false] %s4007_s24 }
  0x59   : > { %s490_s7 = scalar_lea.hbm %s5697_s1, %s3703_s3  ;;  %s4009_s5 = scalar_lea.vmem %s4008_s24, 384 }
  0x5a   : > { %p4005_p0 = pnand %p4003_p12, %p5624_p3  ;;  %p4010_p9 = scmp.lt.s32.totalorder %s492_s11, %s4008_s24 }
  0x5b   : > { %p4011_p8 = scmp.lt.s32.totalorder %s4009_s5, %s4002_s30 }
  0x5c   : > { %p4006_p2 = pneg %p4005_p0 }
  0x5d   : > { %p4012_p10 = por %p4011_p8, %p4010_p9 }
  0x5f   : > { %p4013_p1 = pnand %p4012_p10, %p4006_p2 }
  0x61   : > { %4016 = shalt.err (!%p4013_p1)
}
  0x62   : > { %s5698_s23 = smov 4   ;;  %s5699_s14 = smov 64  }
  0x63   : > { %3768 = dma.hbm_to_vmem [thread:$0]  (!%p4521_p13), %s490_s7, 192, %s492_s11, %s4535_s21, %s5699_s14, %s5699_s14, %s5698_s23  }
  0x64   : > { %s4028_s15 = scalar_lea.vmem %s396_s12, 16  ;;  %s4035_s26 = scalar_lea.vmem %s396_s12, 32 }
  0x65   : > { %p4029_p12 = scmp.ne.s32.totalorder %s396_s12, %s4028_s15  ;;  %p4036_p11 = scmp.lt.s32.totalorder %s396_s12, %s396_s12 }
  0x66   : > { %p4037_p5 = scmp.lt.s32.totalorder %s4035_s26, %s4028_s15 }
  0x67   : > { %p4031_p0 = pnand %p4029_p12, %p4453_p7 }
  0x68   : > { %p4038_p9 = por %p4037_p5, %p4036_p11 }
  0x69   : > { %p4032_p3 = pneg %p4031_p0 }
  0x6b   : > { %p4039_p2 = pnand %p4038_p9, %p4032_p3 }
  0x6d   : > { %4042 = shalt.err (!%p4039_p2)
}
  0x6e   : > { %s5700_s4 = sld [smem:[#allocation64_spill]]  ;;  %s4318_s7 = smov [#allocation13]  }
  0x6f   : > { %s419_s11 = sshll.u32 %s4318_s7, 4  ;;  %s4319_s16 = smov [#allocation16]   ;;  %s420_s11 = int_to_ptr.vmem [resolvable:$true] %s419_s11 }
  0x70   : > { %s443_s5 = sshll.u32 %s4319_s16, 4  ;;  %s4054_s19 = scalar_lea.vmem %s420_s11, 16  ;;  %s444_s5 = int_to_ptr.vmem [resolvable:$true] %s443_s5 }
  0x71   : > { %p4055_p1 = scmp.ne.s32.totalorder %s420_s11, %s4054_s19  ;;  %s4061_s15 = scalar_lea.vmem %s420_s11, 32 }
  0x72   : > { %p4062_p5 = scmp.lt.s32.totalorder %s420_s11, %s420_s11  ;;  %p4063_p11 = scmp.lt.s32.totalorder %s4061_s15, %s4054_s19 }
  0x73   : > { %p4057_p8 = pnand %p4055_p1, %p4453_p7 }
  0x74   : > { %3749 = dma.hbm_to_vmem [thread:$0]  (!%p4447_p6), %s5700_s4, 16, %s396_s12, [#allocation9]  }
  0x75   : > { %p4058_p10 = pneg %p4057_p8  ;;  %p4064_p3 = por %p4063_p11, %p4062_p5 }
  0x77   : > { %p4065_p12 = pnand %p4064_p3, %p4058_p10 }
  0x79   : > { %4068 = shalt.err (!%p4065_p12)
}
  0x7a   : > { %3755 = dma.hbm_to_vmem [thread:$0]  (!%p4447_p6), %s5600_s6, 16, %s420_s11, [#allocation12]  }
  0x7b   : > { %s4080_s24 = scalar_lea.vmem %s444_s5, 16  ;;  %s4087_s30 = scalar_lea.vmem %s444_s5, 32 }
  0x7c   : > { %p4081_p0 = scmp.ne.s32.totalorder %s444_s5, %s4080_s24  ;;  %p4088_p1 = scmp.lt.s32.totalorder %s444_s5, %s444_s5 }
  0x7d   : > { %p4089_p8 = scmp.lt.s32.totalorder %s4087_s30, %s4080_s24 }
  0x7e   : > { %p4083_p9 = pnand %p4081_p0, %p4453_p7 }
  0x7f   : > { %p4090_p4 = por %p4089_p8, %p4088_p1 }
  0x80   : > { %p4084_p2 = pneg %p4083_p9 }
  0x82   : > { %p4091_p5 = pnand %p4090_p4, %p4084_p2 }
  0x84   : > { %4094 = shalt.err (!%p4091_p5)
}
  0x85   : > { %3761 = dma.hbm_to_vmem [thread:$0]  (!%p4447_p6), %s5602_s8, 16, %s444_s5, [#allocation15]  }
  0x86   : > { %s3469_s18 = sshll.u32 %s4519_s20, 3  ;;  %s3564_s11 = sshll.u32 %s4305_s25, 7 }
  0x87   : > { %s469_s26 = scalar_lea.hbm %s5594_s0, %s3564_s11  ;;  %s461_s12 = scalar_lea.vmem [#allocation2], %s3469_s18 }
  0x88   : > { %s470_s24 = sshll.u32 %s461_s12, 4  ;;  %s4579_s19 = scalar_lea.hbm %s5596_s2, %s3703_s3  ;;  %s471_s24 = int_to_ptr.vmem [resolvable:$true] %s470_s24 }
  0x89   : > { %s458_s7 = scalar_lea.sflag [#allocation3], %s4519_s20  ;;  %s4108_s1 = scalar_lea.vmem %s471_s24, 128 }
  0x8a   : > { %p4109_p7 = scmp.ne.s32.totalorder %s471_s24, %s4108_s1  ;;  %p5701_p6 = pneg %p4521_p13 }
  0x8b   : > { %s4320_s5 = smov [#allocation2]  }
  0x8c   : > { %p4111_p4 = pnand %p4109_p7, %p5701_p6  ;;  %s4113_s4 = sshll.u32 %s4320_s5, 4  ;;  %s4114_s4 = int_to_ptr.vmem [resolvable:$false] %s4113_s4 }
  0x8d   : > { %s4115_s11 = scalar_lea.vmem %s4114_s4, 256  ;;  %p4116_p11 = scmp.lt.s32.totalorder %s471_s24, %s4114_s4 }
  0x8e   : > { %p4112_p10 = pneg %p4111_p4  ;;  %p4117_p3 = scmp.lt.s32.totalorder %s4115_s11, %s4108_s1 }
  0x90   : > { %p4118_p12 = por %p4117_p3, %p4116_p11 }
  0x92   : > { %p4119_p0 = pnand %p4118_p12, %p4112_p10 }
  0x94   : > { %4122 = shalt.err (!%p4119_p0)
}
  0x95   : > { %3765 = dma.hbm_to_vmem [thread:$0]  (!%p4521_p13), %s469_s26, 128, %s471_s24, %s458_s7, %s5699_s14, %s5699_s14, %s5698_s23  }
  0x96   : > { %s5702_s3 = smul.u32 12, %s4519_s20  ;;  %s3474_s15 = sshll.u32 %s4519_s20, 4 }
  0x97   : > { %p5703_p2 = pmov %p5701_p6  ;;  %s4321_s1 = smov [#allocation7]  }
  0x98   : > { %s505_s18 = scalar_lea.vmem [#allocation7], %s5702_s3  ;;  %s4141_s4 = sshll.u32 %s4321_s1, 4  ;;  %s4142_s4 = int_to_ptr.vmem [resolvable:$false] %s4141_s4 }
  0x99   : > { %s512_s16 = sshll.u32 %s505_s18, 4  ;;  %s4143_s13 = scalar_lea.vmem %s4142_s4, 384  ;;  %s513_s16 = int_to_ptr.vmem [resolvable:$true] %s512_s16 }
  0x9a   : > { %s4136_s12 = scalar_lea.vmem %s513_s16, 192  ;;  %p4144_p5 = scmp.lt.s32.totalorder %s513_s16, %s4142_s4 }
  0x9b   : > { %p4137_p9 = scmp.ne.s32.totalorder %s513_s16, %s4136_s12  ;;  %p4145_p7 = scmp.lt.s32.totalorder %s4143_s13, %s4136_s12 }
  0x9d   : > { %p4139_p1 = pnand %p4137_p9, %p5703_p2  ;;  %p4146_p6 = por %p4145_p7, %p4144_p5 }
  0x9f   : > { %p4140_p8 = pneg %p4139_p1 }
  0xa1   : > { %p4147_p4 = pnand %p4146_p6, %p4140_p8 }
  0xa3   : > { %4150 = shalt.err (!%p4147_p4)
}
  0xa4   : > { %3771 = dma.hbm_to_vmem [thread:$0]  (!%p4521_p13), %s4579_s19, 192, %s513_s16, %s4535_s21, %s5699_s14, %s5699_s14, %s5698_s23  }
  0xa5   : > { %s3565_s26 = sshll.u32 %s4305_s25, 8  ;;  %s526_s5 = scalar_lea.vmem [#allocation17], %s3474_s15 }
  0xa6   : > { %s534_s7 = scalar_lea.hbm %s5604_s10, %s3565_s26  ;;  %s535_s11 = sshll.u32 %s526_s5, 4  ;;  %s536_s11 = int_to_ptr.vmem [resolvable:$true] %s535_s11 }
  0xa7   : > { %s523_s3 = scalar_lea.sflag [#allocation18], %s4519_s20  ;;  %s4164_s18 = scalar_lea.vmem %s536_s11, 256 }
  0xa8   : > { %p4165_p10 = scmp.ne.s32.totalorder %s536_s11, %s4164_s18  ;;  %p5704_p11 = pmov %p5703_p2 }
  0xa9   : > { %s4322_s12 = smov [#allocation17]  }
  0xaa   : > { %p4167_p3 = pnand %p4165_p10, %p5704_p11  ;;  %s4169_s1 = sshll.u32 %s4322_s12, 4  ;;  %s4170_s1 = int_to_ptr.vmem [resolvable:$false] %s4169_s1 }
  0xab   : > { %s4171_s4 = scalar_lea.vmem %s4170_s1, 512  ;;  %p4172_p0 = scmp.lt.s32.totalorder %s536_s11, %s4170_s1 }
  0xac   : > { %p4168_p12 = pneg %p4167_p3  ;;  %p4173_p9 = scmp.lt.s32.totalorder %s4171_s4, %s4164_s18 }
  0xae   : > { %p4174_p2 = por %p4173_p9, %p4172_p0 }
  0xb0   : > { %p4175_p1 = pnand %p4174_p2, %p4168_p12 }
  0xb2   : > { %4178 = shalt.err (!%p4175_p1)
}
  0xb3   : > { %s4323_s21 = smov 128   ;;  %s4324_s23 = smov 8  }
  0xb4   : > { %3774 = dma.hbm_to_vmem [thread:$0]  (!%p4521_p13), %s534_s7, 256, %s536_s11, %s523_s3, %s4323_s21, %s4323_s21, %s4324_s23  }
  0xb5   : > { %p5705_p8 = scmp.ne.s32.totalorder %s5683_s28, 0 }
  0xb7   : > { %547 = sbr.rel (%p5705_p8) target bundleno = 3042 (0xbe2), region = 64 }
  0xbc   : > { %s4616_s20 = sand.u32 1, %s4293_s22   ;;  %p5706_p5 = scmp.ne.s32.totalorder %s5690_s17, 0 }
  0xbd   : > { %s3478_s14 = sshll.u32 %s4616_s20, 3  ;;  %s550_s19 = scalar_lea.sflag [#allocation3], %s4616_s20 }
  0xbe   : > { %s4620_s16 = scalar_lea.vmem [#allocation2], %s3478_s14 }
  0xbf   : > { %4256 = dma.done.wait (%p5706_p5), %s550_s19, 128  }
  0xc0   : > { %4258 = vsyncadd (%p5706_p5), %s550_s19, 4294967168  ;;  %s558_s28 = sand.u32 1, %s4433_s27   ;;  %s3706_s29 = smul.u32 12, %s4616_s20 }
  0xc1   : > { %s559_s15 = scalar_lea.sflag [#allocation6], %s558_s28 }
  0xc2   : > { %s4628_s13 = scalar_lea.vmem [#allocation5], %s3706_s29 }
  0xc3   : > { %4260 = dma.done.wait (%p5706_p5), %s559_s15, 384  }
  0xc4   : > { %4262 = vsyncadd (%p5706_p5), %s559_s15, 4294966912  ;;  %s4634_s26 = scalar_lea.vmem [#allocation7], %s3706_s29  ;;  %p5707_p13 = scmp.eq.s32.totalorder %s4433_s27, 0 }
  0xc6   : > { %4264 = dma.done.wait (%p5707_p13), [#allocation9], 272   ;;  %p5708_p7 = pmov %p5707_p13 }
  0xc8   : > { %4266 = vsyncadd (%p5708_p7), [#allocation9], 4294967024  ;;  %p5709_p6 = pmov %p5708_p7 }
  0xca   : > { %4268 = dma.done.wait (%p5709_p6), [#allocation12], 272   ;;  %p5710_p4 = pmov %p5709_p6 }
  0xcc   : > { %4270 = vsyncadd (%p5710_p4), [#allocation12], 4294967024  ;;  %p5711_p10 = pmov %p5710_p4 }
  0xcd   : > { %p5712_p11 = pmov %p5710_p4 }
  0xce   : > { %4272 = dma.done.wait (%p5711_p10), [#allocation15], 272  }
  0xcf   : > { %4274 = vsyncadd (%p5712_p11), [#allocation15], 4294967024  ;;  %s3485_s24 = sshll.u32 %s4616_s20, 4  ;;  %s601_s30 = scalar_lea.sflag [#allocation18], %s4616_s20 }
  0xd0   : > { %s4652_s7 = scalar_lea.vmem [#allocation17], %s3485_s24 }
  0xd1   : > { %4276 = dma.done.wait (%p5706_p5), %s601_s30, 256  }
  0xd2   : > { %4278 = vsyncadd (%p5706_p5), %s601_s30, 4294967040  ;;  %v5628_v0 = vmov 0.0   ;;  %vm4326_vm0 = vmmov 0   ;;  %v3864_v1 = vld [vmem:[#allocation8 + $0x8] sm:$0xff]   ;;  %v3865_v2 = vld [vmem:[#allocation11 + $0x8] sm:$0xff]   ;;  %vm706_vm1 = vcmask 261120   ;;  %v989_v37 = vlaneseq }
  0xd3   : > { %3606 = vmatprep.subr.bf16.mxu0 %v5628_v0  ;;  %3610 = vmatprep.mubr.msk.bf16.mxu0 %vm4326_vm0, %v5628_v0  ;;  %v3866_v3 = vld [vmem:[#allocation8] sm:$0xff]   ;;  %v3867_v4 = vld [vmem:[#allocation11] sm:$0xff]   ;;  %v3872_v9 = vld [vmem:[%s5603_s9 + $0x8] sm:$0xff]   ;;  %vm1649_vm2 = vcmask 64512   ;;  %vm1727_vm3 = vcmask 1043456   ;;  %s4328_s3 = smov 120  }
  0xd4   : > { %3607 = vmatpush3.bf16.msra.mxu0 %v3864_v1  ;;  %3614 = vmatprep.subr.bf16.mxu1 %v3865_v2  ;;  %v3868_v5 = vld [vmem:[%s4620_s16] sm:$0xff]   ;;  %v3869_v6 = vld [vmem:[%s4628_s13] sm:$0xff]   ;;  %v3870_v7 = vld [vmem:[%s4628_s13 + $0x8] ss:$0 sps:$4 sm:$0xff]   ;;  %v4706_v39 = vshrl.u32 %v989_v37, 7  ;;  %s3487_s18 = sshll.u32 %s4616_s20, 6 }
  0xd5   : > { %3608 = vmatprep.subr.bf16.mxu0 %v5628_v0  ;;  %3615 = vmatpush3.bf16.msra.mxu1 %v3865_v2  ;;  %v3871_v8 = vld [vmem:[#allocation14 + $0x8] sm:$0xff]   ;;  %v3873_v10 = vld [vmem:[#allocation14] sm:$0xff]   ;;  %v3493_v15 = vld [vmem:[#allocation13] ss:$0 sm:$0xff]  ;;  %s5088_s12 = scalar_lea.vmem [#allocation20], %s3487_s18  ;;  %s4329_s1 = smov 112  }
  0xd6   : > { %3616 = vmatprep.subr.bf16.mxu1 %v3867_v4  ;;  %3618 = vmatprep.mubr.msk.bf16.mxu1 %vm706_vm1, %v3869_v6  ;;  %v3874_v11 = vld [vmem:[%s5603_s9] sm:$0xff]   ;;  %v3875_v12 = vld [vmem:[%s4634_s26] sm:$0xff]   ;;  %v3876_v13 = vld [vmem:[%s4634_s26 + $0x8] ss:$0 sps:$4 sm:$0xff]   ;;  %v1330_v43 = vsub.s32 4, %v4706_v39  ;;  %v4710_v44 = vsub.s32 0, %v4706_v39 }
  0xd7   : > { %v3488_v16 = vld [vmem:[#allocation10] ss:$0 sm:$0xff]  ;;  %v1344_v49 = vsub.s32 5, %v4706_v39  ;;  %v1288_v50 = vsub.s32 1, %v4706_v39  ;;  %v1358_v54 = vsub.s32 6, %v4706_v39  ;;  %v1302_v55 = vsub.s32 2, %v4706_v39 }
  0xd8   : > { %3609 = vmatpush3.bf16.msra.mxu0 %v3866_v3  ;;  %v1372_v58 = vsub.s32 7, %v4706_v39  ;;  %v1316_v62 = vsub.s32 3, %v4706_v39  ;;  %v4794_v37 = vadd.s32 8, %v4706_v39  ;;  %s4330_s4 = smov 104   ;;  %s4331_s21 = smov 8  }
  0xd9   : > { %3617 = vmatpush3.bf16.msra.mxu1 %v3867_v4  ;;  %3622 = vmatprep.subr.bf16.mxu0 %v3871_v8  ;;  %s4332_s23 = smov 16   ;;  %s5797_s14 = sld [smem:[#allocation32_spill]] }
  0xda   : > { %3630 = vmatprep.subr.bf16.mxu1 %v5628_v0  ;;  %s5798_s19 = sld [smem:[#allocation35_spill]]  ;;  %s3211_s26 = sshll.u32 %s5088_s12, 4  ;;  %s5501_s26 = int_to_ptr.vmem [resolvable:$true] %s3211_s26 }
  0xdb   : > { %3611 = vmatmul.mubr.msk.bf16.vlgmr.msra.gmra.mxu0 %vm706_vm1, %v3868_v5  ;;  %s5799_s15 = sld [smem:[#allocation68_spill]]  ;;  %s3178_s30 = scalar_lea.sflag [#allocation21], %s4616_s20 }
  0xdc   : > { %3623 = vmatpush3.bf16.msra.mxu0 %v3871_v8  ;;  %3619 = vmatmul.mubr.msk.bf16.vlgmr.msra.gmra.mxu1 %vm706_vm1, %v3870_v7  ;;  %s4333_s27 = smov [#allocation20]  }
  0xdd   : > { %3634 = vmatprep.mubr.msk.bf16.mxu1 %vm4326_vm0, %v5628_v0  ;;  %3631 = vmatpush3.bf16.msra.mxu1 %v3872_v9  ;;  %s4183_s17 = sshll.u32 %s4333_s27, 4  ;;  %s4184_s17 = int_to_ptr.vmem [resolvable:$false] %s4183_s17 }
  0xde   : > { %3624 = vmatprep.subr.bf16.mxu0 %v3873_v10  ;;  %3632 = vmatprep.subr.bf16.mxu1 %v5628_v0  ;;  %s4185_s5 = scalar_lea.vmem %s4184_s17, 2048  ;;  %p4186_p2 = scmp.lt.s32.totalorder %s5501_s26, %s4184_s17 }
  0xdf   : > { %3626 = vmatprep.mubr.msk.bf16.mxu0 %vm706_vm1, %v3875_v12  ;;  %s3567_s16 = sshll.u32 %s5797_s14, 10 }
  0xe0   : > { %3625 = vmatpush3.bf16.msra.mxu0 %v3873_v10  ;;  %p5800_p12 = scmp.ne.s32.totalorder %s5798_s19, 0 }
  0xe1   : > { %3638 = vmatprep.subr.bf16.mxu0 %v5628_v0  ;;  %3633 = vmatpush3.bf16.msra.mxu1 %v3874_v11  ;;  %s5498_s13 = scalar_lea.hbm %s5799_s15, %s3567_s16 }
  0xe2   : > { %3646 = vmatprep.subr.bf16.mxu1 %v5628_v0 }
  0xe3   : > { %3627 = vmatmul.mubr.msk.bf16.vlgmr.msra.gmra.mxu0 %vm706_vm1, %v3876_v13  ;;  %v3500_v13 = vld [vmem:[#allocation16] ss:$0 sm:$0xff] }
  0xe4   : > { %3642 = vmatprep.mubr.msk.bf16.mxu0 %vm4326_vm0, %v5628_v0 }
 0x19b   : > { %v744_v14 = vpop.f32.mrf.mxu0 }
 0x19c   : > { %v3620_v17 = vpop.f32.mrf.mxu1  ;;  %v745_v22 = vadd.f32 %v3488_v16, %v744_v14 }
 0x19d   : > { %v3612_v18 = vpop.f32.mrf.mxu0  ;;  %v831_v19 = vadd.f32 %v3620_v17, %v3493_v15 }
 0x19e   : > { %v822_v21 = vpop.f32.mrf.mxu1 }
 0x19f   : > { %v747_v20 = vpop.f32.mrf.mxu0  ;;  %v4686_v23 = vpack.c.bf16 %v831_v19, %v831_v19  ;;  %v823_v28 = vadd.f32 %v3493_v15, %v822_v21 }
 0x1a0   : > { %v748_v24 = vadd.f32 %v3488_v16, %v747_v20  ;;  %v3621_v26 = vpop.f32.mrf.mxu1  ;;  %v4327_v20 = vmov 1966171168  }
 0x1a1   : > { %v3613_v25 = vpop.f32.mrf.mxu0  ;;  %v1656_v29 = vsel %vm1649_vm2, %v4686_v23, 0  ;;  %v994_v21 = vunpack.c.l.s4 %v4327_v20  ;;  %v987_v26 = vld [vmem:[%s4652_s7] sm:$0xff] }
 0x1a2   : > { %v4688_v27 = vpack.c.bf16 %v748_v24, %v745_v22  ;;  %3639 = vmatpush3.bf16.xpose.msra.mxu0 %v1656_v29  ;;  %v825_v30 = vpop.f32.mrf.mxu1  ;;  %v988_v25 = vld [vmem:[%s4652_s7 + $0x8] sm:$0xff]  ;;  %s4179_s7 = scalar_lea.vmem %s5501_s26, 1024 }
 0x1a3   : > { %v826_v31 = vadd.f32 %v3493_v15, %v825_v30  ;;  %3640 = vmatprep.subr.bf16.mxu0 %v5628_v0  ;;  %v3628_v34 = vpop.f32.mrf.mxu0  ;;  %v995_v22 = vunpack.c.0.s8 %v994_v21  ;;  %v1041_v30 = vcombine.high %v988_v25, %v988_v25  ;;  %p4180_p3 = scmp.ne.s32.totalorder %s5501_s26, %s4179_s7  ;;  %p4187_p1 = scmp.lt.s32.totalorder %s4185_s5, %s4179_s7 }
 0x1a4   : > { %3635 = vmatmul.mubr.msk.bf16.vlgmr.msra.gmra.mxu1 %vm706_vm1, %v4688_v27  ;;  %v916_v14 = vadd.f32 %v3628_v34, %v3500_v13 }
 0x1a5   : > { %3650 = vmatprep.mubr.msk.bf16.mxu1 %vm4326_vm0, %v5628_v0  ;;  %v4697_v32 = vpack.c.bf16 %v826_v31, %v823_v28  ;;  %v907_v35 = vpop.f32.mrf.mxu0  ;;  %v4782_v24 = vsub.s32 %v995_v22, %v4706_v39  ;;  %p4181_p0 = pnand %p4180_p3, %p5800_p12  ;;  %p4188_p8 = por %p4187_p1, %p4186_p2 }
 0x1a6   : > { %v4772_v15 = vpack.c.bf16 %v916_v14, %v916_v14  ;;  %v908_v16 = vadd.f32 %v3500_v13, %v907_v35 }
 0x1a7   : > { %v1653_v33 = vsel %vm1649_vm2, %v4697_v32, 0  ;;  %v3629_v36 = vpop.f32.mrf.mxu0  ;;  %v1048_v28 = vrot.slane %v988_v25, %v4782_v24  ;;  %v999_v29 = vrot.slane %v987_v26, %v4782_v24  ;;  %p4182_p9 = pneg %p4181_p0 }
 0x1a8   : > { %5717 = vst [vmem:[#allocation42_spill] sm:$0xff] %v4772_v15  ;;  %v1729_v18 = vsel %vm1727_vm3, %v4772_v15, 0  ;;  %v4791_v36 = vrot.slane %v1041_v30, %v4782_v24 }
 0x1a9   : > { %v910_v51 = vpop.f32.mrf.mxu0  ;;  %3647 = vmatpush3.bf16.msra.mxu1 %v1729_v18  ;;  %v1064_v31 = vrot.slane %v1048_v28, %v4782_v24  ;;  %v1015_v34 = vrot.slane %v999_v29, %v4782_v24  ;;  %p4189_p5 = pnand %p4188_p8, %p4182_p9 }
 0x1aa   : > { %3641 = vmatpush3.bf16.xpose.msra.mxu0 %v1653_v33  ;;  %v911_v17 = vadd.f32 %v3500_v13, %v910_v51  ;;  %3648 = vmatprep.subr.bf16.mxu1 %v5628_v0  ;;  %v992_v33 = vcombine.high %v987_v26, %v987_v26 }
 0x1ab   : > { %3662 = vmatprep.subr.bf16.mxu0 %v5628_v0  ;;  %v1086_v35 = vcombine.high %v1064_v31, %v1064_v31 }
 0x1ac   : > { %v4776_v19 = vpack.c.bf16 %v911_v17, %v908_v16 }
 0x1ae   : > { %5718 = vst [vmem:[#allocation43_spill] sm:$0xff] %v4776_v19  ;;  %3649 = vmatpush3.bf16.msra.mxu1 %v4776_v19 }
 0x1af   : > { %3654 = vmatprep.subr.bf16.mxu1 %v5628_v0 }
 0x1b1   : > { %3643 = vmatmul.mubr.msk.bf16.vlgmr.msra.gmra.mxu0 %vm1649_vm2, %v4688_v27 }
 0x1b2   : > { %3666 = vmatprep.mubr.msk.bf16.mxu0 %vm4326_vm0, %v5628_v0 }
 0x264   : > { %v979_v38 = vpop.f32.mrf.mxu1 }
 0x266   : > { %v3636_v40 = vpop.f32.mrf.mxu1 }
 0x267   : > { %v1037_v40 = vcombine.high %v1015_v34, %v1015_v34 }
 0x268   : > { %v982_v41 = vpop.f32.mrf.mxu1 }
 0x269   : > { %v986_v42 = vpack.c.bf16 %v982_v41, %v979_v38  ;;  %v1125_v38 = vrot.slane %v1064_v31, %v4710_v44  ;;  %v4798_v41 = vrot.slane %v992_v33, %v4782_v24 }
 0x26a   : > { %v3637_v45 = vpop.f32.mrf.mxu1 }
 0x26b   : > { %v1267_v46 = vpack.i.b16 %v986_v42, %v986_v42  ;;  %v1276_v59 = vshrl.u32 %v986_v42, 16  ;;  %v1093_v42 = vrot.slane %v1015_v34, %v4710_v44  ;;  %v1071_v45 = vrot.slane %v4791_v36, %v4782_v24 }
 0x26c   : > { %vm1170_vm4 = vcmp.eq.s32.totalorder %v1125_v38, %v4706_v39  ;;  %vm1171_vm5 = vcmp.eq.s32.totalorder %v1125_v38, %v4794_v37 }
 0x26d   : > { %v4712_v47 = vrot.slane %v1267_v46, %v1330_v43  ;;  %v4715_v48 = vrot.slane %v1267_v46, %v4710_v44  ;;  %v4721_v52 = vrot.slane %v1267_v46, %v1344_v49  ;;  %v4723_v53 = vrot.slane %v1267_v46, %v1288_v50 }
 0x26e   : > { %v4732_v60 = vrot.slane %v1267_v46, %v1358_v54  ;;  %v4734_v61 = vrot.slane %v1267_v46, %v1302_v55  ;;  %v1277_v2 = vpack.i.b16 %v1276_v59, %v1276_v59  ;;  %v4741_v3 = vrot.slane %v1267_v46, %v1372_v58 }
 0x26f   : > { %1333 = vbcast.lane.c.b16.xlu1 %v4712_v47, 256  ;;  %1274 = vbcast.lane.c.b16.xlu0 %v4715_v48, 256  ;;  %v4743_v4 = vrot.slane %v1267_v46, %v1316_v62  ;;  %v1101_v46 = vrot.slane %v1037_v40, %v4710_v44  ;;  %vm1154_vm6 = vcmp.eq.s32.totalorder %v1093_v42, %v4706_v39 }
 0x270   : > { %5713 = vst [vmem:[#allocation38_spill] sm:$0xff] %v4741_v3  ;;  %v4747_v5 = vrot.slane %v1277_v2, %v1330_v43  ;;  %v4750_v6 = vrot.slane %v1277_v2, %v4710_v44  ;;  %v4754_v7 = vrot.slane %v1277_v2, %v1344_v49  ;;  %v4756_v8 = vrot.slane %v1277_v2, %v1288_v50 }
 0x271   : > { %v4727_v56 = vpop.f32.mrf.mxu0  ;;  %v4760_v9 = vrot.slane %v1277_v2, %v1358_v54  ;;  %v4762_v10 = vrot.slane %v1277_v2, %v1302_v55  ;;  %v4766_v11 = vrot.slane %v1277_v2, %v1372_v58  ;;  %v4768_v12 = vrot.slane %v1277_v2, %v1316_v62 }
 0x272   : > { %v1133_v43 = vrot.slane %v1086_v35, %v4710_v44  ;;  %v1022_v49 = vrot.slane %v4798_v41, %v4782_v24  ;;  %v1056_v50 = vcombine.high %v1048_v28, %v1048_v28  ;;  %vm1155_vm7 = vcmp.eq.s32.totalorder %v1093_v42, %v4794_v37 }
 0x273   : > { %1347 = vbcast.lane.c.b16.xlu1 %v4721_v52, 256  ;;  %1291 = vbcast.lane.c.b16.xlu0 %v4723_v53, 256  ;;  %v3644_v57 = vpop.f32.mrf.mxu0  ;;  %5714 = vst [vmem:[#allocation39_spill] sm:$0xff] %v4760_v9  ;;  %5715 = vst [vmem:[#allocation40_spill] sm:$0xff] %v4766_v11  ;;  %v1141_v51 = vrot.slane %v1071_v45, %v4710_v44  ;;  %v1007_v54 = vcombine.high %v999_v29, %v999_v29  ;;  %v3526_v55 = vsel %vm1170_vm4, 1.0, %v5628_v0 }
 0x274   : > { %5716 = vst [vmem:[#allocation41_spill] sm:$0xff] %v4768_v12  ;;  %vm1174_vm8 = vcmp.eq.s32.totalorder %v1133_v43, %v4706_v39  ;;  %v3527_v57 = vsel %vm1171_vm5, 1.0, %v5628_v0  ;;  %vm1175_vm9 = vcmp.eq.s32.totalorder %v1133_v43, %v4794_v37  ;;  %v1087_v58 = vcombine.high %v1071_v45, %v1071_v45 }
 0x275   : > { %v4737_v63 = vpop.f32.mrf.mxu0  ;;  %vm1158_vm10 = vcmp.eq.s32.totalorder %v1101_v46, %v4706_v39  ;;  %vm1159_vm11 = vcmp.eq.s32.totalorder %v1101_v46, %v4794_v37  ;;  %v1109_v59 = vrot.slane %v1022_v49, %v4710_v44  ;;  %v1038_v62 = vcombine.high %v1022_v49, %v1022_v49 }
 0x276   : > { %v3511_v2 = vsel %vm1155_vm7, 1.0, %v5628_v0  ;;  %v3530_v13 = vsel %vm1174_vm8, 1.0, %v5628_v0  ;;  %v1078_v14 = vrot.slane %v1056_v50, %v4782_v24  ;;  %v3531_v16 = vsel %vm1175_vm9, 1.0, %v5628_v0 }
 0x277   : > { %1361 = vbcast.lane.c.b16.xlu1 %v4732_v60, 256  ;;  %1305 = vbcast.lane.c.b16.xlu0 %v4734_v61, 256  ;;  %v3645_v1 = vpop.f32.mrf.mxu0  ;;  %vm1178_vm12 = vcmp.eq.s32.totalorder %v1141_v51, %v4706_v39  ;;  %vm1179_vm13 = vcmp.eq.s32.totalorder %v1141_v51, %v4794_v37  ;;  %v1029_v17 = vrot.slane %v1007_v54, %v4782_v24  ;;  %v3514_v18 = vsel %vm1158_vm10, 1.0, %v5628_v0 }
 0x278   : > { %v3510_v1 = vsel %vm1154_vm6, 1.0, %v5628_v0  ;;  %v3515_v20 = vsel %vm1159_vm11, 1.0, %v5628_v0  ;;  %v1149_v21 = vrot.slane %v1087_v58, %v4710_v44  ;;  %v1088_v22 = vcombine.high %v1078_v14, %v1078_v14 }
 0x279   : > { %v4830_v25 = vpack.c.bf16 %v3527_v57, %v3526_v55  ;;  %vm1162_vm14 = vcmp.eq.s32.totalorder %v1109_v59, %v4706_v39  ;;  %vm1163_vm15 = vcmp.eq.s32.totalorder %v1109_v59, %v4794_v37  ;;  %v1117_v26 = vrot.slane %v1038_v62, %v4710_v44 }
 0x27a   : > { %v3534_v28 = vsel %vm1178_vm12, 1.0, %v5628_v0  ;;  %v3535_v29 = vsel %vm1179_vm13, 1.0, %v5628_v0  ;;  %v1129_v30 = vrot.slane %v1078_v14, %v4710_v44  ;;  %v1039_v31 = vcombine.high %v1029_v17, %v1029_v17 }
 0x27b   : > { %1375 = vbcast.lane.c.b16.xlu1 %v4741_v3, 256  ;;  %1319 = vbcast.lane.c.b16.xlu0 %v4743_v4, 256  ;;  %5719 = vst [vmem:[#allocation44_spill] sm:$0xff] %v4830_v25  ;;  %v4838_v33 = vpack.c.bf16 %v3511_v2, %v3510_v1  ;;  %v4840_v34 = vpack.c.bf16 %v3531_v16, %v3530_v13  ;;  %v3518_v45 = vsel %vm1162_vm14, 1.0, %v5628_v0  ;;  %v3519_v46 = vsel %vm1163_vm15, 1.0, %v5628_v0 }
 0x27c   : > { %v4842_v35 = vpack.c.bf16 %v3515_v20, %v3514_v18  ;;  %v1097_v38 = vrot.slane %v1029_v17, %v4710_v44  ;;  %vm1182_vm4 = vcmp.eq.s32.totalorder %v1149_v21, %v4706_v39  ;;  %vm1183_vm5 = vcmp.eq.s32.totalorder %v1149_v21, %v4794_v37 }
 0x27d   : > { %5720 = vst [vmem:[#allocation45_spill] sm:$0xff] %v4838_v33  ;;  %5721 = vst [vmem:[#allocation46_spill] sm:$0xff] %v4840_v34  ;;  %v1137_v40 = vrot.slane %v1088_v22, %v4710_v44  ;;  %v1057_v42 = vcombine.high %v4791_v36, %v4791_v36  ;;  %v4850_v43 = vpack.c.bf16 %v3535_v29, %v3534_v28  ;;  %vm1432_vm7 = vcmask 195584  }
 0x27e   : > { %5722 = vst [vmem:[#allocation47_spill] sm:$0xff] %v4842_v35  ;;  %vm1166_vm6 = vcmp.eq.s32.totalorder %v1117_v26, %v4706_v39  ;;  %vm1434_vm8 = vcmask 191488   ;;  %vm1167_vm9 = vcmp.eq.s32.totalorder %v1117_v26, %v4794_v37  ;;  %vm1172_vm10 = vcmp.eq.s32.totalorder %v1129_v30, %v4706_v39 }
 0x27f   : > { %1340 = vbcast.lane.c.b16.xlu1 %v4747_v5, 256  ;;  %1284 = vbcast.lane.c.b16.xlu0 %v4750_v6, 256  ;;  %5723 = vst [vmem:[#allocation48_spill] sm:$0xff] %v4850_v43  ;;  %vm1173_vm11 = vcmp.eq.s32.totalorder %v1129_v30, %v4794_v37  ;;  %v1105_v36 = vrot.slane %v1039_v31, %v4710_v44  ;;  %v3538_v49 = vsel %vm1182_vm4, 1.0, %v5628_v0  ;;  %v3539_v50 = vsel %vm1183_vm5, 1.0, %v5628_v0 }
 0x280   : > { %vm1156_vm12 = vcmp.eq.s32.totalorder %v1097_v38, %v4706_v39  ;;  %vm1157_vm13 = vcmp.eq.s32.totalorder %v1097_v38, %v4794_v37  ;;  %vm1176_vm14 = vcmp.eq.s32.totalorder %v1137_v40, %v4706_v39  ;;  %vm1177_vm15 = vcmp.eq.s32.totalorder %v1137_v40, %v4794_v37 }
 0x281   : > { %v1085_v51 = vrot.slane %v1057_v42, %v4782_v24  ;;  %v1008_v54 = vcombine.high %v4798_v41, %v4798_v41  ;;  %v3522_v55 = vsel %vm1166_vm6, 1.0, %v5628_v0  ;;  %v3523_v57 = vsel %vm1167_vm9, 1.0, %v5628_v0 }
 0x282   : > { %v3528_v58 = vsel %vm1172_vm10, 1.0, %v5628_v0  ;;  %v3529_v59 = vsel %vm1173_vm11, 1.0, %v5628_v0  ;;  %v4876_v62 = vpack.c.bf16 %v3519_v46, %v3518_v45  ;;  %v4878_v1 = vpack.c.bf16 %v3539_v50, %v3538_v49 }
 0x283   : > { %1354 = vbcast.lane.c.b16.xlu1 %v4754_v7, 256  ;;  %1298 = vbcast.lane.c.b16.xlu0 %v4756_v8, 256  ;;  %vm1160_vm4 = vcmp.eq.s32.totalorder %v1105_v36, %v4706_v39  ;;  %vm1161_vm5 = vcmp.eq.s32.totalorder %v1105_v36, %v4794_v37  ;;  %v3512_v2 = vsel %vm1156_vm12, 1.0, %v5628_v0  ;;  %v3513_v41 = vsel %vm1157_vm13, 1.0, %v5628_v0 }
 0x284   : > { %5724 = vst [vmem:[#allocation49_spill] sm:$0xff] %v4876_v62  ;;  %5725 = vst [vmem:[#allocation50_spill] sm:$0xff] %v4878_v1  ;;  %v3532_v13 = vsel %vm1176_vm14, 1.0, %v5628_v0  ;;  %v3533_v14 = vsel %vm1177_vm15, 1.0, %v5628_v0  ;;  %v4886_v18 = vpack.c.bf16 %v3523_v57, %v3522_v55  ;;  %v4888_v20 = vpack.c.bf16 %v3529_v59, %v3528_v58 }
 0x285   : > { %v1145_v21 = vrot.slane %v1085_v51, %v4710_v44  ;;  %v1036_v22 = vrot.slane %v1008_v54, %v4782_v24  ;;  %v3516_v29 = vsel %vm1160_vm4, 1.0, %v5628_v0  ;;  %v3517_v30 = vsel %vm1161_vm5, 1.0, %v5628_v0 }
 0x286   : > { %5726 = vst [vmem:[#allocation51_spill] sm:$0xff] %v4886_v18  ;;  %5727 = vst [vmem:[#allocation52_spill] sm:$0xff] %v4888_v20  ;;  %v4896_v31 = vpack.c.bf16 %v3513_v41, %v3512_v2  ;;  %v4898_v38 = vpack.c.bf16 %v3533_v14, %v3532_v13  ;;  %v1089_v40 = vcombine.high %v1085_v51, %v1085_v51  ;;  %vm1626_vm4 = vcmask 1041409  }
 0x287   : > { %1368 = vbcast.lane.c.b16.xlu1 %v4760_v9, 256  ;;  %1312 = vbcast.lane.c.b16.xlu0 %v4762_v10, 256  ;;  %v1040_v42 = vcombine.high %v1036_v22, %v1036_v22  ;;  %v4900_v54 = vpack.c.bf16 %v3517_v30, %v3516_v29  ;;  %vm1180_vm6 = vcmp.eq.s32.totalorder %v1145_v21, %v4706_v39  ;;  %vm1628_vm5 = vcmask 1042434  }
 0x288   : > { %5728 = vst [vmem:[#allocation53_spill] sm:$0xff] %v4896_v31  ;;  %5729 = vst [vmem:[#allocation54_spill] sm:$0xff] %v4898_v38  ;;  %vm1181_vm9 = vcmp.eq.s32.totalorder %v1145_v21, %v4794_v37  ;;  %v4905_v55 = vrot.slane %v1036_v22, %v4710_v44  ;;  %v4920_v21 = vrot.slane %v1089_v40, %v4710_v44 }
 0x289   : > { %5730 = vst [vmem:[#allocation55_spill] sm:$0xff] %v4900_v54  ;;  %v4923_v22 = vrot.slane %v1040_v42, %v4710_v44 }
 0x28a   : > { %vm1164_vm10 = vcmp.eq.s32.totalorder %v4905_v55, %v4706_v39  ;;  %vm1165_vm11 = vcmp.eq.s32.totalorder %v4905_v55, %v4794_v37  ;;  %vm1184_vm12 = vcmp.eq.s32.totalorder %v4920_v21, %v4706_v39  ;;  %vm1185_vm13 = vcmp.eq.s32.totalorder %v4920_v21, %v4794_v37 }
 0x28b   : > { %1382 = vbcast.lane.c.b16.xlu1 %v4766_v11, 256  ;;  %1326 = vbcast.lane.c.b16.xlu0 %v4768_v12, 256  ;;  %vm1168_vm14 = vcmp.eq.s32.totalorder %v4923_v22, %v4706_v39  ;;  %vm1169_vm15 = vcmp.eq.s32.totalorder %v4923_v22, %v4794_v37 }
 0x2e1   : > { %v1334_v16 = vpop.permute.xlu1 %1333  ;;  %v1275_v17 = vpop.permute.xlu0 %1274 }
 0x2e2   : > { %v1392_v26 = vmul.bf16 %v1334_v16, %v4830_v25  ;;  %v1384_v28 = vmul.bf16 %v1275_v17, %v4838_v33  ;;  %v4914_v16 = vsel %vm1180_vm6, 1.0, %v5628_v0  ;;  %v4917_v17 = vsel %vm1181_vm9, 1.0, %v5628_v0 }
 0x2e3   : > { %v5731_v25 = vmov 0.0   ;;  %vm1630_vm6 = vcmask 1043459   ;;  %vm1632_vm9 = vcmask 1044484  }
 0x2e4   : > { %v1416_v45 = vunpack.c.l.bf16 %v1392_v26  ;;  %v1417_v46 = vunpack.c.h.bf16 %v1392_v26  ;;  %v1400_v36 = vunpack.c.l.bf16 %v1384_v28  ;;  %v1401_v49 = vunpack.c.h.bf16 %v1384_v28 }
 0x2e5   : > { %v1348_v50 = vpop.permute.xlu1 %1347  ;;  %v1292_v24 = vpop.permute.xlu0 %1291 }
 0x2e6   : > { %v1506_v57 = vsel %vm1432_vm7, %v1416_v45, 0.0  ;;  %v1507_v51 = vsel %vm1434_vm8, %v1417_v46, 0.0  ;;  %v1433_v58 = vsel %vm1432_vm7, %v1400_v36, 0.0  ;;  %v1435_v59 = vsel %vm1434_vm8, %v1401_v49, 0.0 }
 0x2e7   : > { %v1508_v2 = vadd.f32 %v1507_v51, %v1506_v57  ;;  %v1436_v41 = vadd.f32 %v1435_v59, %v1433_v58  ;;  %v1394_v13 = vmul.bf16 %v1348_v50, %v4840_v34  ;;  %v1386_v14 = vmul.bf16 %v1292_v24, %v4842_v35 }
 0x2e9   : > { %v1509_v26 = vrot.slane %v1508_v2, 4  ;;  %v1437_v28 = vrot.slane %v1436_v41, 4  ;;  %v1420_v29 = vunpack.c.l.bf16 %v1394_v13  ;;  %v1421_v30 = vunpack.c.h.bf16 %v1394_v13  ;;  %v1362_v45 = vpop.permute.xlu1 %1361  ;;  %v1306_v46 = vpop.permute.xlu0 %1305 }
 0x2ea   : > { %v1404_v36 = vunpack.c.l.bf16 %v1386_v14  ;;  %v1405_v49 = vunpack.c.h.bf16 %v1386_v14  ;;  %v1396_v50 = vmul.bf16 %v1362_v45, %v4850_v43  ;;  %v1388_v24 = vmul.bf16 %v1306_v46, %v4876_v62 }
 0x2eb   : > { %v1510_v57 = vadd.f32 %v1509_v26, %v1508_v2  ;;  %v1438_v51 = vadd.f32 %v1437_v28, %v1436_v41  ;;  %v1524_v40 = vsel %vm1432_vm7, %v1420_v29, 0.0  ;;  %v1525_v58 = vsel %vm1434_vm8, %v1421_v30, 0.0 }
 0x2ec   : > { %v1526_v44 = vadd.f32 %v1525_v58, %v1524_v40  ;;  %v1452_v42 = vsel %vm1432_vm7, %v1404_v36, 0.0  ;;  %v1453_v59 = vsel %vm1434_vm8, %v1405_v49, 0.0  ;;  %v1424_v13 = vunpack.c.l.bf16 %v1396_v50 }
 0x2ed   : > { %v1511_v2 = vrot.slane %v1510_v57, 2  ;;  %v1439_v41 = vrot.slane %v1438_v51, 2  ;;  %v1454_v14 = vadd.f32 %v1453_v59, %v1452_v42  ;;  %v1425_v26 = vunpack.c.h.bf16 %v1396_v50  ;;  %v1376_v58 = vpop.permute.xlu1 %1375  ;;  %v1320_v34 = vpop.permute.xlu0 %1319 }
 0x2ee   : > { %v1527_v28 = vrot.slane %v1526_v44, 4  ;;  %v1542_v29 = vsel %vm1432_vm7, %v1424_v13, 0.0  ;;  %v1408_v30 = vunpack.c.l.bf16 %v1388_v24  ;;  %v1409_v45 = vunpack.c.h.bf16 %v1388_v24 }
 0x2ef   : > { %v1512_v46 = vadd.f32 %v1511_v2, %v1510_v57  ;;  %v1440_v36 = vadd.f32 %v1439_v41, %v1438_v51  ;;  %v1455_v49 = vrot.slane %v1454_v14, 4  ;;  %v1543_v40 = vsel %vm1434_vm8, %v1425_v26, 0.0 }
 0x2f0   : > { %v1528_v0 = vadd.f32 %v1527_v28, %v1526_v44  ;;  %v1544_v15 = vadd.f32 %v1543_v40, %v1542_v29  ;;  %v1470_v19 = vsel %vm1432_vm7, %v1408_v30, 0.0  ;;  %v1471_v43 = vsel %vm1434_vm8, %v1409_v45, 0.0 }
 0x2f1   : > { %v1513_v42 = vrot.slane %v1512_v46, 1  ;;  %v1456_v50 = vadd.f32 %v1455_v49, %v1454_v14  ;;  %v1472_v59 = vadd.f32 %v1471_v43, %v1470_v19  ;;  %v1441_v24 = vrot.slane %v1440_v36, 1  ;;  %v1285_v62 = vpop.permute.xlu0 %1284 }
 0x2f2   : > { %v1529_v57 = vrot.slane %v1528_v0, 2  ;;  %v1545_v51 = vrot.slane %v1544_v15, 4  ;;  %v1398_v13 = vmul.bf16 %v1376_v58, %v4878_v1  ;;  %v1390_v30 = vmul.bf16 %v1320_v34, %v4886_v18  ;;  %v1341_v1 = vpop.permute.xlu1 %1340 }
 0x2f3   : > { %v1457_v2 = vrot.slane %v1456_v50, 2  ;;  %v1473_v41 = vrot.slane %v1472_v59, 4  ;;  %v1514_v43 = vadd.f32 %v1513_v42, %v1512_v46  ;;  %v1442_v45 = vadd.f32 %v1441_v24, %v1440_v36 }
 0x2f4   : > { %v1530_v44 = vadd.f32 %v1529_v57, %v1528_v0  ;;  %v1546_v26 = vadd.f32 %v1545_v51, %v1544_v15  ;;  %v1428_v14 = vunpack.c.l.bf16 %v1398_v13  ;;  %v1429_v19 = vunpack.c.h.bf16 %v1398_v13 }
 0x2f5   : > { %v1458_v28 = vadd.f32 %v1457_v2, %v1456_v50  ;;  %v1474_v29 = vadd.f32 %v1473_v41, %v1472_v59  ;;  %v3520_v0 = vsel %vm1164_vm10, 1.0, %v5731_v25  ;;  %v3521_v15 = vsel %vm1165_vm11, 1.0, %v5731_v25  ;;  %v1299_v22 = vpop.permute.xlu0 %1298 }
 0x2f6   : > { %v1547_v49 = vrot.slane %v1546_v26, 2  ;;  %v1560_v40 = vsel %vm1432_vm7, %v1428_v14, 0.0  ;;  %v1561_v58 = vsel %vm1434_vm8, %v1429_v19, 0.0  ;;  %v3540_v34 = vsel %vm1184_vm12, 1.0, %v5731_v25  ;;  %v1355_v37 = vpop.permute.xlu1 %1354 }
 0x2f7   : > { %v3541_v46 = vsel %vm1185_vm13, 1.0, %v5731_v25  ;;  %v1531_v36 = vrot.slane %v1530_v44, 1  ;;  %v1459_v42 = vrot.slane %v1458_v28, 1  ;;  %v1562_v50 = vadd.f32 %v1561_v58, %v1560_v40 }
 0x2f8   : > { %v3524_v59 = vsel %vm1168_vm14, 1.0, %v5731_v25  ;;  %v1586_v55 = vpack.c.bf16 %v1514_v43, %v1514_v43  ;;  %v1475_v24 = vrot.slane %v1474_v29, 2  ;;  %v1393_v57 = vmul.bf16 %v1341_v1, %v4888_v20 }
 0x2f9   : > { %v3525_v51 = vsel %vm1169_vm15, 1.0, %v5731_v25  ;;  %v1578_v13 = vpack.c.bf16 %v1442_v45, %v1442_v45  ;;  %v1548_v21 = vadd.f32 %v1547_v49, %v1546_v26  ;;  %v1412_v2 = vunpack.c.l.bf16 %v1390_v30 }
 0x2fa   : > { %v4978_v41 = vpack.c.bf16 %v4917_v17, %v4914_v16  ;;  %v1413_v14 = vunpack.c.h.bf16 %v1390_v30  ;;  %v1418_v19 = vunpack.c.l.bf16 %v1393_v57  ;;  %v4980_v39 = vpack.c.bf16 %v3521_v15, %v3520_v0 }
 0x2fb   : > { %v4982_v43 = vpack.c.bf16 %v3541_v46, %v3540_v34  ;;  %v4984_v40 = vadd.f32 %v1531_v36, %v1530_v44  ;;  %v4986_v1 = vadd.f32 %v1459_v42, %v1458_v28  ;;  %v1563_v58 = vrot.slane %v1562_v50, 4 }
 0x2fc   : > { %5732 = vst [vmem:[#allocation56_spill] sm:$0xff] %v4978_v41  ;;  %5733 = vst [vmem:[#allocation57_spill] sm:$0xff] %v4980_v39  ;;  %v4988_v45 = vpack.c.bf16 %v3525_v51, %v3524_v59  ;;  %v4990_v26 = vunpack.c.l.bf16 %v1586_v55  ;;  %v4992_v49 = vadd.f32 %v1475_v24, %v1474_v29  ;;  %v1419_v16 = vunpack.c.h.bf16 %v1393_v57 }
 0x2fd   : > { %5734 = vst [vmem:[#allocation58_spill] sm:$0xff] %v4982_v43  ;;  %v1515_v17 = vsel %vm1432_vm7, %v1418_v19, 0.0  ;;  %v4995_v30 = vunpack.c.l.bf16 %v1578_v13  ;;  %v1549_v0 = vrot.slane %v1548_v21, 1  ;;  %v1488_v44 = vsel %vm1432_vm7, %v1412_v2, 0.0 }
 0x2fe   : > { %5735 = vst [vmem:[#allocation59_spill] sm:$0xff] %v4988_v45  ;;  %v1385_v28 = vmul.bf16 %v1285_v62, %v4896_v31  ;;  %v1489_v15 = vsel %vm1434_vm8, %v1413_v14, 0.0  ;;  %v1516_v34 = vsel %vm1434_vm8, %v1419_v16, 0.0  ;;  %v1395_v46 = vmul.bf16 %v1355_v37, %v4898_v38  ;;  %v1369_v37 = vpop.permute.xlu1 %1368 }
 0x2ff   : > { %v1387_v36 = vmul.bf16 %v1299_v22, %v4900_v54  ;;  %v5007_v59 = vadd.f32 %v1563_v58, %v1562_v50  ;;  %v1517_v55 = vadd.f32 %v1516_v34, %v1515_v17  ;;  %v5010_v13 = vadd.f32 %v1549_v0, %v1548_v21  ;;  %v1313_v58 = vpop.permute.xlu0 %1312 }
 0x300   : > { %v1402_v62 = vunpack.c.l.bf16 %v1385_v28  ;;  %v1403_v57 = vunpack.c.h.bf16 %v1385_v28  ;;  %v1422_v51 = vunpack.c.l.bf16 %v1395_v46  ;;  %v1490_v2 = vadd.f32 %v1489_v15, %v1488_v44 }
 0x301   : > { %v1518_v14 = vrot.slane %v1517_v55, 4  ;;  %v1423_v19 = vunpack.c.h.bf16 %v1395_v46  ;;  %v1406_v50 = vunpack.c.l.bf16 %v1387_v36  ;;  %v1565_v17 = vrot.slane %v5007_v59, 2 }
 0x302   : > { %v1443_v22 = vsel %vm1432_vm7, %v1402_v62, 0.0  ;;  %v1444_v16 = vsel %vm1434_vm8, %v1403_v57, 0.0  ;;  %v1533_v42 = vsel %vm1432_vm7, %v1422_v51, 0.0  ;;  %v1407_v0 = vunpack.c.h.bf16 %v1387_v36 }
 0x303   : > { %v1519_v34 = vadd.f32 %v1518_v14, %v1517_v55  ;;  %v1445_v24 = vadd.f32 %v1444_v16, %v1443_v22  ;;  %v1534_v28 = vsel %vm1434_vm8, %v1423_v19, 0.0  ;;  %v1461_v44 = vsel %vm1432_vm7, %v1406_v50, 0.0 }
 0x304   : > { %v1535_v21 = vadd.f32 %v1534_v28, %v1533_v42  ;;  %v1397_v15 = vmul.bf16 %v1369_v37, %v4978_v41  ;;  %v1491_v46 = vrot.slane %v1490_v2, 4  ;;  %v1389_v57 = vmul.bf16 %v1313_v58, %v4980_v39  ;;  %v1383_v42 = vpop.permute.xlu1 %1382 }
 0x305   : > { %v1520_v62 = vrot.slane %v1519_v34, 2  ;;  %v1446_v29 = vrot.slane %v1445_v24, 4  ;;  %v1462_v38 = vsel %vm1434_vm8, %v1407_v0, 0.0  ;;  %vm1634_vm10 = vcmask 1045509  }
 0x306   : > { %v1536_v51 = vrot.slane %v1535_v21, 4  ;;  %v1426_v20 = vunpack.c.l.bf16 %v1397_v15  ;;  %v1427_v18 = vunpack.c.h.bf16 %v1397_v15  ;;  %v1463_v22 = vadd.f32 %v1462_v38, %v1461_v44 }
 0x307   : > { %v1521_v55 = vadd.f32 %v1520_v62, %v1519_v34  ;;  %v1447_v14 = vadd.f32 %v1446_v29, %v1445_v24  ;;  %v1410_v19 = vunpack.c.l.bf16 %v1389_v57  ;;  %v1411_v50 = vunpack.c.h.bf16 %v1389_v57 }
 0x308   : > { %v1537_v36 = vadd.f32 %v1536_v51, %v1535_v21  ;;  %v1551_v16 = vsel %vm1432_vm7, %v1426_v20, 0.0  ;;  %v1552_v37 = vsel %vm1434_vm8, %v1427_v18, 0.0  ;;  %v1464_v31 = vrot.slane %v1463_v22, 4 }
 0x309   : > { %v1522_v28 = vrot.slane %v1521_v55, 1  ;;  %v1448_v41 = vrot.slane %v1447_v14, 2  ;;  %v1553_v58 = vadd.f32 %v1552_v37, %v1551_v16  ;;  %v1479_v0 = vsel %vm1432_vm7, %v1410_v19, 0.0  ;;  %v1327_v16 = vpop.permute.xlu0 %1326 }
 0x30a   : > { %v1538_v39 = vrot.slane %v1537_v36, 2  ;;  %v1480_v15 = vsel %vm1434_vm8, %v1411_v50, 0.0  ;;  %v1399_v29 = vmul.bf16 %v1383_v42, %v4982_v43  ;;  %v1492_v38 = vadd.f32 %v1491_v46, %v1490_v2 }
 0x30b   : > { %v1449_v24 = vadd.f32 %v1448_v41, %v1447_v14  ;;  %v1465_v34 = vadd.f32 %v1464_v31, %v1463_v22  ;;  %v1554_v21 = vrot.slane %v1553_v58, 4  ;;  %v1481_v20 = vadd.f32 %v1480_v15, %v1479_v0 }
 0x30c   : > { %v1539_v44 = vadd.f32 %v1538_v39, %v1537_v36  ;;  %v1430_v62 = vunpack.c.l.bf16 %v1399_v29  ;;  %v1431_v18 = vunpack.c.h.bf16 %v1399_v29  ;;  %v1523_v57 = vadd.f32 %v1522_v28, %v1521_v55 }
 0x30d   : > { %v1450_v51 = vrot.slane %v1449_v24, 1  ;;  %v1466_v54 = vrot.slane %v1465_v34, 2  ;;  %v1555_v35 = vadd.f32 %v1554_v21, %v1553_v58  ;;  %v1482_v33 = vrot.slane %v1481_v20, 4 }
 0x30e   : > { %v1540_v37 = vrot.slane %v1539_v44, 1  ;;  %v1569_v19 = vsel %vm1432_vm7, %v1430_v62, 0.0  ;;  %v1570_v50 = vsel %vm1434_vm8, %v1431_v18, 0.0  ;;  %v1566_v41 = vadd.f32 %v1565_v17, %v5007_v59 }
 0x30f   : > { %v1451_v31 = vadd.f32 %v1450_v51, %v1449_v24  ;;  %v1467_v2 = vadd.f32 %v1466_v54, %v1465_v34  ;;  %v1556_v39 = vrot.slane %v1555_v35, 2  ;;  %v1483_v14 = vadd.f32 %v1482_v33, %v1481_v20 }
 0x310   : > { %v1541_v46 = vadd.f32 %v1540_v37, %v1539_v44  ;;  %v1571_v22 = vadd.f32 %v1570_v50, %v1569_v19  ;;  %v1391_v55 = vmul.bf16 %v1327_v16, %v4988_v45  ;;  %v1493_v42 = vrot.slane %v1492_v38, 2 }
 0x311   : > { %v1587_v36 = vpack.c.bf16 %v1523_v57, %v1523_v57  ;;  %v1468_v28 = vrot.slane %v1467_v2, 1  ;;  %v1557_v58 = vadd.f32 %v1556_v39, %v1555_v35  ;;  %v1579_v0 = vpack.c.bf16 %v1451_v31, %v1451_v31 }
 0x312   : > { %v1484_v15 = vrot.slane %v1483_v14, 2  ;;  %v1572_v29 = vrot.slane %v1571_v22, 4  ;;  %v1414_v21 = vunpack.c.l.bf16 %v1391_v55  ;;  %v1589_v59 = vpack.c.bf16 %v1541_v46, %v1541_v46 }
 0x313   : > { %v1469_v17 = vadd.f32 %v1468_v28, %v1467_v2  ;;  %v1558_v54 = vrot.slane %v1557_v58, 1  ;;  %v1415_v24 = vunpack.c.h.bf16 %v1391_v55  ;;  %v1567_v33 = vrot.slane %v1566_v41, 1 }
 0x314   : > { %v1485_v34 = vadd.f32 %v1484_v15, %v1483_v14  ;;  %v1573_v44 = vadd.f32 %v1572_v29, %v1571_v22  ;;  %v1497_v20 = vsel %vm1432_vm7, %v1414_v21, 0.0  ;;  %v1494_v62 = vadd.f32 %v1493_v42, %v1492_v38 }
 0x315   : > { %v1603_v18 = vunpack.c.l.bf16 %v1587_v36  ;;  %v1559_v57 = vadd.f32 %v1558_v54, %v1557_v58  ;;  %v1498_v35 = vsel %vm1434_vm8, %v1415_v24, 0.0  ;;  %v1590_v51 = vpack.c.bf16 %v5010_v13, %v5010_v13 }
 0x316   : > { %v1486_v16 = vrot.slane %v1485_v34, 1  ;;  %v1574_v37 = vrot.slane %v1573_v44, 2  ;;  %v1499_v19 = vadd.f32 %v1498_v35, %v1497_v20  ;;  %v1595_v50 = vunpack.c.l.bf16 %v1579_v0 }
 0x317   : > { %v1605_v31 = vunpack.c.l.bf16 %v1589_v59  ;;  %v1581_v2 = vpack.c.bf16 %v1469_v17, %v1469_v17  ;;  %v1591_v39 = vpack.c.bf16 %v1559_v57, %v1559_v57  ;;  %v1568_v55 = vadd.f32 %v1567_v33, %v1566_v41 }
 0x318   : > { %v1487_v46 = vadd.f32 %v1486_v16, %v1485_v34  ;;  %v1575_v14 = vadd.f32 %v1574_v37, %v1573_v44  ;;  %v1500_v22 = vrot.slane %v1499_v19, 4  ;;  %v5736_v38 = vpack.c.bf16 %v4984_v40, %v4984_v40 }
 0x319   : > { %v5737_v36 = vrot.slane %v4992_v49, 1  ;;  %v1495_v13 = vrot.slane %v1494_v62, 1  ;;  %v1640_v58 = vsel %vm1626_vm4, %v1603_v18, %v4990_v26  ;;  %v1606_v0 = vunpack.c.l.bf16 %v1590_v51 }
 0x31a   : > { %v1604_v42 = vunpack.c.l.bf16 %v5736_v38  ;;  %v1501_v15 = vadd.f32 %v1500_v22, %v1499_v19  ;;  %v1576_v29 = vrot.slane %v1575_v14, 1  ;;  %v1607_v21 = vunpack.c.l.bf16 %v1591_v39 }
 0x31b   : > { %v1478_v28 = vadd.f32 %v5737_v36, %v4992_v49  ;;  %v1597_v59 = vunpack.c.l.bf16 %v1581_v2  ;;  %v1627_v41 = vsel %vm1626_vm4, %v1595_v50, %v4995_v30  ;;  %v1592_v17 = vpack.c.bf16 %v1568_v55, %v1568_v55 }
 0x31c   : > { %v1641_v40 = vsel %vm1628_vm5, %v1604_v42, %v1640_v58  ;;  %v1583_v54 = vpack.c.bf16 %v1487_v46, %v1487_v46  ;;  %v1502_v24 = vrot.slane %v1501_v15, 2  ;;  %v1577_v33 = vadd.f32 %v1576_v29, %v1575_v14 }
 0x31d   : > { %v1642_v49 = vsel %vm1630_vm6, %v1605_v31, %v1641_v40  ;;  %v5738_v34 = vpack.c.bf16 %v4986_v1, %v4986_v1  ;;  %v1582_v44 = vpack.c.bf16 %v1478_v28, %v1478_v28  ;;  %v1496_v20 = vadd.f32 %v1495_v13, %v1494_v62 }
 0x31e   : > { %v1643_v18 = vsel %vm1632_vm9, %v1606_v0, %v1642_v49  ;;  %v1503_v57 = vadd.f32 %v1502_v24, %v1501_v15  ;;  %vm1636_vm11 = vcmask 1046534   ;;  %v1593_v35 = vpack.c.bf16 %v1577_v33, %v1577_v33 }
 0x31f   : > { %v1596_v26 = vunpack.c.l.bf16 %v5738_v34  ;;  %v1644_v30 = vsel %vm1634_vm10, %v1607_v21, %v1643_v18  ;;  %vm1638_vm12 = vcmask 1047559   ;;  %v1608_v16 = vunpack.c.l.bf16 %v1592_v17 }
 0x320   : > { %v1504_v37 = vrot.slane %v1503_v57, 1  ;;  %v1599_v19 = vunpack.c.l.bf16 %v1583_v54  ;;  %v1609_v31 = vunpack.c.l.bf16 %v1593_v35  ;;  %v1598_v1 = vunpack.c.l.bf16 %v1582_v44 }
 0x321   : > { %v1629_v51 = vsel %vm1628_vm5, %v1596_v26, %v1627_v41  ;;  %v1584_v2 = vpack.c.bf16 %v1496_v20, %v1496_v20  ;;  %v1645_v62 = vsel %vm1636_vm11, %v1608_v16, %v1644_v30 }
 0x322   : > { %v1631_v50 = vsel %vm1630_vm6, %v1597_v59, %v1629_v51  ;;  %v1505_v39 = vadd.f32 %v1504_v37, %v1503_v57  ;;  %v1646_v46 = vsel %vm1638_vm12, %v1609_v31, %v1645_v62 }
 0x323   : > { %v1633_v14 = vsel %vm1632_vm9, %v1598_v1, %v1631_v50  ;;  %v1696_v22 = vadd.f32 %v4737_v63, %v1646_v46  ;;  %v1600_v42 = vunpack.c.l.bf16 %v1584_v2  ;;  %v5739_v2 = vld [vmem:[#allocation45_spill] sm:$0xff] }
 0x324   : > { %v1585_v55 = vpack.c.bf16 %v1505_v39, %v1505_v39  ;;  %v1635_v38 = vsel %vm1634_vm10, %v1599_v19, %v1633_v14 }
 0x325   : > { %v1702_v36 = vsel %vm1432_vm7, %v1696_v22, -inf  ;;  %v1637_v13 = vsel %vm1636_vm11, %v1600_v42, %v1635_v38 }
 0x326   : > { %v1601_v28 = vunpack.c.l.bf16 %v1585_v55  ;;  %1703 = vmax.xlane.f32.xlu1 %v1702_v36  ;;  %v5740_v55 = vld [vmem:[#allocation47_spill] sm:$0xff] }
 0x327   : > { %v5741_v36 = vld [vmem:[#allocation55_spill] sm:$0xff] }
 0x328   : > { %v1639_v58 = vsel %vm1638_vm12, %v1601_v28, %v1637_v13 }
 0x329   : > { %v1693_v0 = vadd.f32 %v4727_v56, %v1639_v58 }
 0x32b   : > { %v1699_v15 = vsel %vm1432_vm7, %v1693_v0, -inf }
 0x32c   : > { %1700 = vmax.xlane.f32.xlu0 %v1699_v15 }
 0x337   : > { %2067 = vrot.lane.b32.xlu1 %v4686_v23, %s4328_s3 }
 0x33b   : > { %2061 = vrot.lane.b32.xlu1 %v4688_v27, %s4328_s3 }
 0x33f   : > { %1774 = vbcast.lane.c.b16.xlu1 %v4715_v48, 268 }
 0x343   : > { %1806 = vbcast.lane.c.b16.xlu1 %v4712_v47, 268 }
 0x347   : > { %1782 = vbcast.lane.c.b16.xlu1 %v4723_v53, 268 }
 0x34b   : > { %1786 = vbcast.lane.c.b16.xlu1 %v4756_v8, 268 }
 0x34f   : > { %1790 = vbcast.lane.c.b16.xlu1 %v4734_v61, 268 }
 0x353   : > { %1794 = vbcast.lane.c.b16.xlu1 %v4762_v10, 268 }
 0x357   : > { %1798 = vbcast.lane.c.b16.xlu1 %v4743_v4, 268 }
 0x35b   : > { %1802 = vbcast.lane.c.b16.xlu1 %v4768_v12, 268 }
 0x3af   : > { %v1704_v56 = vpop.xlane.xlu1 %1703 }
 0x3b0   : > { %v1706_v63 = vsub.f32 %v1696_v22, %v1704_v56 }
 0x3b2   : > { %v1709_v41 = vmul.f32 1.442695, %v1706_v63 }
 0x3b3   : > { %v2068_v18 = vpop.permute.xlu1 %2067 }
 0x3b4   : > { %v2108_v35 = vsel %vm1649_vm2, %v2068_v18, 0 }
 0x3b5   : > { %v1701_v29 = vpop.xlane.xlu0 %1700 }
 0x3b6   : > { %v1705_v21 = vsub.f32 %v1693_v0, %v1701_v29 }
 0x3b7   : > { %v2062_v16 = vpop.permute.xlu1 %2061 }
 0x3b8   : > { %v1707_v59 = vmul.f32 1.442695, %v1705_v21 }
 0x3ba   : > { %3879 = vpow2.f32 %v1707_v59 }
 0x3bb   : > { %3881 = vpow2.f32 %v1709_v41  ;;  %v1775_v37 = vpop.permute.xlu1 %1774  ;;  %v5742_v41 = vld [vmem:[#allocation53_spill] sm:$0xff] }
 0x3bc   : > { %v1836_v62 = vmul.bf16 %v1775_v37, %v5739_v2 }
 0x3be   : > { %v1852_v14 = vunpack.c.l.bf16 %v1836_v62  ;;  %v1853_v22 = vunpack.c.h.bf16 %v1836_v62 }
 0x3bf   : > { %v1807_v19 = vpop.permute.xlu1 %1806 }
 0x3c0   : > { %v1884_v58 = vsel %vm1432_vm7, %v1852_v14, 0.0  ;;  %v1885_v0 = vsel %vm1434_vm8, %v1853_v22, 0.0 }
 0x3c1   : > { %v1886_v63 = vadd.f32 %v1885_v0, %v1884_v58  ;;  %v5745_v58 = vld [vmem:[#allocation57_spill] sm:$0xff] }
 0x3c3   : > { %v1783_v31 = vpop.permute.xlu1 %1782 }
 0x3c4   : > { %v1838_v38 = vmul.bf16 %v1783_v31, %v5740_v55 }
 0x3c6   : > { %v1856_v15 = vunpack.c.l.bf16 %v1838_v38  ;;  %v1857_v56 = vunpack.c.h.bf16 %v1838_v38 }
 0x3c7   : > { %v3880_v17 = vpop.eup %3879  ;;  %v1787_v39 = vpop.permute.xlu1 %1786 }
 0x3c8   : > { %v1711_v40 = vsel %vm1432_vm7, %v3880_v17, 0.0  ;;  %v3882_v54 = vpop.eup %3881  ;;  %v1839_v28 = vmul.bf16 %v1787_v39, %v5741_v36 }
 0x3c9   : > { %1712 = vadd.xlane.f32.xlu0 %v1711_v40  ;;  %v1714_v24 = vsel %vm1432_vm7, %v3882_v54, 0.0  ;;  %v5743_v40 = vld [vmem:[#allocation44_spill] sm:$0xff] }
 0x3ca   : > { %v1858_v29 = vunpack.c.l.bf16 %v1839_v28  ;;  %v1859_v21 = vunpack.c.h.bf16 %v1839_v28 }
 0x3cb   : > { %v1791_v42 = vpop.permute.xlu1 %1790 }
 0x3cd   : > { %1715 = vadd.xlane.f32.xlu0 %v1714_v24 }
 0x3cf   : > { %v1795_v59 = vpop.permute.xlu1 %1794 }
 0x3d0   : > { %v1841_v0 = vmul.bf16 %v1795_v59, %v5745_v58  ;;  %v5751_v58 = vld [vmem:[#allocation56_spill] sm:$0xff] }
 0x3e3   : > { %2065 = vrot.lane.b32.xlu0 %v4697_v32, %s4328_s3 }
 0x3e7   : > { %1778 = vbcast.lane.c.b16.xlu0 %v4750_v6, 268 }
 0x3eb   : > { %1810 = vbcast.lane.c.b16.xlu0 %v4747_v5, 268 }
 0x3ef   : > { %1814 = vbcast.lane.c.b16.xlu0 %v4721_v52, 268 }
 0x3f3   : > { %1818 = vbcast.lane.c.b16.xlu0 %v4754_v7, 268 }
 0x3f7   : > { %1822 = vbcast.lane.c.b16.xlu0 %v4732_v60, 268 }
 0x3fb   : > { %1826 = vbcast.lane.c.b16.xlu0 %v4760_v9, 268 }
 0x3ff   : > { %1830 = vbcast.lane.c.b16.xlu0 %v4741_v3, 268 }
 0x403   : > { %1834 = vbcast.lane.c.b16.xlu0 %v4766_v11, 268 }
 0x452   : > { %v1713_v33 = vpop.xlane.xlu0 %1712 }
 0x453   : > { %3883 = vrcp.f32 %v1713_v33  ;;  %v1902_v33 = vsel %vm1432_vm7, %v1856_v15, 0.0 }
 0x456   : > { %v1716_v49 = vpop.xlane.xlu0 %1715 }
 0x457   : > { %3885 = vrcp.f32 %v1716_v49  ;;  %v1903_v49 = vsel %vm1434_vm8, %v1857_v56, 0.0  ;;  %v5746_v56 = vld [vmem:[#allocation51_spill] sm:$0xff] }
 0x45a   : > { %v2066_v30 = vpop.permute.xlu0 %2065 }
 0x45b   : > { %v2105_v51 = vsel %vm1649_vm2, %v2066_v30, 0 }
 0x45e   : > { %v1779_v50 = vpop.permute.xlu0 %1778 }
 0x460   : > { %v3884_v34 = vpop.eup %3883 }
 0x461   : > { %v1719_v26 = vmul.f32 %v3884_v34, %v3880_v17  ;;  %v1837_v17 = vmul.bf16 %v1779_v50, %v5742_v41  ;;  %v1887_v34 = vrot.slane %v1886_v63, 4  ;;  %v1799_v50 = vpop.permute.xlu1 %1798 }
 0x462   : > { %v5104_v1 = vpop.permute.xlu0 %1810 }
 0x463   : > { %1721 = vst.msk [vmem:[%s5088_s12] sm:$0xff] %vm1432_vm7, %v1719_v26 }
 0x464   : > { %v3886_v44 = vpop.eup %3885 }
 0x465   : > { %v1720_v20 = vmul.f32 %v3886_v44, %v3882_v54  ;;  %v1844_v54 = vmul.bf16 %v1807_v19, %v5743_v40  ;;  %v1912_v44 = vsel %vm1434_vm8, %v1859_v21, 0.0  ;;  %v1888_v19 = vadd.f32 %v1887_v34, %v1886_v63 }
 0x466   : > { %v5107_v46 = vpop.permute.xlu0 %1814 }
 0x467   : > { %1722 = vst.msk [vmem:[%s5088_s12 + $0x8] sm:$0xff] %vm1432_vm7, %v1720_v20  ;;  %v1723_v57 = vpack.c.bf16 %v1720_v20, %v1719_v26  ;;  %v1911_v26 = vsel %vm1432_vm7, %v1858_v29, 0.0  ;;  %v5744_v20 = vld [vmem:[#allocation49_spill] sm:$0xff]  ;;  %v1868_v30 = vunpack.c.l.bf16 %v1844_v54  ;;  %v1842_v29 = vmul.bf16 %v1799_v50, %v5746_v56 }
 0x468   : > { %v1840_v18 = vmul.bf16 %v1791_v42, %v5744_v20  ;;  %v1913_v37 = vadd.f32 %v1912_v44, %v1911_v26  ;;  %v1862_v26 = vunpack.c.l.bf16 %v1841_v0  ;;  %v1863_v44 = vunpack.c.h.bf16 %v1841_v0 }
 0x469   : > { %3651 = vmatmul.mubr.msk.bf16.vlgmr.msra.gmra.mxu1 %vm1432_vm7, %v1723_v57  ;;  %v1854_v57 = vunpack.c.l.bf16 %v1837_v17  ;;  %v1956_v38 = vsel %vm1432_vm7, %v1868_v30, 0.0  ;;  %v1864_v59 = vunpack.c.l.bf16 %v1842_v29 }
 0x46a   : > { %3655 = vmatpush3.bf16.xpose.msra.mxu1 %v2108_v35  ;;  %3658 = vmatprep.mubr.msk.bf16.mxu1 %vm4326_vm0, %v5731_v25  ;;  %v5111_v13 = vpop.permute.xlu0 %1818  ;;  %v1855_v35 = vunpack.c.h.bf16 %v1837_v17  ;;  %v1860_v62 = vunpack.c.l.bf16 %v1840_v18  ;;  %v1861_v39 = vunpack.c.h.bf16 %v1840_v18  ;;  %v1914_v15 = vrot.slane %v1913_v37, 4 }
 0x46b   : > { %3656 = vmatprep.subr.bf16.mxu1 %v5731_v25  ;;  %v1893_v14 = vsel %vm1432_vm7, %v1854_v57, 0.0  ;;  %v1889_v17 = vrot.slane %v1888_v19, 2 }
 0x46c   : > { %v1894_v22 = vsel %vm1434_vm8, %v1855_v35, 0.0  ;;  %v5134_v57 = vadd.f32 %v1914_v15, %v1913_v37  ;;  %v1865_v35 = vunpack.c.h.bf16 %v1842_v29  ;;  %v1930_v37 = vsel %vm1434_vm8, %v1863_v44, 0.0  ;;  %v5749_v29 = vld [vmem:[#allocation54_spill] sm:$0xff] }
 0x46d   : > { %v1895_v21 = vadd.f32 %v1894_v22, %v1893_v14  ;;  %v5137_v14 = vadd.f32 %v1889_v17, %v1888_v19  ;;  %v5747_v22 = vld [vmem:[#allocation52_spill] sm:$0xff]  ;;  %v1938_v15 = vsel %vm1432_vm7, %v1864_v59, 0.0  ;;  %v1847_v17 = vmul.bf16 %v5111_v13, %v5749_v29  ;;  %v5752_v59 = vld [vmem:[#allocation50_spill] sm:$0xff] }
 0x46e   : > { %v1823_v24 = vpop.permute.xlu0 %1822  ;;  %v1939_v19 = vsel %vm1434_vm8, %v1865_v35, 0.0 }
 0x46f   : > { %v1896_v50 = vrot.slane %v1895_v21, 4  ;;  %v1940_v20 = vadd.f32 %v1939_v19, %v1938_v15  ;;  %v1875_v55 = vunpack.c.h.bf16 %v1847_v17 }
 0x472   : > { %3657 = vmatpush3.bf16.xpose.msra.mxu1 %v2105_v51  ;;  %v1869_v51 = vunpack.c.h.bf16 %v1844_v54  ;;  %v1827_v31 = vpop.permute.xlu0 %1826  ;;  %v1920_v54 = vsel %vm1432_vm7, %v1860_v62, 0.0 }
 0x473   : > { %3678 = vmatprep.subr.bf16.mxu1 %v5731_v25 }
 0x474   : > { %v1957_v28 = vsel %vm1434_vm8, %v1869_v51, 0.0 }
 0x475   : > { %v5128_v63 = vadd.f32 %v1957_v28, %v1956_v38  ;;  %v1929_v38 = vsel %vm1432_vm7, %v1862_v26, 0.0  ;;  %v5748_v28 = vld [vmem:[#allocation46_spill] sm:$0xff] }
 0x476   : > { %v1831_v18 = vpop.permute.xlu0 %1830 }
 0x479   : > { %3659 = vmatmul.mubr.msk.bf16.vlgmr.msra.gmra.mxu1 %vm1649_vm2, %v2062_v16  ;;  %v1904_v16 = vadd.f32 %v1903_v49, %v1902_v33  ;;  %v1921_v33 = vsel %vm1434_vm8, %v1861_v39, 0.0  ;;  %v1803_v49 = vpop.permute.xlu1 %1802  ;;  %v1845_v39 = vmul.bf16 %v5104_v1, %v5747_v22  ;;  %v1874_v22 = vunpack.c.l.bf16 %v1847_v17 }
 0x47a   : > { %3682 = vmatprep.mubr.msk.bf16.mxu1 %vm4326_vm0, %v5731_v25  ;;  %v1922_v30 = vadd.f32 %v1921_v33, %v1920_v54  ;;  %v1843_v51 = vmul.bf16 %v1803_v49, %v4988_v45  ;;  %v1897_v33 = vadd.f32 %v1896_v50, %v1895_v21  ;;  %v5750_v49 = vld [vmem:[#allocation48_spill] sm:$0xff]  ;;  %v1835_v26 = vpop.permute.xlu0 %1834  ;;  %v1931_v45 = vadd.f32 %v1930_v37, %v1929_v38 }
 0x47b   : > { %v1905_v42 = vrot.slane %v1904_v16, 4  ;;  %v1848_v62 = vmul.bf16 %v1823_v24, %v5750_v49  ;;  %v1870_v44 = vunpack.c.l.bf16 %v1845_v39  ;;  %v1871_v56 = vunpack.c.h.bf16 %v1845_v39 }
 0x47c   : > { %v1923_v54 = vrot.slane %v1922_v30, 4  ;;  %v1866_v1 = vunpack.c.l.bf16 %v1843_v51  ;;  %v1867_v35 = vunpack.c.h.bf16 %v1843_v51  ;;  %v1851_v13 = vmul.bf16 %v1835_v26, %v4982_v43 }
 0x47d   : > { %v5132_v34 = vadd.f32 %v1905_v42, %v1904_v16  ;;  %v1846_v42 = vmul.bf16 %v5107_v46, %v5748_v28  ;;  %v1849_v46 = vmul.bf16 %v1827_v31, %v5751_v58  ;;  %v1850_v28 = vmul.bf16 %v1831_v18, %v5752_v59 }
 0x47e   : > { %v1947_v21 = vsel %vm1432_vm7, %v1866_v1, 0.0  ;;  %v1898_v50 = vrot.slane %v1897_v33, 2  ;;  %v1876_v24 = vunpack.c.l.bf16 %v1848_v62  ;;  %v1877_v49 = vunpack.c.h.bf16 %v1848_v62 }
 0x47f   : > { %v1907_v16 = vrot.slane %v5132_v34, 2  ;;  %v1872_v0 = vunpack.c.l.bf16 %v1846_v42  ;;  %v1873_v36 = vunpack.c.h.bf16 %v1846_v42  ;;  %v1965_v38 = vsel %vm1432_vm7, %v1870_v44, 0.0 }
 0x480   : > { %v1966_v39 = vsel %vm1434_vm8, %v1871_v56, 0.0  ;;  %v1878_v31 = vunpack.c.l.bf16 %v1849_v46  ;;  %v1879_v37 = vunpack.c.h.bf16 %v1849_v46  ;;  %v1880_v51 = vunpack.c.l.bf16 %v1850_v28 }
 0x481   : > { %v1974_v42 = vsel %vm1432_vm7, %v1872_v0, 0.0  ;;  %v1975_v18 = vsel %vm1434_vm8, %v1873_v36, 0.0  ;;  %v1881_v15 = vunpack.c.h.bf16 %v1850_v28  ;;  %v1983_v19 = vsel %vm1432_vm7, %v1874_v22, 0.0 }
 0x482   : > { %v1984_v17 = vsel %vm1434_vm8, %v1875_v55, 0.0  ;;  %v1882_v1 = vunpack.c.l.bf16 %v1851_v13  ;;  %v1883_v26 = vunpack.c.h.bf16 %v1851_v13  ;;  %v1899_v43 = vadd.f32 %v1898_v50, %v1897_v33 }
 0x483   : > { %v1967_v62 = vadd.f32 %v1966_v39, %v1965_v38  ;;  %v1992_v44 = vsel %vm1432_vm7, %v1876_v24, 0.0  ;;  %v1993_v56 = vsel %vm1434_vm8, %v1877_v49, 0.0  ;;  %v1948_v46 = vsel %vm1434_vm8, %v1867_v35, 0.0 }
 0x484   : > { %v1976_v59 = vadd.f32 %v1975_v18, %v1974_v42  ;;  %v2001_v0 = vsel %vm1432_vm7, %v1878_v31, 0.0  ;;  %v2002_v36 = vsel %vm1434_vm8, %v1879_v37, 0.0  ;;  %v1932_v28 = vrot.slane %v1931_v45, 4 }
 0x485   : > { %v1985_v58 = vadd.f32 %v1984_v17, %v1983_v19  ;;  %v2010_v22 = vsel %vm1432_vm7, %v1880_v51, 0.0  ;;  %v2011_v55 = vsel %vm1434_vm8, %v1881_v15, 0.0  ;;  %v1924_v13 = vadd.f32 %v1923_v54, %v1922_v30 }
 0x486   : > { %v1994_v33 = vadd.f32 %v1993_v56, %v1992_v44  ;;  %v2019_v50 = vsel %vm1432_vm7, %v1882_v1, 0.0  ;;  %v2020_v24 = vsel %vm1434_vm8, %v1883_v26, 0.0  ;;  %v1949_v49 = vadd.f32 %v1948_v46, %v1947_v21 }
 0x487   : > { %v1900_v38 = vrot.slane %v1899_v43, 1  ;;  %v1968_v35 = vrot.slane %v1967_v62, 4  ;;  %v2003_v39 = vadd.f32 %v2002_v36, %v2001_v0  ;;  %v1908_v31 = vadd.f32 %v1907_v16, %v5132_v34 }
 0x488   : > { %v1941_v42 = vrot.slane %v1940_v20, 4  ;;  %v1977_v37 = vrot.slane %v1976_v59, 4  ;;  %v2012_v18 = vadd.f32 %v2011_v55, %v2010_v22  ;;  %v1891_v19 = vrot.slane %v5137_v14, 1 }
 0x489   : > { %v1933_v51 = vadd.f32 %v1932_v28, %v1931_v45  ;;  %v1986_v17 = vrot.slane %v1985_v58, 4  ;;  %v2021_v15 = vadd.f32 %v2020_v24, %v2019_v50  ;;  %v5753_v30 = vrot.slane %v5128_v63, 4 }
 0x48a   : > { %v5754_v21 = vrot.slane %v5134_v57, 2  ;;  %v1925_v26 = vrot.slane %v1924_v13, 2  ;;  %v1995_v44 = vrot.slane %v1994_v33, 4  ;;  %v1950_v56 = vrot.slane %v1949_v49, 4 }
 0x48b   : > { %v1960_v54 = vadd.f32 %v5753_v30, %v5128_v63  ;;  %v1901_v34 = vadd.f32 %v1900_v38, %v1899_v43  ;;  %v1969_v16 = vadd.f32 %v1968_v35, %v1967_v62  ;;  %v2004_v46 = vrot.slane %v2003_v39, 4 }
 0x48c   : > { %v1917_v1 = vadd.f32 %v5754_v21, %v5134_v57  ;;  %v1909_v0 = vrot.slane %v1908_v31, 1  ;;  %v1942_v36 = vadd.f32 %v1941_v42, %v1940_v20  ;;  %v1978_v22 = vadd.f32 %v1977_v37, %v1976_v59 }
 0x48d   : > { %v2013_v45 = vrot.slane %v2012_v18, 4  ;;  %v1892_v28 = vadd.f32 %v1891_v19, %v5137_v14  ;;  %v1934_v55 = vrot.slane %v1933_v51, 2  ;;  %v1987_v50 = vadd.f32 %v1986_v17, %v1985_v58 }
 0x48e   : > { %v2022_v24 = vrot.slane %v2021_v15, 4  ;;  %v1961_v63 = vrot.slane %v1960_v54, 2  ;;  %v1918_v30 = vrot.slane %v1917_v1, 1  ;;  %v1926_v29 = vadd.f32 %v1925_v26, %v1924_v13 }
 0x48f   : > { %v1996_v40 = vadd.f32 %v1995_v44, %v1994_v33  ;;  %v1951_v57 = vadd.f32 %v1950_v56, %v1949_v49  ;;  %v2029_v21 = vpack.c.bf16 %v1901_v34, %v1901_v34  ;;  %v1970_v41 = vrot.slane %v1969_v16, 2 }
 0x490   : > { %v2005_v2 = vadd.f32 %v2004_v46, %v2003_v39  ;;  %v1910_v43 = vadd.f32 %v1909_v0, %v1908_v31  ;;  %v1943_v62 = vrot.slane %v1942_v36, 2  ;;  %v1979_v38 = vrot.slane %v1978_v22, 2 }
 0x491   : > { %v2014_v35 = vadd.f32 %v2013_v45, %v2012_v18  ;;  %v2028_v20 = vpack.c.bf16 %v1892_v28, %v1892_v28  ;;  %v1935_v59 = vadd.f32 %v1934_v55, %v1933_v51  ;;  %v1988_v42 = vrot.slane %v1987_v50, 2 }
 0x492   : > { %v2023_v37 = vadd.f32 %v2022_v24, %v2021_v15  ;;  %v1962_v14 = vadd.f32 %v1961_v63, %v1960_v54  ;;  %v1919_v19 = vadd.f32 %v1918_v30, %v1917_v1  ;;  %v1927_v58 = vrot.slane %v1926_v29, 1 }
 0x493   : > { %v1997_v17 = vrot.slane %v1996_v40, 2  ;;  %v1952_v25 = vrot.slane %v1951_v57, 2  ;;  %v2045_v12 = vunpack.c.l.bf16 %v2029_v21  ;;  %v1971_v13 = vadd.f32 %v1970_v41, %v1969_v16 }
 0x494   : > { %v2006_v33 = vrot.slane %v2005_v2, 2  ;;  %v2030_v49 = vpack.c.bf16 %v1910_v43, %v1910_v43  ;;  %v1944_v26 = vadd.f32 %v1943_v62, %v1942_v36  ;;  %v1980_v44 = vadd.f32 %v1979_v38, %v1978_v22 }
 0x495   : > { %v2015_v39 = vrot.slane %v2014_v35, 2  ;;  %v2044_v31 = vunpack.c.l.bf16 %v2028_v20  ;;  %v1936_v56 = vrot.slane %v1935_v59, 1  ;;  %v1989_v34 = vadd.f32 %v1988_v42, %v1987_v50 }
 0x496   : > { %v2024_v18 = vrot.slane %v2023_v37, 2  ;;  %v1963_v46 = vrot.slane %v1962_v14, 1  ;;  %v2031_v51 = vpack.c.bf16 %v1919_v19, %v1919_v19  ;;  %v1928_v0 = vadd.f32 %v1927_v58, %v1926_v29 }
 0x497   : > { %v1998_v15 = vadd.f32 %v1997_v17, %v1996_v40  ;;  %v1972_v54 = vrot.slane %v1971_v13, 1  ;;  %v2007_v1 = vadd.f32 %v2006_v33, %v2005_v2  ;;  %v1953_v45 = vadd.f32 %v1952_v25, %v1951_v57 }
 0x498   : > { %v2085_v28 = vsel %vm1626_vm4, %v2045_v12, %v2044_v31  ;;  %v2046_v55 = vunpack.c.l.bf16 %v2030_v49  ;;  %v1981_v41 = vrot.slane %v1980_v44, 1  ;;  %v2016_v16 = vadd.f32 %v2015_v39, %v2014_v35 }
 0x499   : > { %v1945_v24 = vrot.slane %v1944_v26, 1  ;;  %v1990_v36 = vrot.slane %v1989_v34, 1  ;;  %v1937_v63 = vadd.f32 %v1936_v56, %v1935_v59  ;;  %v2025_v30 = vadd.f32 %v2024_v18, %v2023_v37 }
 0x49a   : > { %v2032_v50 = vpack.c.bf16 %v1928_v0, %v1928_v0  ;;  %v1999_v21 = vrot.slane %v1998_v15, 1  ;;  %v2086_v43 = vsel %vm1628_vm5, %v2046_v55, %v2085_v28  ;;  %v2047_v29 = vunpack.c.l.bf16 %v2031_v51 }
 0x49b   : > { %v1973_v40 = vadd.f32 %v1972_v54, %v1971_v13  ;;  %v2008_v62 = vrot.slane %v2007_v1, 1  ;;  %v1954_v25 = vrot.slane %v1953_v45, 1  ;;  %v1964_v57 = vadd.f32 %v1963_v46, %v1962_v14 }
 0x49c   : > { %v1982_v12 = vadd.f32 %v1981_v41, %v1980_v44  ;;  %v1946_v38 = vadd.f32 %v1945_v24, %v1944_v26  ;;  %v2017_v20 = vrot.slane %v2016_v16, 1  ;;  %v1991_v35 = vadd.f32 %v1990_v36, %v1989_v34 }
 0x49d   : > { %v2033_v19 = vpack.c.bf16 %v1937_v63, %v1937_v63  ;;  %v2087_v59 = vsel %vm1630_vm6, %v2047_v29, %v2086_v43  ;;  %v2026_v37 = vrot.slane %v2025_v30, 1  ;;  %v2048_v58 = vunpack.c.l.bf16 %v2032_v50 }
 0x49e   : > { %v2000_v17 = vadd.f32 %v1999_v21, %v1998_v15  ;;  %v2037_v33 = vpack.c.bf16 %v1973_v40, %v1973_v40  ;;  %v1955_v39 = vadd.f32 %v1954_v25, %v1953_v45  ;;  %v2009_v13 = vadd.f32 %v2008_v62, %v2007_v1 }
 0x49f   : > { %v2038_v31 = vpack.c.bf16 %v1982_v12, %v1982_v12  ;;  %v2034_v56 = vpack.c.bf16 %v1946_v38, %v1946_v38  ;;  %v2088_v14 = vsel %vm1632_vm9, %v2048_v58, %v2087_v59  ;;  %v2018_v44 = vadd.f32 %v2017_v20, %v2016_v16 }
 0x4a0   : > { %v2036_v26 = vpack.c.bf16 %v1964_v57, %v1964_v57  ;;  %v2039_v18 = vpack.c.bf16 %v1991_v35, %v1991_v35  ;;  %v2049_v34 = vunpack.c.l.bf16 %v2033_v19  ;;  %v2027_v46 = vadd.f32 %v2026_v37, %v2025_v30 }
 0x4a1   : > { %v2040_v51 = vpack.c.bf16 %v2000_v17, %v2000_v17  ;;  %v2053_v0 = vunpack.c.l.bf16 %v2037_v33  ;;  %v2035_v54 = vpack.c.bf16 %v1955_v39, %v1955_v39  ;;  %v2041_v55 = vpack.c.bf16 %v2009_v13, %v2009_v13 }
 0x4a2   : > { %v2089_v28 = vsel %vm1634_vm10, %v2049_v34, %v2088_v14  ;;  %v2054_v15 = vunpack.c.l.bf16 %v2038_v31  ;;  %v2050_v41 = vunpack.c.l.bf16 %v2034_v56  ;;  %v2042_v24 = vpack.c.bf16 %v2018_v44, %v2018_v44 }
 0x4a3   : > { %v2052_v45 = vunpack.c.l.bf16 %v2036_v26  ;;  %v2055_v1 = vunpack.c.l.bf16 %v2039_v18  ;;  %v2043_v36 = vpack.c.bf16 %v2027_v46, %v2027_v46  ;;  %v2056_v63 = vunpack.c.l.bf16 %v2040_v51  ;;  %v5758_v51 = vld [vmem:[#allocation42_spill] sm:$0xff] }
 0x4a4   : > { %v2090_v50 = vsel %vm1636_vm11, %v2050_v41, %v2089_v28  ;;  %v2051_v16 = vunpack.c.l.bf16 %v2035_v54  ;;  %v2057_v21 = vunpack.c.l.bf16 %v2041_v55  ;;  %v2058_v30 = vunpack.c.l.bf16 %v2042_v24 }
 0x4a5   : > { %v2092_v43 = vsel %vm1626_vm4, %v2053_v0, %v2052_v45  ;;  %v5759_v0 = vld [vmem:[#allocation41_spill] sm:$0xff]  ;;  %v5760_v24 = vmov 0.0  }
 0x4a6   : > { %v2093_v29 = vsel %vm1628_vm5, %v2054_v15, %v2092_v43  ;;  %v2091_v40 = vsel %vm1638_vm12, %v2051_v16, %v2090_v50 }
 0x4a7   : > { %v2094_v25 = vsel %vm1630_vm6, %v2055_v1, %v2093_v29 }
 0x4a8   : > { %v2095_v12 = vsel %vm1632_vm9, %v2056_v63, %v2094_v25 }
 0x4a9   : > { %v2096_v20 = vsel %vm1634_vm10, %v2057_v21, %v2095_v12 }
 0x4aa   : > { %v2097_v19 = vsel %vm1636_vm11, %v2058_v30, %v2096_v20 }
 0x529   : > { %v5182_v22 = vpop.f32.mrf.mxu1 }
 0x52a   : > { %5755 = vst [vmem:[#allocation60_spill] sm:$0xff] %v5182_v22  ;;  %v5772_v22 = vld [vmem:[#allocation59_spill] sm:$0xff] }
 0x52b   : > { %v3652_v2 = vpop.f32.mrf.mxu1 }
 0x52c   : > { %v2059_v2 = vunpack.c.l.bf16 %v2043_v36 }
 0x52d   : > { %v5185_v42 = vpop.f32.mrf.mxu1 }
 0x52e   : > { %5756 = vst [vmem:[#allocation61_spill] sm:$0xff] %v5185_v42  ;;  %v2098_v59 = vsel %vm1638_vm12, %v2059_v2, %v2097_v19  ;;  %v5771_v42 = vld [vmem:[#allocation51_spill] sm:$0xff] }
 0x52f   : > { %v3653_v49 = vpop.f32.mrf.mxu1 }
 0x530   : > { %v5757_v49 = vld [vmem:[#allocation43_spill] sm:$0xff] }
 0x539   : > { %v2144_v62 = vpop.f32.mrf.mxu1 }
 0x53a   : > { %v2145_v57 = vadd.f32 %v2144_v62, %v2091_v40 }
 0x53b   : > { %v3660_v38 = vpop.f32.mrf.mxu1 }
 0x53c   : > { %v2151_v35 = vsel %vm1432_vm7, %v2145_v57, -inf }
 0x53d   : > { %2152 = vmax.xlane.f32.xlu1 %v2151_v35  ;;  %v2147_v37 = vpop.f32.mrf.mxu1  ;;  %v5761_v35 = vld [vmem:[#allocation45_spill] sm:$0xff] }
 0x53e   : > { %v2148_v58 = vadd.f32 %v2147_v37, %v2098_v59 }
 0x53f   : > { %v3661_v17 = vpop.f32.mrf.mxu1 }
 0x540   : > { %v2154_v33 = vsel %vm1432_vm7, %v2148_v58, -inf  ;;  %v5762_v17 = vld [vmem:[#allocation53_spill] sm:$0xff] }
 0x541   : > { %2155 = vmax.xlane.f32.xlu0 %v2154_v33 }
 0x54e   : > { %2179 = vrot.lane.b32.xlu1 %v5757_v49, %s4328_s3 }
 0x5c6   : > { %v2153_v39 = vpop.xlane.xlu1 %2152 }
 0x5c7   : > { %v2157_v13 = vsub.f32 %v2145_v57, %v2153_v39  ;;  %v5763_v39 = vld [vmem:[#allocation44_spill] sm:$0xff] }
 0x5c9   : > { %v2159_v31 = vmul.f32 1.442695, %v2157_v13 }
 0x5ca   : > { %v2156_v56 = vpop.xlane.xlu0 %2155  ;;  %v2180_v54 = vpop.permute.xlu1 %2179 }
 0x5cb   : > { %3887 = vpow2.f32 %v2159_v31  ;;  %v2158_v14 = vsub.f32 %v2148_v58, %v2156_v56  ;;  %v5764_v56 = vld [vmem:[#allocation47_spill] sm:$0xff] }
 0x5cd   : > { %v2161_v44 = vmul.f32 1.442695, %v2158_v14 }
 0x5cf   : > { %3889 = vpow2.f32 %v2161_v44 }
 0x5d8   : > { %v3888_v26 = vpop.eup %3887 }
 0x5d9   : > { %v2163_v18 = vsel %vm1432_vm7, %v3888_v26, 0.0 }
 0x5da   : > { %2164 = vadd.xlane.f32.xlu0 %v2163_v18 }
 0x5dc   : > { %v3890_v34 = vpop.eup %3889 }
 0x5dd   : > { %v2166_v46 = vsel %vm1432_vm7, %v3890_v34, 0.0 }
 0x5de   : > { %2167 = vadd.xlane.f32.xlu1 %v2166_v46 }
 0x5ef   : > { %2523 = vrot.lane.b32.xlu1 %v4686_v23, %s4329_s1 }
 0x5f0   : > { %2181 = vrot.lane.b32.xlu0 %v5758_v51, %s4328_s3 }
 0x5f3   : > { %2519 = vrot.lane.b32.xlu1 %v4688_v27, %s4329_s1 }
 0x5f4   : > { %2521 = vrot.lane.b32.xlu0 %v4697_v32, %s4329_s1 }
 0x5f7   : > { %2237 = vbcast.lane.c.b16.xlu1 %v4750_v6, 280 }
 0x5f8   : > { %2233 = vbcast.lane.c.b16.xlu0 %v4715_v48, 280 }
 0x5fb   : > { %2269 = vbcast.lane.c.b16.xlu1 %v4747_v5, 280 }
 0x5fc   : > { %2265 = vbcast.lane.c.b16.xlu0 %v4712_v47, 280 }
 0x5ff   : > { %2273 = vbcast.lane.c.b16.xlu1 %v4721_v52, 280 }
 0x600   : > { %2241 = vbcast.lane.c.b16.xlu0 %v4723_v53, 280 }
 0x603   : > { %2277 = vbcast.lane.c.b16.xlu1 %v4754_v7, 280 }
 0x604   : > { %2245 = vbcast.lane.c.b16.xlu0 %v4756_v8, 280 }
 0x607   : > { %2281 = vbcast.lane.c.b16.xlu1 %v4732_v60, 280 }
 0x608   : > { %2249 = vbcast.lane.c.b16.xlu0 %v4734_v61, 280 }
 0x60b   : > { %2285 = vbcast.lane.c.b16.xlu1 %v4760_v9, 280 }
 0x60c   : > { %2253 = vbcast.lane.c.b16.xlu0 %v4762_v10, 280 }
 0x60f   : > { %2289 = vbcast.lane.c.b16.xlu1 %v4741_v3, 280 }
 0x610   : > { %2257 = vbcast.lane.c.b16.xlu0 %v4743_v4, 280 }
 0x613   : > { %2293 = vbcast.lane.c.b16.xlu1 %v4766_v11, 280 }
 0x614   : > { %2261 = vbcast.lane.c.b16.xlu0 %v5759_v0, 280 }
 0x663   : > { %v2165_v28 = vpop.xlane.xlu0 %2164 }
 0x664   : > { %3891 = vrcp.f32 %v2165_v28 }
 0x667   : > { %v2168_v55 = vpop.xlane.xlu1 %2167  ;;  %v2182_v15 = vpop.permute.xlu0 %2181 }
 0x668   : > { %3893 = vrcp.f32 %v2168_v55  ;;  %v2188_v41 = vsel %vm1727_vm3, %v2182_v15, 0  ;;  %v5765_v55 = vld [vmem:[#allocation52_spill] sm:$0xff] }
 0x669   : > { %3663 = vmatpush3.bf16.msra.mxu0 %v2188_v41 }
 0x66a   : > { %3664 = vmatprep.subr.bf16.mxu0 %v5760_v24 }
 0x66b   : > { %v2524_v50 = vpop.permute.xlu1 %2523  ;;  %v2522_v43 = vpop.permute.xlu0 %2521 }
 0x66c   : > { %v2564_v21 = vsel %vm1649_vm2, %v2524_v50, 0  ;;  %v2561_v30 = vsel %vm1649_vm2, %v2522_v43, 0 }
 0x66d   : > { %3665 = vmatpush3.bf16.msra.mxu0 %v2180_v54 }
 0x66e   : > { %3670 = vmatprep.subr.bf16.mxu0 %v5760_v24 }
 0x66f   : > { %v2520_v29 = vpop.permute.xlu1 %2519  ;;  %v2234_v40 = vpop.permute.xlu0 %2233 }
 0x670   : > { %v2295_v19 = vmul.bf16 %v2234_v40, %v5761_v35 }
 0x671   : > { %v3892_v45 = vpop.eup %3891 }
 0x672   : > { %v2171_v1 = vmul.f32 %v3892_v45, %v3888_v26  ;;  %v2311_v37 = vunpack.c.l.bf16 %v2295_v19  ;;  %v2312_v58 = vunpack.c.h.bf16 %v2295_v19 }
 0x673   : > { %v2238_v62 = vpop.permute.xlu1 %2237  ;;  %v2266_v2 = vpop.permute.xlu0 %2265 }
 0x674   : > { %3545 = vst.msk [vmem:[%s5088_s12 + $0x10] sm:$0xff] %vm1432_vm7, %v2171_v1  ;;  %v2296_v33 = vmul.bf16 %v2238_v62, %v5762_v17  ;;  %v2303_v13 = vmul.bf16 %v2266_v2, %v5763_v39  ;;  %v2343_v26 = vsel %vm1432_vm7, %v2311_v37, 0.0  ;;  %v2344_v18 = vsel %vm1434_vm8, %v2312_v58, 0.0  ;;  %v5768_v58 = vld [vmem:[#allocation49_spill] sm:$0xff]  ;;  %v5775_v39 = vld [vmem:[#allocation50_spill] sm:$0xff] }
 0x675   : > { %v3894_v36 = vpop.eup %3893 }
 0x676   : > { %v2172_v63 = vmul.f32 %v3894_v36, %v3890_v34  ;;  %v2313_v34 = vunpack.c.l.bf16 %v2296_v33  ;;  %v2314_v46 = vunpack.c.h.bf16 %v2296_v33  ;;  %v2327_v54 = vunpack.c.l.bf16 %v2303_v13 }
 0x677   : > { %v2270_v25 = vpop.permute.xlu1 %2269  ;;  %v2242_v57 = vpop.permute.xlu0 %2241  ;;  %v2328_v28 = vunpack.c.h.bf16 %v2303_v13 }
 0x678   : > { %3546 = vst.msk [vmem:[%s5088_s12 + $0x18] sm:$0xff] %vm1432_vm7, %v2172_v63  ;;  %v2176_v16 = vpack.c.bf16 %v2172_v63, %v2171_v1  ;;  %v2297_v14 = vmul.bf16 %v2242_v57, %v5764_v56  ;;  %v2304_v15 = vmul.bf16 %v2270_v25, %v5765_v55  ;;  %v2345_v1 = vadd.f32 %v2344_v18, %v2343_v26  ;;  %v5767_v57 = vld [vmem:[#allocation55_spill] sm:$0xff] }
 0x679   : > { %v2352_v63 = vsel %vm1432_vm7, %v2313_v34, 0.0  ;;  %v2353_v50 = vsel %vm1434_vm8, %v2314_v46, 0.0 }
 0x67a   : > { %3667 = vmatmul.mubr.msk.bf16.vlgmr.msra.gmra.mxu0 %vm1432_vm7, %v2176_v16  ;;  %v2315_v41 = vunpack.c.l.bf16 %v2297_v14  ;;  %v2316_v45 = vunpack.c.h.bf16 %v2297_v14  ;;  %v2415_v16 = vsel %vm1432_vm7, %v2327_v54, 0.0  ;;  %v2329_v43 = vunpack.c.l.bf16 %v2304_v15 }
 0x67b   : > { %3671 = vmatpush3.bf16.xpose.msra.mxu0 %v2564_v21  ;;  %3674 = vmatprep.mubr.msk.bf16.mxu0 %vm4326_vm0, %v5760_v24  ;;  %v2274_v12 = vpop.permute.xlu1 %2273  ;;  %v2246_v38 = vpop.permute.xlu0 %2245  ;;  %v2416_v21 = vsel %vm1434_vm8, %v2328_v28, 0.0  ;;  %v2330_v62 = vunpack.c.h.bf16 %v2304_v15  ;;  %v2346_v37 = vrot.slane %v2345_v1, 4  ;;  %v5262_v13 = vadd.f32 %v2353_v50, %v2352_v63  ;;  %v5769_v15 = vld [vmem:[#allocation54_spill] sm:$0xff] }
 0x67c   : > { %3672 = vmatprep.subr.bf16.mxu0 %v5760_v24  ;;  %v2361_v2 = vsel %vm1432_vm7, %v2315_v41, 0.0  ;;  %v2362_v25 = vsel %vm1434_vm8, %v2316_v45, 0.0  ;;  %v2298_v19 = vmul.bf16 %v2246_v38, %v5767_v57  ;;  %v5264_v14 = vadd.f32 %v2416_v21, %v2415_v16 }
 0x67d   : > { %v2424_v26 = vsel %vm1432_vm7, %v2329_v43, 0.0  ;;  %v5267_v18 = vadd.f32 %v2362_v25, %v2361_v2  ;;  %v2425_v46 = vsel %vm1434_vm8, %v2330_v62, 0.0  ;;  %v5271_v38 = vadd.f32 %v2346_v37, %v2345_v1  ;;  %v5770_v43 = vld [vmem:[#allocation57_spill] sm:$0xff] }
 0x67e   : > { %v2317_v54 = vunpack.c.l.bf16 %v2298_v19  ;;  %v2318_v28 = vunpack.c.h.bf16 %v2298_v19  ;;  %v2355_v50 = vrot.slane %v5262_v13, 4  ;;  %v5276_v25 = vadd.f32 %v2425_v46, %v2424_v26  ;;  %v5773_v26 = vld [vmem:[#allocation48_spill] sm:$0xff] }
 0x67f   : > { %v2278_v20 = vpop.permute.xlu1 %2277  ;;  %v2250_v59 = vpop.permute.xlu0 %2249  ;;  %v2364_v62 = vrot.slane %v5267_v18, 4 }
 0x680   : > { %v2299_v33 = vmul.bf16 %v2250_v59, %v5768_v58  ;;  %v2306_v41 = vmul.bf16 %v2278_v20, %v5769_v15  ;;  %v2370_v1 = vsel %vm1432_vm7, %v2317_v54, 0.0 }
 0x682   : > { %v2319_v59 = vunpack.c.l.bf16 %v2299_v33  ;;  %v2320_v21 = vunpack.c.h.bf16 %v2299_v33  ;;  %v2333_v37 = vunpack.c.l.bf16 %v2306_v41  ;;  %v2334_v33 = vunpack.c.h.bf16 %v2306_v41 }
 0x683   : > { %3673 = vmatpush3.bf16.xpose.msra.mxu0 %v2561_v30  ;;  %v2282_v31 = vpop.permute.xlu1 %2281  ;;  %v2254_v44 = vpop.permute.xlu0 %2253  ;;  %v5766_v30 = vld [vmem:[#allocation46_spill] sm:$0xff] }
 0x684   : > { %3694 = vmatprep.subr.bf16.mxu0 %v5760_v24  ;;  %v2300_v2 = vmul.bf16 %v2254_v44, %v5770_v43  ;;  %v2379_v44 = vsel %vm1432_vm7, %v2319_v59, 0.0  ;;  %v2307_v46 = vmul.bf16 %v2282_v31, %v5773_v26  ;;  %v2380_v55 = vsel %vm1434_vm8, %v2320_v21, 0.0 }
 0x685   : > { %v2443_v31 = vsel %vm1434_vm8, %v2334_v33, 0.0  ;;  %v2381_v26 = vadd.f32 %v2380_v55, %v2379_v44 }
 0x686   : > { %v2322_v43 = vunpack.c.h.bf16 %v2300_v2  ;;  %v2335_v57 = vunpack.c.l.bf16 %v2307_v46  ;;  %v2336_v21 = vunpack.c.h.bf16 %v2307_v46 }
 0x687   : > { %v2286_v36 = vpop.permute.xlu1 %2285  ;;  %v2258_v40 = vpop.permute.xlu0 %2257  ;;  %v2382_v56 = vrot.slane %v2381_v26, 4 }
 0x688   : > { %v2301_v20 = vmul.bf16 %v2258_v40, %v5771_v42  ;;  %v5774_v40 = vld [vmem:[#allocation56_spill] sm:$0xff]  ;;  %v2451_v46 = vsel %vm1432_vm7, %v2335_v57, 0.0 }
 0x689   : > { %v2308_v42 = vmul.bf16 %v2286_v36, %v5774_v40  ;;  %v2389_v36 = vsel %vm1434_vm8, %v2322_v43, 0.0 }
 0x68a   : > { %3675 = vmatmul.mubr.msk.bf16.vlgmr.msra.gmra.mxu0 %vm1649_vm2, %v2520_v29  ;;  %v2305_v29 = vmul.bf16 %v2274_v12, %v5766_v30  ;;  %v2323_v58 = vunpack.c.l.bf16 %v2301_v20 }
 0x68b   : > { %3698 = vmatprep.mubr.msk.bf16.mxu0 %vm4326_vm0, %v5760_v24  ;;  %v2290_v34 = vpop.permute.xlu1 %2289  ;;  %v2262_v63 = vpop.permute.xlu0 %2261 }
 0x68c   : > { %v2331_v12 = vunpack.c.l.bf16 %v2305_v29  ;;  %v2332_v45 = vunpack.c.h.bf16 %v2305_v29  ;;  %v2371_v29 = vsel %vm1434_vm8, %v2318_v28, 0.0  ;;  %v2302_v15 = vmul.bf16 %v2262_v63, %v5772_v22  ;;  %v5776_v22 = vld [vmem:[#allocation58_spill] sm:$0xff] }
 0x68d   : > { %v2372_v54 = vadd.f32 %v2371_v29, %v2370_v1  ;;  %v2324_v28 = vunpack.c.h.bf16 %v2301_v20  ;;  %v2309_v17 = vmul.bf16 %v2290_v34, %v5775_v39  ;;  %v2442_v63 = vsel %vm1432_vm7, %v2333_v37, 0.0 }
 0x68e   : > { %v2433_v19 = vsel %vm1432_vm7, %v2331_v12, 0.0  ;;  %v2434_v16 = vsel %vm1434_vm8, %v2332_v45, 0.0  ;;  %v2321_v12 = vunpack.c.l.bf16 %v2300_v2  ;;  %v2325_v45 = vunpack.c.l.bf16 %v2302_v15 }
 0x68f   : > { %v2294_v30 = vpop.permute.xlu1 %2293  ;;  %v2326_v41 = vunpack.c.h.bf16 %v2302_v15  ;;  %v2337_v1 = vunpack.c.l.bf16 %v2308_v42  ;;  %v2338_v29 = vunpack.c.h.bf16 %v2308_v42  ;;  %v2397_v20 = vsel %vm1432_vm7, %v2323_v58, 0.0 }
 0x690   : > { %v2310_v59 = vmul.bf16 %v2294_v30, %v5776_v22  ;;  %v2388_v2 = vsel %vm1432_vm7, %v2321_v12, 0.0  ;;  %v2398_v34 = vsel %vm1434_vm8, %v2324_v28, 0.0  ;;  %v2339_v37 = vunpack.c.l.bf16 %v2309_v17 }
 0x691   : > { %v2340_v39 = vunpack.c.h.bf16 %v2309_v17  ;;  %v2406_v15 = vsel %vm1432_vm7, %v2325_v45, 0.0  ;;  %v2407_v30 = vsel %vm1434_vm8, %v2326_v41, 0.0  ;;  %v2435_v44 = vadd.f32 %v2434_v16, %v2433_v19 }
 0x692   : > { %v2341_v33 = vunpack.c.l.bf16 %v2310_v59  ;;  %v2342_v55 = vunpack.c.h.bf16 %v2310_v59  ;;  %v2452_v12 = vsel %vm1434_vm8, %v2336_v21, 0.0  ;;  %v2390_v43 = vadd.f32 %v2389_v36, %v2388_v2 }
 0x693   : > { %v2373_v22 = vrot.slane %v2372_v54, 4  ;;  %v2460_v42 = vsel %vm1432_vm7, %v2337_v1, 0.0  ;;  %v2461_v58 = vsel %vm1434_vm8, %v2338_v29, 0.0  ;;  %v2399_v28 = vadd.f32 %v2398_v34, %v2397_v20 }
 0x694   : > { %v2444_v40 = vadd.f32 %v2443_v31, %v2442_v63  ;;  %v2469_v17 = vsel %vm1432_vm7, %v2339_v37, 0.0  ;;  %v2470_v45 = vsel %vm1434_vm8, %v2340_v39, 0.0  ;;  %v2408_v41 = vadd.f32 %v2407_v30, %v2406_v15 }
 0x695   : > { %v2453_v59 = vadd.f32 %v2452_v12, %v2451_v46  ;;  %v2478_v16 = vsel %vm1432_vm7, %v2341_v33, 0.0  ;;  %v2479_v57 = vsel %vm1434_vm8, %v2342_v55, 0.0  ;;  %v2356_v19 = vadd.f32 %v2355_v50, %v5262_v13 }
 0x696   : > { %v2427_v21 = vrot.slane %v5276_v25, 4  ;;  %v2391_v2 = vrot.slane %v2390_v43, 4  ;;  %v2462_v36 = vadd.f32 %v2461_v58, %v2460_v42  ;;  %v2365_v1 = vadd.f32 %v2364_v62, %v5267_v18 }
 0x697   : > { %v2436_v63 = vrot.slane %v2435_v44, 4  ;;  %v2400_v31 = vrot.slane %v2399_v28, 4  ;;  %v2471_v29 = vadd.f32 %v2470_v45, %v2469_v17  ;;  %v2374_v20 = vadd.f32 %v2373_v22, %v2372_v54 }
 0x698   : > { %v2445_v39 = vrot.slane %v2444_v40, 4  ;;  %v2409_v34 = vrot.slane %v2408_v41, 4  ;;  %v2480_v37 = vadd.f32 %v2479_v57, %v2478_v16  ;;  %v2348_v15 = vrot.slane %v5271_v38, 2 }
 0x699   : > { %v5777_v30 = vrot.slane %v5264_v14, 4  ;;  %v2383_v13 = vadd.f32 %v2382_v56, %v2381_v26  ;;  %v2454_v50 = vrot.slane %v2453_v59, 4  ;;  %v2357_v55 = vrot.slane %v2356_v19, 2 }
 0x69a   : > { %v2428_v46 = vadd.f32 %v2427_v21, %v5276_v25  ;;  %v2392_v12 = vadd.f32 %v2391_v2, %v2390_v43  ;;  %v2463_v18 = vrot.slane %v2462_v36, 4  ;;  %v2366_v62 = vrot.slane %v2365_v1, 2 }
 0x69b   : > { %v2419_v33 = vadd.f32 %v5777_v30, %v5264_v14  ;;  %v2437_v42 = vadd.f32 %v2436_v63, %v2435_v44  ;;  %v2401_v58 = vadd.f32 %v2400_v31, %v2399_v28  ;;  %v2472_v22 = vrot.slane %v2471_v29, 4 }
 0x69c   : > { %v2375_v54 = vrot.slane %v2374_v20, 2  ;;  %v2446_v17 = vadd.f32 %v2445_v39, %v2444_v40  ;;  %v2410_v45 = vadd.f32 %v2409_v34, %v2408_v41  ;;  %v2481_v16 = vrot.slane %v2480_v37, 4 }
 0x69d   : > { %v2349_v57 = vadd.f32 %v2348_v15, %v5271_v38  ;;  %v2420_v35 = vrot.slane %v2419_v33, 2  ;;  %v2384_v11 = vrot.slane %v2383_v13, 2  ;;  %v2455_v14 = vadd.f32 %v2454_v50, %v2453_v59 }
 0x69e   : > { %v2358_v56 = vadd.f32 %v2357_v55, %v2356_v19  ;;  %v2429_v26 = vrot.slane %v2428_v46, 2  ;;  %v2393_v30 = vrot.slane %v2392_v12, 2  ;;  %v2464_v3 = vadd.f32 %v2463_v18, %v2462_v36 }
 0x69f   : > { %v2367_v25 = vadd.f32 %v2366_v62, %v2365_v1  ;;  %v2438_v43 = vrot.slane %v2437_v42, 2  ;;  %v2402_v21 = vrot.slane %v2401_v58, 2  ;;  %v2473_v2 = vadd.f32 %v2472_v22, %v2471_v29 }
 0x6a0   : > { %v2376_v44 = vadd.f32 %v2375_v54, %v2374_v20  ;;  %v2447_v28 = vrot.slane %v2446_v17, 2  ;;  %v2411_v63 = vrot.slane %v2410_v45, 2  ;;  %v2482_v31 = vadd.f32 %v2481_v16, %v2480_v37 }
 0x6a1   : > { %v2350_v40 = vrot.slane %v2349_v57, 1  ;;  %v2421_v41 = vadd.f32 %v2420_v35, %v2419_v33  ;;  %v2385_v39 = vadd.f32 %v2384_v11, %v2383_v13  ;;  %v2456_v34 = vrot.slane %v2455_v14, 2 }
 0x6a2   : > { %v2359_v38 = vrot.slane %v2358_v56, 1  ;;  %v2430_v15 = vadd.f32 %v2429_v26, %v2428_v46  ;;  %v2394_v9 = vadd.f32 %v2393_v30, %v2392_v12  ;;  %v2465_v59 = vrot.slane %v2464_v3, 2 }
 0x6a3   : > { %v2368_v19 = vrot.slane %v2367_v25, 1  ;;  %v2439_v50 = vadd.f32 %v2438_v43, %v2437_v42  ;;  %v2403_v55 = vadd.f32 %v2402_v21, %v2401_v58  ;;  %v2474_v36 = vrot.slane %v2473_v2, 2 }
 0x6a4   : > { %v2377_v1 = vrot.slane %v2376_v44, 1  ;;  %v2448_v18 = vadd.f32 %v2447_v28, %v2446_v17  ;;  %v2483_v62 = vrot.slane %v2482_v31, 2  ;;  %v2412_v29 = vadd.f32 %v2411_v63, %v2410_v45 }
 0x6a5   : > { %v2351_v20 = vadd.f32 %v2350_v40, %v2349_v57  ;;  %v2422_v22 = vrot.slane %v2421_v41, 1  ;;  %v2386_v54 = vrot.slane %v2385_v39, 1  ;;  %v2457_v37 = vadd.f32 %v2456_v34, %v2455_v14 }
 0x6a6   : > { %v2360_v16 = vadd.f32 %v2359_v38, %v2358_v56  ;;  %v2431_v35 = vrot.slane %v2430_v15, 1  ;;  %v2395_v11 = vrot.slane %v2394_v9, 1  ;;  %v2466_v33 = vadd.f32 %v2465_v59, %v2464_v3 }
 0x6a7   : > { %v2369_v13 = vadd.f32 %v2368_v19, %v2367_v25  ;;  %v2440_v46 = vrot.slane %v2439_v50, 1  ;;  %v2475_v12 = vadd.f32 %v2474_v36, %v2473_v2  ;;  %v2404_v26 = vrot.slane %v2403_v55, 1 }
 0x6a8   : > { %v2378_v30 = vadd.f32 %v2377_v1, %v2376_v44  ;;  %v2449_v42 = vrot.slane %v2448_v18, 1  ;;  %v2413_v43 = vrot.slane %v2412_v29, 1  ;;  %v2484_v17 = vadd.f32 %v2483_v62, %v2482_v31 }
 0x6a9   : > { %v2487_v21 = vpack.c.bf16 %v2351_v20, %v2351_v20  ;;  %v2423_v45 = vadd.f32 %v2422_v22, %v2421_v41  ;;  %v2387_v57 = vadd.f32 %v2386_v54, %v2385_v39  ;;  %v2458_v28 = vrot.slane %v2457_v37, 1 }
 0x6aa   : > { %v2488_v63 = vpack.c.bf16 %v2360_v16, %v2360_v16  ;;  %v2432_v14 = vadd.f32 %v2431_v35, %v2430_v15  ;;  %v2467_v56 = vrot.slane %v2466_v33, 1  ;;  %v2396_v34 = vadd.f32 %v2395_v11, %v2394_v9 }
 0x6ab   : > { %v2489_v3 = vpack.c.bf16 %v2369_v13, %v2369_v13  ;;  %v2441_v25 = vadd.f32 %v2440_v46, %v2439_v50  ;;  %v2405_v38 = vadd.f32 %v2404_v26, %v2403_v55  ;;  %v2476_v2 = vrot.slane %v2475_v12, 1 }
 0x6ac   : > { %v2490_v59 = vpack.c.bf16 %v2378_v30, %v2378_v30  ;;  %v2450_v44 = vadd.f32 %v2449_v42, %v2448_v18  ;;  %v2414_v36 = vadd.f32 %v2413_v43, %v2412_v29  ;;  %v2485_v1 = vrot.slane %v2484_v17, 1 }
 0x6ad   : > { %v2503_v31 = vunpack.c.l.bf16 %v2487_v21  ;;  %v2495_v62 = vpack.c.bf16 %v2423_v45, %v2423_v45  ;;  %v2491_v41 = vpack.c.bf16 %v2387_v57, %v2387_v57  ;;  %v2459_v39 = vadd.f32 %v2458_v28, %v2457_v37 }
 0x6ae   : > { %v2504_v20 = vunpack.c.l.bf16 %v2488_v63  ;;  %v2496_v22 = vpack.c.bf16 %v2432_v14, %v2432_v14  ;;  %v2492_v54 = vpack.c.bf16 %v2396_v34, %v2396_v34  ;;  %v2468_v16 = vadd.f32 %v2467_v56, %v2466_v33 }
 0x6af   : > { %v2505_v9 = vunpack.c.l.bf16 %v2489_v3  ;;  %v2497_v35 = vpack.c.bf16 %v2441_v25, %v2441_v25  ;;  %v2493_v50 = vpack.c.bf16 %v2405_v38, %v2405_v38  ;;  %v2477_v55 = vadd.f32 %v2476_v2, %v2475_v12 }
 0x6b0   : > { %v2506_v11 = vunpack.c.l.bf16 %v2490_v59  ;;  %v2498_v13 = vpack.c.bf16 %v2450_v44, %v2450_v44  ;;  %v2494_v18 = vpack.c.bf16 %v2414_v36, %v2414_v36  ;;  %v2486_v46 = vadd.f32 %v2485_v1, %v2484_v17 }
 0x6b1   : > { %v2511_v26 = vunpack.c.l.bf16 %v2495_v62  ;;  %v2507_v29 = vunpack.c.l.bf16 %v2491_v41  ;;  %v2499_v30 = vpack.c.bf16 %v2459_v39, %v2459_v39  ;;  %v2512_v42 = vunpack.c.l.bf16 %v2496_v22 }
 0x6b2   : > { %v2508_v43 = vunpack.c.l.bf16 %v2492_v54  ;;  %v2541_v37 = vsel %vm1626_vm4, %v2504_v20, %v2503_v31  ;;  %v2500_v21 = vpack.c.bf16 %v2468_v16, %v2468_v16  ;;  %v2513_v45 = vunpack.c.l.bf16 %v2497_v35 }
 0x6b3   : > { %v2509_v57 = vunpack.c.l.bf16 %v2493_v50  ;;  %v2542_v33 = vsel %vm1628_vm5, %v2505_v9, %v2541_v37  ;;  %v2501_v28 = vpack.c.bf16 %v2477_v55, %v2477_v55  ;;  %v2514_v63 = vunpack.c.l.bf16 %v2498_v13 }
 0x6b4   : > { %v2510_v14 = vunpack.c.l.bf16 %v2494_v18  ;;  %v2543_v12 = vsel %vm1630_vm6, %v2506_v11, %v2542_v33  ;;  %v2502_v56 = vpack.c.bf16 %v2486_v46, %v2486_v46  ;;  %v2516_v3 = vunpack.c.l.bf16 %v2500_v21  ;;  %v5779_v18 = vld [vmem:[#allocation38_spill] sm:$0xff]  ;;  %v5780_v46 = vld [vmem:[#allocation40_spill] sm:$0xff] }
 0x6b5   : > { %v2544_v17 = vsel %vm1632_vm9, %v2507_v29, %v2543_v12  ;;  %v2548_v25 = vsel %vm1626_vm4, %v2512_v42, %v2511_v26  ;;  %v2517_v2 = vunpack.c.l.bf16 %v2501_v28 }
 0x6b6   : > { %v2545_v34 = vsel %vm1634_vm10, %v2508_v43, %v2544_v17  ;;  %v2549_v59 = vsel %vm1628_vm5, %v2513_v45, %v2548_v25  ;;  %v2518_v1 = vunpack.c.l.bf16 %v2502_v56 }
 0x6b7   : > { %v2546_v38 = vsel %vm1636_vm11, %v2509_v57, %v2545_v34  ;;  %v2550_v31 = vsel %vm1630_vm6, %v2514_v63, %v2549_v59 }
 0x6b8   : > { %v2547_v44 = vsel %vm1638_vm12, %v2510_v14, %v2546_v38  ;;  %v5781_v14 = vld [vmem:[#allocation45_spill] sm:$0xff] }
 0x73a   : > { %v5316_v58 = vpop.f32.mrf.mxu0 }
 0x73c   : > { %v3668_v40 = vpop.f32.mrf.mxu0 }
 0x73d   : > { %v2515_v40 = vunpack.c.l.bf16 %v2499_v30 }
 0x73e   : > { %v5318_v19 = vpop.f32.mrf.mxu0 }
 0x73f   : > { %v2551_v41 = vsel %vm1632_vm9, %v2515_v40, %v2550_v31 }
 0x740   : > { %v3669_v15 = vpop.f32.mrf.mxu0  ;;  %v2552_v20 = vsel %vm1634_vm10, %v2516_v3, %v2551_v41  ;;  %v5782_v3 = vld [vmem:[#allocation47_spill] sm:$0xff] }
 0x741   : > { %v2553_v22 = vsel %vm1636_vm11, %v2517_v2, %v2552_v20  ;;  %v5783_v2 = vld [vmem:[#allocation55_spill] sm:$0xff] }
 0x742   : > { %v2554_v54 = vsel %vm1638_vm12, %v2518_v1, %v2553_v22 }
 0x74a   : > { %v2600_v36 = vpop.f32.mrf.mxu0 }
 0x74b   : > { %v2601_v62 = vadd.f32 %v2600_v36, %v2547_v44 }
 0x74c   : > { %v3676_v39 = vpop.f32.mrf.mxu0 }
 0x74d   : > { %v2607_v15 = vsel %vm1432_vm7, %v2601_v62, -inf }
 0x74e   : > { %v2603_v16 = vpop.f32.mrf.mxu0  ;;  %2608 = vmax.xlane.f32.xlu0 %v2607_v15  ;;  %v5784_v15 = vld [vmem:[#allocation53_spill] sm:$0xff] }
 0x74f   : > { %v2604_v9 = vadd.f32 %v2603_v16, %v2554_v54  ;;  %v5785_v16 = vld [vmem:[#allocation44_spill] sm:$0xff] }
 0x750   : > { %v3677_v35 = vpop.f32.mrf.mxu0 }
 0x751   : > { %v2610_v50 = vsel %vm1432_vm7, %v2604_v9, -inf }
 0x752   : > { %2611 = vmax.xlane.f32.xlu1 %v2610_v50 }
 0x763   : > { %2635 = vrot.lane.b32.xlu1 %v5758_v51, %s4329_s1 }
 0x767   : > { %2977 = vrot.lane.b32.xlu1 %v4686_v23, %s4330_s4 }
 0x76b   : > { %2975 = vrot.lane.b32.xlu1 %v4697_v32, %s4330_s4 }
 0x76f   : > { %2687 = vbcast.lane.c.b16.xlu1 %v4715_v48, 292 }
 0x773   : > { %2719 = vbcast.lane.c.b16.xlu1 %v4712_v47, 292 }
 0x777   : > { %2695 = vbcast.lane.c.b16.xlu1 %v4723_v53, 292 }
 0x77b   : > { %2699 = vbcast.lane.c.b16.xlu1 %v4756_v8, 292 }
 0x77f   : > { %2703 = vbcast.lane.c.b16.xlu1 %v4734_v61, 292 }
 0x783   : > { %2707 = vbcast.lane.c.b16.xlu1 %v4762_v10, 292 }
 0x787   : > { %2711 = vbcast.lane.c.b16.xlu1 %v4743_v4, 292 }
 0x78b   : > { %2715 = vbcast.lane.c.b16.xlu1 %v5759_v0, 292  ;;  %v5778_v0 = vld [vmem:[#allocation39_spill] sm:$0xff] }
 0x7d7   : > { %v2609_v23 = vpop.xlane.xlu0 %2608 }
 0x7d8   : > { %v2613_v55 = vsub.f32 %v2601_v62, %v2609_v23 }
 0x7da   : > { %v2615_v11 = vmul.f32 1.442695, %v2613_v55 }
 0x7db   : > { %v2612_v32 = vpop.xlane.xlu1 %2611 }
 0x7dc   : > { %3895 = vpow2.f32 %v2615_v11  ;;  %v2614_v48 = vsub.f32 %v2604_v9, %v2612_v32 }
 0x7de   : > { %v2617_v13 = vmul.f32 1.442695, %v2614_v48  ;;  %v5786_v48 = vld [vmem:[#allocation49_spill] sm:$0xff] }
 0x7df   : > { %v2636_v47 = vpop.permute.xlu1 %2635 }
 0x7e0   : > { %3897 = vpow2.f32 %v2617_v13  ;;  %v2642_v53 = vsel %vm1727_vm3, %v2636_v47, 0 }
 0x7e1   : > { %3679 = vmatpush3.bf16.msra.mxu1 %v2642_v53 }
 0x7e2   : > { %3680 = vmatprep.subr.bf16.mxu1 %v5760_v24 }
 0x7e3   : > { %v2978_v29 = vpop.permute.xlu1 %2977 }
 0x7e4   : > { %v3018_v42 = vsel %vm1649_vm2, %v2978_v29, 0  ;;  %v5787_v29 = vld [vmem:[#allocation57_spill] sm:$0xff] }
 0x7e7   : > { %v2976_v43 = vpop.permute.xlu1 %2975 }
 0x7e8   : > { %v3015_v37 = vsel %vm1649_vm2, %v2976_v43, 0  ;;  %v5788_v43 = vld [vmem:[#allocation51_spill] sm:$0xff] }
 0x7e9   : > { %v3896_v61 = vpop.eup %3895 }
 0x7ea   : > { %v2619_v8 = vsel %vm1432_vm7, %v3896_v61, 0.0 }
 0x7eb   : > { %2620 = vadd.xlane.f32.xlu0 %v2619_v8  ;;  %v2688_v45 = vpop.permute.xlu1 %2687 }
 0x7ec   : > { %v2749_v12 = vmul.bf16 %v2688_v45, %v5781_v14 }
 0x7ed   : > { %v3898_v4 = vpop.eup %3897 }
 0x7ee   : > { %v2622_v10 = vsel %vm1432_vm7, %v3898_v4, 0.0  ;;  %v2765_v17 = vunpack.c.l.bf16 %v2749_v12  ;;  %v2766_v34 = vunpack.c.h.bf16 %v2749_v12 }
 0x7ef   : > { %2623 = vadd.xlane.f32.xlu0 %v2622_v10  ;;  %v2720_v57 = vpop.permute.xlu1 %2719 }
 0x7f0   : > { %v2797_v36 = vsel %vm1432_vm7, %v2765_v17, 0.0  ;;  %v2798_v1 = vsel %vm1434_vm8, %v2766_v34, 0.0  ;;  %v2757_v9 = vmul.bf16 %v2720_v57, %v5785_v16 }
 0x7f1   : > { %v2799_v41 = vadd.f32 %v2798_v1, %v2797_v36 }
 0x7f2   : > { %v2782_v8 = vunpack.c.h.bf16 %v2757_v9 }
 0x7f3   : > { %v2696_v28 = vpop.permute.xlu1 %2695  ;;  %v2800_v55 = vrot.slane %v2799_v41, 4 }
 0x7f4   : > { %v2751_v25 = vmul.bf16 %v2696_v28, %v5782_v3 }
 0x7f6   : > { %v2769_v31 = vunpack.c.l.bf16 %v2751_v25  ;;  %v2770_v62 = vunpack.c.h.bf16 %v2751_v25 }
 0x7f7   : > { %v2700_v56 = vpop.permute.xlu1 %2699 }
 0x7f8   : > { %v2752_v59 = vmul.bf16 %v2700_v56, %v5783_v2  ;;  %v2815_v50 = vsel %vm1432_vm7, %v2769_v31, 0.0  ;;  %v2816_v23 = vsel %vm1434_vm8, %v2770_v62, 0.0 }
 0x7fa   : > { %v2771_v39 = vunpack.c.l.bf16 %v2752_v59  ;;  %v2772_v20 = vunpack.c.h.bf16 %v2752_v59  ;;  %v5789_v59 = vld [vmem:[#allocation59_spill] sm:$0xff] }
 0x7fb   : > { %v2704_v38 = vpop.permute.xlu1 %2703 }
 0x7fc   : > { %v2824_v11 = vsel %vm1432_vm7, %v2771_v39, 0.0  ;;  %v2825_v32 = vsel %vm1434_vm8, %v2772_v20, 0.0  ;;  %v2753_v13 = vmul.bf16 %v2704_v38, %v5786_v48 }
 0x7fd   : > { %v2826_v10 = vadd.f32 %v2825_v32, %v2824_v11 }
 0x7ff   : > { %v2708_v22 = vpop.permute.xlu1 %2707 }
 0x805   : > { %2633 = vrot.lane.b32.xlu0 %v5757_v49, %s4329_s1 }
 0x809   : > { %2973 = vrot.lane.b32.xlu0 %v4688_v27, %s4330_s4 }
 0x80d   : > { %2691 = vbcast.lane.c.b16.xlu0 %v4750_v6, 292 }
 0x811   : > { %2723 = vbcast.lane.c.b16.xlu0 %v4747_v5, 292 }
 0x815   : > { %2727 = vbcast.lane.c.b16.xlu0 %v4721_v52, 292 }
 0x819   : > { %2731 = vbcast.lane.c.b16.xlu0 %v4754_v7, 292 }
 0x81d   : > { %2735 = vbcast.lane.c.b16.xlu0 %v4732_v60, 292 }
 0x821   : > { %2739 = vbcast.lane.c.b16.xlu0 %v5778_v0, 292  ;;  %v2712_v0 = vpop.permute.xlu1 %2711 }
 0x825   : > { %2743 = vbcast.lane.c.b16.xlu0 %v5779_v18, 292  ;;  %v2801_v18 = vadd.f32 %v2800_v55, %v2799_v41  ;;  %v2716_v14 = vpop.permute.xlu1 %2715  ;;  %v5790_v41 = vld [vmem:[#allocation52_spill] sm:$0xff]  ;;  %v5792_v55 = vld [vmem:[#allocation54_spill] sm:$0xff] }
 0x826   : > { %v2756_v36 = vmul.bf16 %v2716_v14, %v5789_v59 }
 0x827   : > { %v2802_v45 = vrot.slane %v2801_v18, 2 }
 0x829   : > { %2747 = vbcast.lane.c.b16.xlu0 %v5780_v46, 292  ;;  %v5411_v31 = vadd.f32 %v2802_v45, %v2801_v18 }
 0x874   : > { %v2621_v26 = vpop.xlane.xlu0 %2620 }
 0x875   : > { %3899 = vrcp.f32 %v2621_v26  ;;  %v2773_v26 = vunpack.c.l.bf16 %v2753_v13 }
 0x878   : > { %v2624_v27 = vpop.xlane.xlu0 %2623 }
 0x879   : > { %3901 = vrcp.f32 %v2624_v27  ;;  %v2774_v27 = vunpack.c.h.bf16 %v2753_v13  ;;  %v5793_v13 = vld [vmem:[#allocation48_spill] sm:$0xff] }
 0x87b   : > { %v2834_v28 = vsel %vm1434_vm8, %v2774_v27, 0.0  ;;  %v5795_v27 = vld [vmem:[#allocation50_spill] sm:$0xff] }
 0x87c   : > { %v2634_v6 = vpop.permute.xlu0 %2633 }
 0x87d   : > { %3681 = vmatpush3.bf16.msra.mxu1 %v2634_v6 }
 0x87e   : > { %3686 = vmatprep.subr.bf16.mxu1 %v5760_v24 }
 0x880   : > { %v2974_v21 = vpop.permute.xlu0 %2973 }
 0x882   : > { %v3900_v52 = vpop.eup %3899 }
 0x883   : > { %v2627_v5 = vmul.f32 %v3900_v52, %v3896_v61  ;;  %v2781_v61 = vunpack.c.l.bf16 %v2757_v9 }
 0x884   : > { %v2692_v33 = vpop.permute.xlu0 %2691 }
 0x885   : > { %3549 = vst.msk [vmem:[%s5088_s12 + $0x20] sm:$0xff] %vm1432_vm7, %v2627_v5  ;;  %v2750_v54 = vmul.bf16 %v2692_v33, %v5784_v15  ;;  %v2833_v33 = vsel %vm1432_vm7, %v2773_v26, 0.0 }
 0x886   : > { %v3902_v60 = vpop.eup %3901  ;;  %v2835_v2 = vadd.f32 %v2834_v28, %v2833_v33 }
 0x887   : > { %v2628_v7 = vmul.f32 %v3902_v60, %v3898_v4  ;;  %v2767_v47 = vunpack.c.l.bf16 %v2750_v54  ;;  %v2768_v53 = vunpack.c.h.bf16 %v2750_v54  ;;  %v2817_v4 = vadd.f32 %v2816_v23, %v2815_v50  ;;  %v5791_v54 = vld [vmem:[#allocation46_spill] sm:$0xff] }
 0x888   : > { %v5378_v63 = vpop.permute.xlu0 %2723  ;;  %v2870_v60 = vsel %vm1434_vm8, %v2782_v8, 0.0  ;;  %v2836_v32 = vrot.slane %v2835_v2, 4 }
 0x889   : > { %3550 = vst.msk [vmem:[%s5088_s12 + $0x28] sm:$0xff] %vm1432_vm7, %v2628_v7  ;;  %v2632_v30 = vpack.c.bf16 %v2628_v7, %v2627_v5  ;;  %v2806_v6 = vsel %vm1432_vm7, %v2767_v47, 0.0  ;;  %v2807_v52 = vsel %vm1434_vm8, %v2768_v53, 0.0  ;;  %v2869_v5 = vsel %vm1432_vm7, %v2781_v61, 0.0 }
 0x88a   : > { %v2818_v7 = vrot.slane %v2817_v4, 4  ;;  %v5402_v57 = vadd.f32 %v2870_v60, %v2869_v5  ;;  %v2758_v39 = vmul.bf16 %v5378_v63, %v5790_v41  ;;  %v2779_v63 = vunpack.c.l.bf16 %v2756_v36 }
 0x88b   : > { %3683 = vmatmul.mubr.msk.bf16.vlgmr.msra.gmra.mxu1 %vm1432_vm7, %v2632_v30  ;;  %v2754_v30 = vmul.bf16 %v2708_v22, %v5787_v29 }
 0x88c   : > { %3687 = vmatpush3.bf16.xpose.msra.mxu1 %v3018_v42  ;;  %3690 = vmatprep.mubr.msk.bf16.mxu1 %vm4326_vm0, %v5760_v24  ;;  %v5381_v40 = vpop.permute.xlu0 %2727  ;;  %v2827_v42 = vrot.slane %v2826_v10, 4  ;;  %v5406_v12 = vadd.f32 %v2818_v7, %v2817_v4  ;;  %v2872_v62 = vrot.slane %v5402_v57, 4  ;;  %v2783_v8 = vunpack.c.l.bf16 %v2758_v39 }
 0x88d   : > { %3688 = vmatprep.subr.bf16.mxu1 %v5760_v24  ;;  %v2775_v56 = vunpack.c.l.bf16 %v2754_v30  ;;  %v2776_v17 = vunpack.c.h.bf16 %v2754_v30  ;;  %v2759_v16 = vmul.bf16 %v5381_v40, %v5791_v54  ;;  %v2784_v4 = vunpack.c.h.bf16 %v2758_v39 }
 0x88e   : > { %v5408_v3 = vadd.f32 %v2827_v42, %v2826_v10  ;;  %v2820_v20 = vrot.slane %v5406_v12, 2  ;;  %v5794_v10 = vld [vmem:[#allocation56_spill] sm:$0xff]  ;;  %v2860_v29 = vsel %vm1432_vm7, %v2779_v63, 0.0 }
 0x88f   : > { %v2842_v22 = vsel %vm1432_vm7, %v2775_v56, 0.0  ;;  %v2843_v15 = vsel %vm1434_vm8, %v2776_v17, 0.0  ;;  %v2785_v18 = vunpack.c.l.bf16 %v2759_v16  ;;  %v2786_v26 = vunpack.c.h.bf16 %v2759_v16 }
 0x890   : > { %v5385_v44 = vpop.permute.xlu0 %2731  ;;  %v2829_v9 = vrot.slane %v5408_v3, 2  ;;  %v2844_v61 = vadd.f32 %v2843_v15, %v2842_v22 }
 0x891   : > { %v2760_v11 = vmul.bf16 %v5385_v44, %v5792_v55  ;;  %v5796_v44 = vld [vmem:[#allocation58_spill] sm:$0xff]  ;;  %v2887_v45 = vsel %vm1432_vm7, %v2785_v18, 0.0  ;;  %v2888_v33 = vsel %vm1434_vm8, %v2786_v26, 0.0  ;;  %v2837_v55 = vadd.f32 %v2836_v32, %v2835_v2 }
 0x892   : > { %v2889_v39 = vadd.f32 %v2888_v33, %v2887_v45  ;;  %v2845_v54 = vrot.slane %v2844_v61, 4  ;;  %v2804_v26 = vrot.slane %v5411_v31, 1  ;;  %v2873_v2 = vadd.f32 %v2872_v62, %v5402_v57 }
 0x893   : > { %v2787_v5 = vunpack.c.l.bf16 %v2760_v11  ;;  %v2788_v60 = vunpack.c.h.bf16 %v2760_v11  ;;  %v2830_v32 = vadd.f32 %v2829_v9, %v5408_v3 }
 0x894   : > { %3689 = vmatpush3.bf16.xpose.msra.mxu1 %v3015_v37  ;;  %v2736_v35 = vpop.permute.xlu0 %2735  ;;  %v2755_v37 = vmul.bf16 %v2712_v0, %v5788_v43  ;;  %v2878_v43 = vsel %vm1432_vm7, %v2783_v8, 0.0  ;;  %v2874_v57 = vrot.slane %v2873_v2, 2 }
 0x895   : > { %v2761_v47 = vmul.bf16 %v2736_v35, %v5793_v13  ;;  %v2896_v56 = vsel %vm1432_vm7, %v2787_v5, 0.0  ;;  %v2897_v17 = vsel %vm1434_vm8, %v2788_v60, 0.0  ;;  %v2838_v5 = vrot.slane %v2837_v55, 2 }
 0x896   : > { %v2777_v25 = vunpack.c.l.bf16 %v2755_v37  ;;  %v2778_v38 = vunpack.c.h.bf16 %v2755_v37  ;;  %v2879_v37 = vsel %vm1434_vm8, %v2784_v4, 0.0  ;;  %v2898_v16 = vadd.f32 %v2897_v17, %v2896_v56 }
 0x897   : > { %v2789_v35 = vunpack.c.l.bf16 %v2761_v47  ;;  %v2790_v42 = vunpack.c.h.bf16 %v2761_v47  ;;  %v2880_v59 = vadd.f32 %v2879_v37, %v2878_v43  ;;  %v2821_v4 = vadd.f32 %v2820_v20, %v5406_v12 }
 0x898   : > { %v2740_v46 = vpop.permute.xlu0 %2739  ;;  %v2851_v50 = vsel %vm1432_vm7, %v2777_v25, 0.0  ;;  %v2852_v23 = vsel %vm1434_vm8, %v2778_v38, 0.0  ;;  %v2831_v62 = vrot.slane %v2830_v32, 1 }
 0x899   : > { %v2762_v40 = vmul.bf16 %v2740_v46, %v5794_v10  ;;  %v2853_v0 = vadd.f32 %v2852_v23, %v2851_v50 }
 0x89b   : > { %3691 = vmatmul.mubr.msk.bf16.vlgmr.msra.gmra.mxu1 %vm1649_vm2, %v2974_v21  ;;  %v2808_v21 = vadd.f32 %v2807_v52, %v2806_v6  ;;  %v2780_v52 = vunpack.c.h.bf16 %v2756_v36  ;;  %v2791_v46 = vunpack.c.l.bf16 %v2762_v40  ;;  %v2905_v36 = vsel %vm1432_vm7, %v2789_v35, 0.0 }
 0x89c   : > { %v2744_v34 = vpop.permute.xlu0 %2743  ;;  %v2854_v10 = vrot.slane %v2853_v0, 4 }
 0x89d   : > { %v2809_v1 = vrot.slane %v2808_v21, 4  ;;  %v2763_v6 = vmul.bf16 %v2744_v34, %v5795_v27  ;;  %v2861_v41 = vsel %vm1434_vm8, %v2780_v52, 0.0  ;;  %v2914_v22 = vsel %vm1432_vm7, %v2791_v46, 0.0 }
 0x89e   : > { %v2862_v13 = vadd.f32 %v2861_v41, %v2860_v29  ;;  %v2846_v27 = vadd.f32 %v2845_v54, %v2844_v61  ;;  %v2822_v29 = vrot.slane %v2821_v4, 1 }
 0x89f   : > { %v2810_v48 = vadd.f32 %v2809_v1, %v2808_v21  ;;  %v2792_v21 = vunpack.c.h.bf16 %v2762_v40  ;;  %v2793_v28 = vunpack.c.l.bf16 %v2763_v6  ;;  %v2794_v14 = vunpack.c.h.bf16 %v2763_v6 }
 0x8a0   : > { %v2748_v53 = vpop.permute.xlu0 %2747  ;;  %v2906_v1 = vsel %vm1434_vm8, %v2790_v42, 0.0  ;;  %v2890_v40 = vrot.slane %v2889_v39, 4  ;;  %v2899_v6 = vrot.slane %v2898_v16, 4  ;;  %v2805_v42 = vadd.f32 %v2804_v26, %v5411_v31 }
 0x8a1   : > { %v2764_v7 = vmul.bf16 %v2748_v53, %v5796_v44  ;;  %v2811_v30 = vrot.slane %v2810_v48, 2  ;;  %v2915_v15 = vsel %vm1434_vm8, %v2792_v21, 0.0  ;;  %v2923_v50 = vsel %vm1432_vm7, %v2793_v28, 0.0 }
 0x8a2   : > { %v2924_v23 = vsel %vm1434_vm8, %v2794_v14, 0.0  ;;  %v2907_v11 = vadd.f32 %v2906_v1, %v2905_v36  ;;  %v2881_v53 = vrot.slane %v2880_v59, 4  ;;  %v2916_v8 = vadd.f32 %v2915_v15, %v2914_v22 }
 0x8a3   : > { %v2795_v34 = vunpack.c.l.bf16 %v2764_v7  ;;  %v2796_v25 = vunpack.c.h.bf16 %v2764_v7  ;;  %v2812_v38 = vadd.f32 %v2811_v30, %v2810_v48  ;;  %v2925_v18 = vadd.f32 %v2924_v23, %v2923_v50 }
 0x8a4   : > { %v2908_v60 = vrot.slane %v2907_v11, 4  ;;  %v2863_v44 = vrot.slane %v2862_v13, 4  ;;  %v2882_v20 = vadd.f32 %v2881_v53, %v2880_v59  ;;  %v2917_v7 = vrot.slane %v2916_v8, 4 }
 0x8a5   : > { %v2932_v63 = vsel %vm1432_vm7, %v2795_v34, 0.0  ;;  %v2933_v48 = vsel %vm1434_vm8, %v2796_v25, 0.0  ;;  %v2813_v47 = vrot.slane %v2812_v38, 1  ;;  %v2855_v30 = vadd.f32 %v2854_v10, %v2853_v0 }
 0x8a6   : > { %v2934_v52 = vadd.f32 %v2933_v48, %v2932_v63  ;;  %v2891_v35 = vadd.f32 %v2890_v40, %v2889_v39  ;;  %v2926_v61 = vrot.slane %v2925_v18, 4  ;;  %v2847_v43 = vrot.slane %v2846_v27, 2 }
 0x8a7   : > { %v2814_v12 = vadd.f32 %v2813_v47, %v2812_v38  ;;  %v2900_v37 = vadd.f32 %v2899_v6, %v2898_v16  ;;  %v2839_v21 = vadd.f32 %v2838_v5, %v2837_v55  ;;  %v2909_v45 = vadd.f32 %v2908_v60, %v2907_v11 }
 0x8a8   : > { %v2935_v46 = vrot.slane %v2934_v52, 4  ;;  %v2864_v3 = vadd.f32 %v2863_v44, %v2862_v13  ;;  %v2883_v33 = vrot.slane %v2882_v20, 2  ;;  %v2918_v28 = vadd.f32 %v2917_v7, %v2916_v8 }
 0x8a9   : > { %v2942_v9 = vpack.c.bf16 %v2814_v12, %v2814_v12  ;;  %v2823_v14 = vadd.f32 %v2822_v29, %v2821_v4  ;;  %v2856_v56 = vrot.slane %v2855_v30, 2  ;;  %v2892_v17 = vrot.slane %v2891_v35, 2 }
 0x8aa   : > { %v2927_v34 = vadd.f32 %v2926_v61, %v2925_v18  ;;  %v2941_v0 = vpack.c.bf16 %v2805_v42, %v2805_v42  ;;  %v2848_v25 = vadd.f32 %v2847_v43, %v2846_v27  ;;  %v2901_v38 = vrot.slane %v2900_v37, 2 }
 0x8ab   : > { %v2936_v59 = vadd.f32 %v2935_v46, %v2934_v52  ;;  %v2875_v31 = vadd.f32 %v2874_v57, %v2873_v2  ;;  %v2832_v36 = vadd.f32 %v2831_v62, %v2830_v32  ;;  %v2840_v1 = vrot.slane %v2839_v21, 1 }
 0x8ac   : > { %v2910_v41 = vrot.slane %v2909_v45, 2  ;;  %v2865_v39 = vrot.slane %v2864_v3, 2  ;;  %v2958_v22 = vunpack.c.l.bf16 %v2942_v9  ;;  %v2884_v15 = vadd.f32 %v2883_v33, %v2882_v20 }
 0x8ad   : > { %v2919_v54 = vrot.slane %v2918_v28, 2  ;;  %v2943_v16 = vpack.c.bf16 %v2823_v14, %v2823_v14  ;;  %v2857_v50 = vadd.f32 %v2856_v56, %v2855_v30  ;;  %v2893_v23 = vadd.f32 %v2892_v17, %v2891_v35 }
 0x8ae   : > { %v2928_v55 = vrot.slane %v2927_v34, 2  ;;  %v2957_v11 = vunpack.c.l.bf16 %v2941_v0  ;;  %v2849_v63 = vrot.slane %v2848_v25, 1  ;;  %v2902_v48 = vadd.f32 %v2901_v38, %v2900_v37 }
 0x8af   : > { %v2937_v13 = vrot.slane %v2936_v59, 2  ;;  %v2876_v47 = vrot.slane %v2875_v31, 1  ;;  %v2944_v53 = vpack.c.bf16 %v2832_v36, %v2832_v36  ;;  %v2841_v8 = vadd.f32 %v2840_v1, %v2839_v21 }
 0x8b0   : > { %v2911_v4 = vadd.f32 %v2910_v41, %v2909_v45  ;;  %v2885_v10 = vrot.slane %v2884_v15, 1  ;;  %v2920_v40 = vadd.f32 %v2919_v54, %v2918_v28  ;;  %v2866_v18 = vadd.f32 %v2865_v39, %v2864_v3 }
 0x8b1   : > { %v2995_v26 = vsel %vm1626_vm4, %v2958_v22, %v2957_v11  ;;  %v2959_v27 = vunpack.c.l.bf16 %v2943_v16  ;;  %v2894_v6 = vrot.slane %v2893_v23, 1  ;;  %v2929_v52 = vadd.f32 %v2928_v55, %v2927_v34 }
 0x8b2   : > { %v2858_v2 = vrot.slane %v2857_v50, 1  ;;  %v2903_v32 = vrot.slane %v2902_v48, 1  ;;  %v2850_v60 = vadd.f32 %v2849_v63, %v2848_v25  ;;  %v2938_v44 = vadd.f32 %v2937_v13, %v2936_v59 }
 0x8b3   : > { %v2945_v12 = vpack.c.bf16 %v2841_v8, %v2841_v8  ;;  %v2912_v20 = vrot.slane %v2911_v4, 1  ;;  %v2996_v7 = vsel %vm1628_vm5, %v2959_v27, %v2995_v26  ;;  %v2960_v29 = vunpack.c.l.bf16 %v2944_v53 }
 0x8b4   : > { %v2886_v30 = vadd.f32 %v2885_v10, %v2884_v15  ;;  %v2921_v35 = vrot.slane %v2920_v40, 1  ;;  %v2867_v42 = vrot.slane %v2866_v18, 1  ;;  %v2877_v43 = vadd.f32 %v2876_v47, %v2875_v31 }
 0x8b5   : > { %v2895_v37 = vadd.f32 %v2894_v6, %v2893_v23  ;;  %v2859_v46 = vadd.f32 %v2858_v2, %v2857_v50  ;;  %v2930_v57 = vrot.slane %v2929_v52, 1  ;;  %v2904_v62 = vadd.f32 %v2903_v32, %v2902_v48 }
 0x8b6   : > { %v2946_v45 = vpack.c.bf16 %v2850_v60, %v2850_v60  ;;  %v2997_v3 = vsel %vm1630_vm6, %v2960_v29, %v2996_v7  ;;  %v2939_v9 = vrot.slane %v2938_v44, 1  ;;  %v2961_v33 = vunpack.c.l.bf16 %v2945_v12 }
 0x8b7   : > { %v2913_v28 = vadd.f32 %v2912_v20, %v2911_v4  ;;  %v2950_v14 = vpack.c.bf16 %v2886_v30, %v2886_v30  ;;  %v2868_v17 = vadd.f32 %v2867_v42, %v2866_v18  ;;  %v2922_v34 = vadd.f32 %v2921_v35, %v2920_v40 }
 0x8b8   : > { %v2951_v0 = vpack.c.bf16 %v2895_v37, %v2895_v37  ;;  %v2947_v25 = vpack.c.bf16 %v2859_v46, %v2859_v46  ;;  %v2998_v38 = vsel %vm1632_vm9, %v2961_v33, %v2997_v3  ;;  %v2931_v59 = vadd.f32 %v2930_v57, %v2929_v52 }
 0x8b9   : > { %v2949_v31 = vpack.c.bf16 %v2877_v43, %v2877_v43  ;;  %v2952_v36 = vpack.c.bf16 %v2904_v62, %v2904_v62  ;;  %v2962_v1 = vunpack.c.l.bf16 %v2946_v45  ;;  %v2940_v41 = vadd.f32 %v2939_v9, %v2938_v44 }
 0x8ba   : > { %v2953_v39 = vpack.c.bf16 %v2913_v28, %v2913_v28  ;;  %v2966_v22 = vunpack.c.l.bf16 %v2950_v14  ;;  %v2948_v15 = vpack.c.bf16 %v2868_v17, %v2868_v17  ;;  %v2954_v16 = vpack.c.bf16 %v2922_v34, %v2922_v34 }
 0x8bb   : > { %v2999_v54 = vsel %vm1634_vm10, %v2962_v1, %v2998_v38  ;;  %v2967_v50 = vunpack.c.l.bf16 %v2951_v0  ;;  %v2963_v23 = vunpack.c.l.bf16 %v2947_v25  ;;  %v2955_v55 = vpack.c.bf16 %v2931_v59, %v2931_v59 }
 0x8bc   : > { %v2965_v11 = vunpack.c.l.bf16 %v2949_v31  ;;  %v2968_v63 = vunpack.c.l.bf16 %v2952_v36  ;;  %v2956_v48 = vpack.c.bf16 %v2940_v41, %v2940_v41  ;;  %v2969_v13 = vunpack.c.l.bf16 %v2953_v39 }
 0x8bd   : > { %v3000_v47 = vsel %vm1636_vm11, %v2963_v23, %v2999_v54  ;;  %v2964_v53 = vunpack.c.l.bf16 %v2948_v15  ;;  %v2970_v8 = vunpack.c.l.bf16 %v2954_v16  ;;  %v2971_v10 = vunpack.c.l.bf16 %v2955_v55 }
 0x8be   : > { %v3002_v4 = vsel %vm1626_vm4, %v2966_v22, %v2965_v11  ;;  %v2972_v27 = vunpack.c.l.bf16 %v2956_v48 }
 0x8bf   : > { %v3003_v40 = vsel %vm1628_vm5, %v2967_v50, %v3002_v4  ;;  %v3001_v18 = vsel %vm1638_vm12, %v2964_v53, %v3000_v47 }
 0x8c0   : > { %v3004_v6 = vsel %vm1630_vm6, %v2968_v63, %v3003_v40 }
 0x8c1   : > { %v3005_v2 = vsel %vm1632_vm9, %v2969_v13, %v3004_v6 }
 0x8c2   : > { %v3006_v60 = vsel %vm1634_vm10, %v2970_v8, %v3005_v2 }
 0x8c3   : > { %v3007_v12 = vsel %vm1636_vm11, %v2971_v10, %v3006_v60 }
 0x8c4   : > { %v3008_v20 = vsel %vm1638_vm12, %v2972_v27, %v3007_v12 }
 0x94b   : > { %v5456_v5 = vpop.f32.mrf.mxu1 }
 0x94d   : > { %v3684_v61 = vpop.f32.mrf.mxu1 }
 0x94f   : > { %v5459_v21 = vpop.f32.mrf.mxu1 }
 0x951   : > { %v3685_v56 = vpop.f32.mrf.mxu1 }
 0x95b   : > { %v3054_v26 = vpop.f32.mrf.mxu1 }
 0x95c   : > { %v3055_v52 = vadd.f32 %v3054_v26, %v3001_v18 }
 0x95d   : > { %v3692_v32 = vpop.f32.mrf.mxu1 }
 0x95e   : > { %v3061_v44 = vsel %vm1432_vm7, %v3055_v52, -inf }
 0x95f   : > { %3062 = vmax.xlane.f32.xlu1 %v3061_v44  ;;  %v3057_v7 = vpop.f32.mrf.mxu1 }
 0x960   : > { %v3058_v29 = vadd.f32 %v3057_v7, %v3008_v20 }
 0x961   : > { %v3693_v30 = vpop.f32.mrf.mxu1 }
 0x962   : > { %v3064_v35 = vsel %vm1432_vm7, %v3058_v29, -inf }
 0x963   : > { %3065 = vmax.xlane.f32.xlu0 %v3064_v35 }
 0x9e8   : > { %v3063_v61 = vpop.xlane.xlu1 %3062 }
 0x9e9   : > { %v3067_v42 = vsub.f32 %v3055_v52, %v3063_v61 }
 0x9eb   : > { %v3069_v43 = vmul.f32 1.442695, %v3067_v42 }
 0x9ec   : > { %v3066_v37 = vpop.xlane.xlu0 %3065 }
 0x9ed   : > { %3903 = vpow2.f32 %v3069_v43  ;;  %v3068_v46 = vsub.f32 %v3058_v29, %v3066_v37 }
 0x9ef   : > { %v3071_v57 = vmul.f32 1.442695, %v3068_v46 }
 0x9f1   : > { %3905 = vpow2.f32 %v3071_v57 }
 0x9fa   : > { %v3904_v62 = vpop.eup %3903 }
 0x9fb   : > { %v3073_v45 = vsel %vm1432_vm7, %v3904_v62, 0.0 }
 0x9fc   : > { %3074 = vadd.xlane.f32.xlu0 %v3073_v45 }
 0x9fe   : > { %v3906_v3 = vpop.eup %3905 }
 0x9ff   : > { %v3076_v9 = vsel %vm1432_vm7, %v3906_v3, 0.0 }
 0xa00   : > { %3077 = vadd.xlane.f32.xlu1 %v3076_v9 }
 0xa11   : > { %3087 = vrot.lane.b32.xlu1 %v5757_v49, %s4330_s4 }
 0xa12   : > { %3089 = vrot.lane.b32.xlu0 %v5758_v51, %s4330_s4 }
 0xa15   : > { %3141 = vrot.lane.b32.xlu1 %v5316_v58, %s4331_s21 }
 0xa16   : > { %3143 = vrot.lane.b32.xlu0 %v5318_v19, %s4331_s21 }
 0xa19   : > { %3149 = vrot.lane.b32.xlu1 %v5456_v5, %s4332_s23 }
 0xa1a   : > { %3151 = vrot.lane.b32.xlu0 %v5459_v21, %s4332_s23 }
 0xa85   : > { %v3075_v33 = vpop.xlane.xlu0 %3074 }
 0xa86   : > { %3907 = vrcp.f32 %v3075_v33 }
 0xa89   : > { %v3078_v49 = vpop.xlane.xlu1 %3077  ;;  %v3090_v28 = vpop.permute.xlu0 %3089 }
 0xa8a   : > { %3909 = vrcp.f32 %v3078_v49  ;;  %v3096_v51 = vsel %vm1727_vm3, %v3090_v28, 0 }
 0xa8b   : > { %3695 = vmatpush3.bf16.msra.mxu0 %v3096_v51 }
 0xa8c   : > { %3696 = vmatprep.subr.bf16.mxu0 %v5760_v24 }
 0xa8d   : > { %v3088_v58 = vpop.permute.xlu1 %3087 }
 0xa8f   : > { %3697 = vmatpush3.bf16.msra.mxu0 %v3088_v58 }
 0xa93   : > { %v3908_v19 = vpop.eup %3907 }
 0xa94   : > { %v3081_v5 = vmul.f32 %v3908_v19, %v3904_v62 }
 0xa96   : > { %3553 = vst.msk [vmem:[%s5088_s12 + $0x30] sm:$0xff] %vm1432_vm7, %v3081_v5 }
 0xa97   : > { %v3910_v21 = vpop.eup %3909 }
 0xa98   : > { %v3082_v14 = vmul.f32 %v3910_v21, %v3906_v3 }
 0xa9a   : > { %3554 = vst.msk [vmem:[%s5088_s12 + $0x38] sm:$0xff] %vm1432_vm7, %v3082_v14  ;;  %v3086_v56 = vpack.c.bf16 %v3082_v14, %v3081_v5 }
 0xa9c   : > { %3699 = vmatmul.mubr.msk.bf16.vlgmr.msra.gmra.mxu0 %vm1432_vm7, %v3086_v56 }
 0xa9d   : > { %4192 = shalt.err (!%p4189_p5)
}
 0xa9e   : > { %s4193_s11 = scalar_lea.hbm %s5498_s13, 1024  ;;  %s4197_s12 = scalar_lea.hbm %s5799_s15, 2048 }
 0xa9f   : > { %p4194_p13 = scmp.ne.s32.totalorder %s5498_s13, %s4193_s11  ;;  %p4198_p4 = scmp.lt.s32.totalorder %s5498_s13, %s5799_s15 }
 0xaa0   : > { %p4199_p10 = scmp.lt.s32.totalorder %s4197_s12, %s4193_s11 }
 0xaa1   : > { %p4195_p7 = pnand %p4194_p13, %p5800_p12 }
 0xaa2   : > { %p4200_p11 = por %p4199_p10, %p4198_p4 }
 0xaa3   : > { %p4196_p6 = pneg %p4195_p7 }
 0xaa5   : > { %p4201_p3 = pnand %p4200_p11, %p4196_p6 }
 0xaa7   : > { %4204 = shalt.err (!%p4201_p3)
}
 0xaa8   : > { %s4334_s23 = smov 128   ;;  %s4335_s16 = smov 24   ;;  %v3142_v25 = vpop.permute.xlu1 %3141  ;;  %v3144_v38 = vpop.permute.xlu0 %3143  ;;  %v5801_v31 = vld [vmem:[#allocation60_spill] sm:$0xff]  ;;  %vm3165_vm0 = vcmask 130048   ;;  %v5802_v15 = vld [vmem:[#allocation61_spill] sm:$0xff] }
 0xaa9   : > { %3740 = dma.vmem_to_hbm [thread:$0]  (%p5800_p12), %s5501_s26, 1024, %s5498_s13, %s3178_s30, %s4334_s23, %s4334_s23, %s4331_s21   ;;  %v3163_v36 = vsel %vm1649_vm2, %v5801_v31, %v3142_v25  ;;  %v3164_v54 = vsel %vm1649_vm2, %v5802_v15, %v3144_v38 }
 0xaaa   : > { %s657_s28 = scalar_lea.vmem [#allocation19], %s3485_s24  ;;  %s3566_s13 = sshll.u32 %s5797_s14, 8 }
 0xaab   : > { %s3193_s29 = sshll.u32 %s657_s28, 4  ;;  %s5803_s30 = sld [smem:[#allocation67_spill]]  ;;  %s5538_s29 = int_to_ptr.vmem [resolvable:$true] %s3193_s29 }
 0xaac   : > { %v3150_v59 = vpop.permute.xlu1 %3149  ;;  %v3152_v1 = vpop.permute.xlu0 %3151  ;;  %s3173_s14 = scalar_lea.sflag [#allocation4], %s4616_s20  ;;  %s4205_s27 = scalar_lea.vmem %s5538_s29, 256 }
 0xaad   : > { %v3166_v41 = vsel %vm3165_vm0, %v3163_v36, %v3150_v59  ;;  %v3167_v16 = vsel %vm3165_vm0, %v3164_v54, %v3152_v1  ;;  %p4206_p0 = scmp.ne.s32.totalorder %s5538_s29, %s4205_s27  ;;  %s4336_s17 = smov [#allocation19]  }
 0xaae   : > { %s4209_s5 = sshll.u32 %s4336_s17, 4  ;;  %s4210_s5 = int_to_ptr.vmem [resolvable:$false] %s4209_s5 }
 0xaaf   : > { %p4207_p9 = pnand %p4206_p0, %p5800_p12  ;;  %s4211_s11 = scalar_lea.vmem %s4210_s5, 512 }
 0xab0   : > { %p4212_p1 = scmp.lt.s32.totalorder %s5538_s29, %s4210_s5  ;;  %p4213_p8 = scmp.lt.s32.totalorder %s4211_s11, %s4205_s27 }
 0xab1   : > { %s5543_s7 = scalar_lea.hbm %s5803_s30, %s3566_s13  ;;  %p4208_p2 = pneg %p4207_p9 }
 0xab2   : > { %p4214_p5 = por %p4213_p8, %p4212_p1 }
 0xab4   : > { %p4215_p13 = pnand %p4214_p5, %p4208_p2 }
 0xb5c   : > { %v3132_v24 = vpop.f32.mrf.mxu0 }
 0xb5d   : > { %3157 = vrot.lane.b32.xlu1 %v3132_v24, %s4335_s16 }
 0xb5e   : > { %v3700_v17 = vpop.f32.mrf.mxu0 }
 0xb60   : > { %v3135_v34 = vpop.f32.mrf.mxu0 }
 0xb61   : > { %3159 = vrot.lane.b32.xlu0 %v3135_v34, %s4335_s16 }
 0xb62   : > { %v3701_v0 = vpop.f32.mrf.mxu0 }
 0xbcf   : > { %v3158_v39 = vpop.permute.xlu1 %3157 }
 0xbd0   : > { %v3168_v22 = vsel %vm1432_vm7, %v3166_v41, %v3158_v39 }
 0xbd1   : > { %3170 = vst.msk [vmem:[%s657_s28] sm:$0xff] %vm706_vm1, %v3168_v22 }
 0xbd3   : > { %v3160_v50 = vpop.permute.xlu0 %3159 }
 0xbd4   : > { %v3169_v23 = vsel %vm1432_vm7, %v3167_v16, %v3160_v50 }
 0xbd5   : > { %3171 = vst.msk [vmem:[%s657_s28 + $0x8] sm:$0xff] %vm706_vm1, %v3169_v23 }
 0xbd6   : > { %4218 = shalt.err (!%p4215_p13)
}
 0xbd7   : > { %s4219_s3 = scalar_lea.hbm %s5543_s7, 256  ;;  %s4223_s12 = scalar_lea.hbm %s5803_s30, 512 }
 0xbd8   : > { %p4220_p7 = scmp.ne.s32.totalorder %s5543_s7, %s4219_s3  ;;  %p4224_p10 = scmp.lt.s32.totalorder %s5543_s7, %s5803_s30 }
 0xbd9   : > { %p4225_p11 = scmp.lt.s32.totalorder %s4223_s12, %s4219_s3 }
 0xbda   : > { %p4221_p6 = pnand %p4220_p7, %p5800_p12 }
 0xbdb   : > { %p4226_p3 = por %p4225_p11, %p4224_p10 }
 0xbdc   : > { %p4222_p4 = pneg %p4221_p6 }
 0xbde   : > { %p4227_p0 = pnand %p4226_p3, %p4222_p4 }
 0xbe0   : > { %4230 = shalt.err (!%p4227_p0)
}
 0xbe1   : > { %3739 = dma.vmem_to_hbm [thread:$0]  (%p5800_p12), %s5538_s29, 256, %s5543_s7, %s3173_s14, %s4334_s23, %s4334_s23, %s4331_s21  }
 0xbe2 PF: > { %s5804_s16 = sld [smem:[#allocation30_spill]] }
 0xbe3   : > { %s5805_s28 = sld [smem:[#allocation37_spill]] }
 0xbe4   : > { %s5806_s13 = sld [smem:[#allocation33_spill]] }
 0xbe8   : > { %s3226_s26 = sand.u32 1, %s5804_s16  }
 0xbe9   : > { %p5807_p9 = scmp.ne.s32.totalorder %s5805_s28, 0  ;;  %s3227_s24 = scalar_lea.sflag [#allocation4], %s3226_s26 }
 0xbea   : > { %p5808_p2 = scmp.ge.s32.totalorder %s5806_s13, 2 }
 0xbec   : > { %p3776_p1 = pnand %p5808_p2, %p5807_p9 }
 0xbee   : > { %p3777_p8 = pneg %p3776_p1 }
 0xbf0   : > { %4280 = dma.done.wait (%p3777_p8), %s3227_s24, 256  }
 0xbf1   : > { %4282 = vsyncadd (%p3777_p8), %s3227_s24, 4294967040  ;;  %s3236_s27 = scalar_lea.sflag [#allocation21], %s3226_s26 }
 0xbf2   : > { %4284 = dma.done.wait (%p3777_p8), %s3236_s27, 1024  }
 0xbf3   : > { %4286 = vsyncadd (%p3777_p8), %s3236_s27, 4294966272  ;;  %s41_s26 = sadd.s32 1, %s5806_s13   ;;  %s5809_s19 = sld [smem:[#allocation31_spill]] }
 0xbf4   : > { %p38_p5 = scmp.ge.s32.totalorder %s41_s26, 4   ;;  %s5810_s23 = sld [smem:[#allocation36_spill]] }
 0xbf5   : > { %s5811_s29 = sld [smem:[#allocation34_spill]]  ;;  %s5812_s21 = smov %s4293_s22 }
 0xbf6   : > { %s5814_s24 = smov %s4305_s25 }
 0xbf7   :  { %40 = sbr.rel (!%p38_p5) target bundleno = 23 (0x17), region = 190 }
 0xbf9   : > { %s5813_s22 = smov %s5809_s19 }
 0xbfb   : > { %s5815_s25 = smov %s5811_s29 }
 0xbfc   :  { %3241 = vsyncpa [#allocation3], 1 }
 0xbfd   :  { %3243 = vsyncpa [#allocation3 + $0x1], 1 }
 0xbfe   :  { %3244 = vsyncpa [#allocation6], 1 }
 0xbff   :  { %3246 = vsyncpa [#allocation6 + $0x1], 1 }
 0xc00   :  { %3247 = vsyncpa [#allocation9], 1 }
 0xc01   :  { %3248 = vsyncpa [#allocation12], 1 }
 0xc02   :  { %3249 = vsyncpa [#allocation15], 1 }
 0xc03   :  { %3250 = vsyncpa [#allocation18], 1 }
 0xc04   :  { %3252 = vsyncpa [#allocation18 + $0x1], 1 }
 0xc05   :  { %3253 = vsyncpa [#allocation4], 1 }
 0xc06   :  { %3255 = vsyncpa [#allocation4 + $0x1], 1 }
 0xc07   :  { %3256 = vsyncpa [#allocation21], 1 }
 0xc08   :  { %3258 = vsyncpa [#allocation21 + $0x1], 1 }

</bundles_post_ra>
